<compile_context>
chip_gen: v5e
topology: v5e:2x2
jax: 0.10.0
libtpu: 0.0.40
codegen_flags: <defaults>
</compile_context>

<pallas_src>
import jax
import jax.numpy as jnp
from jax.experimental import pallas as pl
from jax.experimental.pallas import tpu as pltpu


# ----------------------------------------------------------------------------
# Fused kernel: GRU (unrolled) + rnn_fc + (folded) concat + final_layer.
# Gate order follows PyTorch: [r | z | n].
# ----------------------------------------------------------------------------
def decoder_kernel(x2_ref, enc_ref, wih_ref, whh_ref, bih_ref, bhh_ref,
                   wfc_hbm, bfc_ref, wfe_ref, wfh_ref, bfin_ref,
                   out_ref,
                   wfc_vmem, wfc_sem, hs_scr):
    F, T, H = hs_scr.shape

    # --- Kick off the big rnn_fc weight DMA; overlap it with the recurrence.
    wfc_cp = pltpu.make_async_copy(wfc_hbm, wfc_vmem, wfc_sem)
    wfc_cp.start()

    # --- Batched input->hidden projection for ALL timesteps: one MXU pass. ---
    # x2_ref is dec_inp pre-reshaped in the wrapper to (T*F, L).
    gi_all = jnp.dot(x2_ref[...], wih_ref[...],
                     preferred_element_type=jnp.float32) + bih_ref[...]   # (T*F, 3H)

    # Hoisted (loop-invariant) loads / broadcasts.
    whh = whh_ref[...]                                    # (H, 3H)
    bhh = jnp.broadcast_to(bhh_ref[...], (F, 3 * H))      # (F, 3H)

    # --- Recurrence: T is a small compile-time constant -> full unroll. ---
    h = jnp.zeros((F, H), jnp.float32)
    for t in range(T):
        gi = gi_all[t * F:(t + 1) * F, :]                 # (F, 3H), static slice
        gh = jnp.dot(h, whh, preferred_element_type=jnp.float32) + bhh
        # Fused r/z sigmoid over the first 2H lanes (one EUP push).
        rz = jax.nn.sigmoid(gi[:, :2 * H] + gh[:, :2 * H])
        r, z = rz[:, :H], rz[:, H:]
        n = jnp.tanh(gi[:, 2 * H:] + r * gh[:, 2 * H:])
        h = n + z * (h - n)                               # == (1-z)*n + z*h
        hs_scr[:, t, :] = h                               # (F, H) into slot t

    # --- rnn_fc: hid_fc[t] = flatten_f(h_t) @ w_fc + b_fc, as ONE batched
    #     contraction over (f, h):  sum_f  hs[f] (T,H) @ w_fc3[f] (H,1000). ---
    wfc_cp.wait()                                         # weights now in VMEM
    hs_all = hs_scr[...].astype(jnp.bfloat16)             # (F, T, H)
    partial = jnp.einsum('fth,fhe->fte', hs_all, wfc_vmem[...],
                         preferred_element_type=jnp.float32)   # (F, T, 1000)
    hid_fc = jnp.sum(partial, axis=0) + bfc_ref[...]      # (T, 1000) f32

    # --- final_layer with folded concat:
    # concat([enc, hid_fc]) @ W_fin == enc @ W_fin[:1000] + hid_fc @ W_fin[1000:]
    out = (jnp.dot(enc_ref[...].astype(jnp.bfloat16), wfe_ref[...],
                   preferred_element_type=jnp.float32)
           + jnp.dot(hid_fc.astype(jnp.bfloat16), wfh_ref[...],
                     preferred_element_type=jnp.float32)
           + bfin_ref[...])
    out_ref[...] = out.astype(out_ref.dtype)


def prepare_decoder_params(params):
    """One-time (init-time) layout / dtype prep for the kernel. NOT per call."""
    H = params["w_hh"].shape[0]
    FH, E_FC = params["w_fc"].shape
    F = FH // H
    return {
        "w_ih": params["w_ih"], "w_hh": params["w_hh"],
        "b_ih": params["b_ih"], "b_hh": params["b_hh"],
        # bf16 halves the dominant HBM traffic; matmuls accumulate in f32.
        "w_fc3": params["w_fc"].reshape(F, H, E_FC).astype(jnp.bfloat16),
        "b_fc": params["b_fc"],
        "w_fin_enc": params["w_fin_enc"].astype(jnp.bfloat16),
        "w_fin_hid": params["w_fin_hid"].astype(jnp.bfloat16),
        "b_fin": params["b_fin"],
    }


def rnn_decoder_forward(enc_out, dec_inp, kp):
    T, F, L = dec_inp.shape
    H = kp["w_hh"].shape[0]
    E = enc_out.shape[1]
    E_FC = kp["b_fc"].shape[1]
    C = kp["w_fin_hid"].shape[1]

    # Wrapper-side (free) layout plumbing: only a leading-dim reshape per call.
    x2d = dec_inp.reshape(T * F, L)

    const = lambda shp: pl.BlockSpec(shp, (lambda i: (0,) * len(shp)))

    out = pl.pallas_call(
        decoder_kernel,
        out_shape=jax.ShapeDtypeStruct((T, C), jnp.float32),
        grid_spec=pltpu.PrefetchScalarGridSpec(
            num_scalar_prefetch=0,
            grid=(1,),
            in_specs=[
                const((T * F, L)),                      # x2d                f32
                const((T, E)),                          # enc_out            f32
                const((L, 3 * H)),                      # w_ih               f32
                const((H, 3 * H)),                      # w_hh               f32
                const((1, 3 * H)),                      # b_ih               f32
                const((1, 3 * H)),                      # b_hh               f32
                pl.BlockSpec(memory_space=pl.ANY),      # w_fc3 (HBM, manual DMA)
                const((1, E_FC)),                       # b_fc               f32
                const((E, C)),                          # w_fin_enc          bf16
                const((E_FC, C)),                       # w_fin_hid          bf16
                const((1, C)),                          # b_fin              f32
            ],
            out_specs=const((T, C)),
            scratch_shapes=[
                pltpu.VMEM((F, H, E_FC), jnp.bfloat16),  # w_fc landing buffer
                pltpu.SemaphoreType.DMA,                 # its DMA semaphore
                pltpu.VMEM((F, T, H), jnp.float32),      # per-step hidden states
            ],
        ),
        compiler_params=pltpu.CompilerParams(
            dimension_semantics=("arbitrary",)),
    )(x2d, enc_out, kp["w_ih"], kp["w_hh"], kp["b_ih"], kp["b_hh"],
      kp["w_fc3"], kp["b_fc"], kp["w_fin_enc"], kp["w_fin_hid"], kp["b_fin"])

    # Dropout: eval-mode identity.
    return out


# ----------------------------------------------------------------------------
# Pure-JAX f32 reference for verification.
# ----------------------------------------------------------------------------
def ref_forward(enc_out, dec_inp, params):
    w_ih, w_hh = params["w_ih"], params["w_hh"]
    b_ih, b_hh = params["b_ih"], params["b_hh"]
    T, F, L = dec_inp.shape
    H = w_hh.shape[0]

    def step(h, x_t):
        gi = x_t @ w_ih + b_ih
        gh = h @ w_hh + b_hh
        i_r, i_z, i_n = gi[:, :H], gi[:, H:2 * H], gi[:, 2 * H:]
        h_r, h_z, h_n = gh[:, :H], gh[:, H:2 * H], gh[:, 2 * H:]
        r = jax.nn.sigmoid(i_r + h_r)
        z = jax.nn.sigmoid(i_z + h_z)
        n = jnp.tanh(i_n + r * h_n)
        h_new = (1.0 - z) * n + z * h
        return h_new, h_new

    h0 = jnp.zeros((F, H), jnp.float32)
    _, hs = jax.lax.scan(step, h0, dec_inp)
    hid_flat = hs.reshape(T, -1)
    hid_fc = hid_flat @ params["w_fc"] + params["b_fc"]
    concat = jnp.concatenate([enc_out, hid_fc], axis=1)
    w_fin = jnp.concatenate([params["w_fin_enc"], params["w_fin_hid"]], axis=0)
    return concat @ w_fin + params["b_fin"]


def init_params(key, max_len, embedding_dim, num_features, class_n):
    L, H, F, C = max_len, embedding_dim, num_features, class_n
    ks = jax.random.split(key, 10)
    s_gru = 1.0 / jnp.sqrt(H)
    s_fc = 1.0 / jnp.sqrt(F * H)
    s_fin = 1.0 / jnp.sqrt(2000)
    u = lambda k, shp, s: jax.random.uniform(k, shp, jnp.float32, -s, s)
    return {
        # GRU weights stored pre-transposed: (in, 3H) / (H, 3H), gate order [r|z|n]
        "w_ih": u(ks[0], (L, 3 * H), s_gru),
        "w_hh": u(ks[1], (H, 3 * H), s_gru),
        "b_ih": u(ks[2], (1, 3 * H), s_gru),
        "b_hh": u(ks[3], (1, 3 * H), s_gru),
        # rnn_fc : (F*H, 1000)
        "w_fc": u(ks[4], (F * H, 1000), s_fc),
        "b_fc": u(ks[5], (1, 1000), s_fc),
        # final_layer split into enc / hidden halves of the 2000-wide input
        "w_fin_enc": u(ks[6], (1000, C), s_fin),
        "w_fin_hid": u(ks[7], (1000, C), s_fin),
        "b_fin": u(ks[8], (1, C), s_fin),
    }


if __name__ == "__main__":
    max_len = 16        # GRU input_size
    embedding_dim = 32  # GRU hidden_size
    num_features = 8    # GRU "batch" dim
    class_n = 10
    T = 4               # outer batch (GRU sequence length)

    key = jax.random.PRNGKey(0)
    k_p, k_e, k_d = jax.random.split(key, 3)
    params = init_params(k_p, max_len, embedding_dim, num_features, class_n)
    kparams = prepare_decoder_params(params)   # init-time bf16 cast / reshape

    enc_out = jax.random.normal(k_e, (T, 1000), jnp.float32)
    dec_inp = jax.random.normal(k_d, (T, num_features, max_len), jnp.float32)

    out = jax.jit(rnn_decoder_forward)(enc_out, dec_inp, kparams)
    out = jax.block_until_ready(out)

    ref = jax.block_until_ready(ref_forward(enc_out, dec_inp, params))
    assert out.shape == (T, class_n)
    # bf16 weights for the big matmuls -> relaxed tolerance vs. the f32 reference.
    assert jnp.allclose(out, ref, atol=2e-2, rtol=2e-2), \
        f"mismatch: max abs err {jnp.max(jnp.abs(out - ref))}"

    print("KERNEL_OK")
</pallas_src>

<mosaic_0001>
module attributes {stable_mosaic.version = 11 : i64} {
  func.func @decoder_kernel(%arg0: i32, %arg1: memref<32x16xf32, #tpu.memory_space<vmem>>, %arg2: memref<4x1000xf32, #tpu.memory_space<vmem>>, %arg3: memref<16x96xf32, #tpu.memory_space<vmem>>, %arg4: memref<32x96xf32, #tpu.memory_space<vmem>>, %arg5: memref<1x96xf32, #tpu.memory_space<vmem>>, %arg6: memref<1x96xf32, #tpu.memory_space<vmem>>, %arg7: memref<8x32x1000xbf16, #tpu.memory_space<any>>, %arg8: memref<1x1000xf32, #tpu.memory_space<vmem>>, %arg9: memref<1000x10xbf16, #tpu.memory_space<vmem>>, %arg10: memref<1000x10xbf16, #tpu.memory_space<vmem>>, %arg11: memref<1x10xf32, #tpu.memory_space<vmem>>, %arg12: memref<4x10xf32, #tpu.memory_space<vmem>>, %arg13: memref<8x32x1000xbf16, #tpu.memory_space<vmem>>, %arg14: memref<!tpu.dma_semaphore, #tpu.memory_space<semaphore_mem>>, %arg15: memref<8x4x32xf32, #tpu.memory_space<vmem>>) attributes {dimension_semantics = [#tpu.dimension_semantics<arbitrary>], iteration_bounds = array<i64: 1>, scalar_prefetch = 0 : i64, scratch_operands = 3 : i64, tpu.core_type = #tpu.core_type<tc>, window_params = [{pipeline_mode = #tpu.pipeline_mode<synchronous>, transform_indices = @transform_0, window_bounds = array<i64: 32, 16>}, {pipeline_mode = #tpu.pipeline_mode<synchronous>, transform_indices = @transform_1, window_bounds = array<i64: 4, 1000>}, {pipeline_mode = #tpu.pipeline_mode<synchronous>, transform_indices = @transform_2, window_bounds = array<i64: 16, 96>}, {pipeline_mode = #tpu.pipeline_mode<synchronous>, transform_indices = @transform_3, window_bounds = array<i64: 32, 96>}, {pipeline_mode = #tpu.pipeline_mode<synchronous>, transform_indices = @transform_4, window_bounds = array<i64: 1, 96>}, {pipeline_mode = #tpu.pipeline_mode<synchronous>, transform_indices = @transform_5, window_bounds = array<i64: 1, 96>}, {}, {pipeline_mode = #tpu.pipeline_mode<synchronous>, transform_indices = @transform_7, window_bounds = array<i64: 1, 1000>}, {pipeline_mode = #tpu.pipeline_mode<synchronous>, transform_indices = @transform_8, window_bounds = array<i64: 1000, 10>}, {pipeline_mode = #tpu.pipeline_mode<synchronous>, transform_indices = @transform_9, window_bounds = array<i64: 1000, 10>}, {pipeline_mode = #tpu.pipeline_mode<synchronous>, transform_indices = @transform_10, window_bounds = array<i64: 1, 10>}, {pipeline_mode = #tpu.pipeline_mode<synchronous>, transform_indices = @transform_11, window_bounds = array<i64: 4, 10>}]} {
    tpu.enqueue_dma source(%arg7 : memref<8x32x1000xbf16, #tpu.memory_space<any>>) target(%arg13 : memref<8x32x1000xbf16, #tpu.memory_space<vmem>>) target_semaphore(%arg14 : memref<!tpu.dma_semaphore, #tpu.memory_space<semaphore_mem>>)
    %c0 = arith.constant 0 : index
    %c0_0 = arith.constant 0 : index
    %0 = vector.load %arg1[%c0, %c0_0] : memref<32x16xf32, #tpu.memory_space<vmem>>, vector<32x16xf32>
    %c0_1 = arith.constant 0 : index
    %c0_2 = arith.constant 0 : index
    %1 = vector.load %arg3[%c0_1, %c0_2] : memref<16x96xf32, #tpu.memory_space<vmem>>, vector<16x96xf32>
    %cst = arith.constant dense<0.000000e+00> : vector<32x96xf32>
    %2 = tpu.matmul %0, %1, %cst {dimension_numbers = #tpu.dot_dimension_numbers<[1], [0], [0], [1], [0, 0, 1, 1], [], []>} : vector<32x16xf32>, vector<16x96xf32>, vector<32x96xf32> -> vector<32x96xf32>
    %c0_3 = arith.constant 0 : index
    %c0_4 = arith.constant 0 : index
    %3 = vector.load %arg5[%c0_3, %c0_4] : memref<1x96xf32, #tpu.memory_space<vmem>>, vector<1x96xf32>
    %4 = vector.broadcast %3 : vector<1x96xf32> to vector<32x96xf32>
    %5 = arith.addf %2, %4 : vector<32x96xf32>
    %c0_5 = arith.constant 0 : index
    %c0_6 = arith.constant 0 : index
    %6 = vector.load %arg4[%c0_5, %c0_6] : memref<32x96xf32, #tpu.memory_space<vmem>>, vector<32x96xf32>
    %c0_7 = arith.constant 0 : index
    %c0_8 = arith.constant 0 : index
    %7 = vector.load %arg6[%c0_7, %c0_8] : memref<1x96xf32, #tpu.memory_space<vmem>>, vector<1x96xf32>
    %8 = vector.shape_cast %7 : vector<1x96xf32> to vector<1x96xf32>
    %9 = vector.broadcast %8 : vector<1x96xf32> to vector<8x96xf32>
    %cst_9 = arith.constant 0.000000e+00 : f32
    %10 = vector.broadcast %cst_9 : f32 to vector<8x32xf32>
    %11 = vector.extract_strided_slice %5 {offsets = [0, 0], sizes = [8, 96], strides = [1, 1]} : vector<32x96xf32> to vector<8x96xf32>
    %cst_10 = arith.constant dense<0.000000e+00> : vector<8x96xf32>
    %12 = tpu.matmul %10, %6, %cst_10 {dimension_numbers = #tpu.dot_dimension_numbers<[1], [0], [0], [1], [0, 0, 1, 1], [], []>} : vector<8x32xf32>, vector<32x96xf32>, vector<8x96xf32> -> vector<8x96xf32>
    %13 = arith.addf %12, %9 : vector<8x96xf32>
    %14 = vector.extract_strided_slice %11 {offsets = [0, 0], sizes = [8, 64], strides = [1, 1]} : vector<8x96xf32> to vector<8x64xf32>
    %15 = vector.extract_strided_slice %13 {offsets = [0, 0], sizes = [8, 64], strides = [1, 1]} : vector<8x96xf32> to vector<8x64xf32>
    %16 = arith.addf %14, %15 : vector<8x64xf32>
    %17 = arith.negf %16 : vector<8x64xf32>
    %18 = math.exp %17 : vector<8x64xf32>
    %cst_11 = arith.constant 1.000000e+00 : f32
    %19 = vector.broadcast %cst_11 : f32 to vector<8x64xf32>
    %20 = arith.addf %19, %18 : vector<8x64xf32>
    %21 = arith.divf %19, %20 : vector<8x64xf32>
    %22 = vector.extract_strided_slice %21 {offsets = [0, 0], sizes = [8, 32], strides = [1, 1]} : vector<8x64xf32> to vector<8x32xf32>
    %23 = vector.extract_strided_slice %21 {offsets = [0, 32], sizes = [8, 32], strides = [1, 1]} : vector<8x64xf32> to vector<8x32xf32>
    %24 = vector.extract_strided_slice %11 {offsets = [0, 64], sizes = [8, 32], strides = [1, 1]} : vector<8x96xf32> to vector<8x32xf32>
    %25 = vector.extract_strided_slice %13 {offsets = [0, 64], sizes = [8, 32], strides = [1, 1]} : vector<8x96xf32> to vector<8x32xf32>
    %26 = arith.mulf %22, %25 : vector<8x32xf32>
    %27 = arith.addf %24, %26 : vector<8x32xf32>
    %28 = math.tanh %27 : vector<8x32xf32>
    %29 = arith.subf %10, %28 : vector<8x32xf32>
    %30 = arith.mulf %23, %29 : vector<8x32xf32>
    %31 = arith.addf %28, %30 : vector<8x32xf32>
    %c0_12 = arith.constant 0 : index
    %c0_13 = arith.constant 0 : index
    %c0_14 = arith.constant 0 : index
    %32 = vector.load %arg15[%c0_12, %c0_13, %c0_14] : memref<8x4x32xf32, #tpu.memory_space<vmem>>, vector<8x1x32xf32>
    %33 = vector.shape_cast %32 : vector<8x1x32xf32> to vector<8x32xf32>
    %34 = vector.shape_cast %31 : vector<8x32xf32> to vector<8x1x32xf32>
    tpu.vector_store %arg15[%c0_12, %c0_13, %c0_14], %34 {strides = array<i32>} : memref<8x4x32xf32, #tpu.memory_space<vmem>>, vector<8x1x32xf32>,
    %35 = vector.extract_strided_slice %5 {offsets = [8, 0], sizes = [8, 96], strides = [1, 1]} : vector<32x96xf32> to vector<8x96xf32>
    %cst_15 = arith.constant dense<0.000000e+00> : vector<8x96xf32>
    %36 = tpu.matmul %31, %6, %cst_15 {dimension_numbers = #tpu.dot_dimension_numbers<[1], [0], [0], [1], [0, 0, 1, 1], [], []>} : vector<8x32xf32>, vector<32x96xf32>, vector<8x96xf32> -> vector<8x96xf32>
    %37 = arith.addf %36, %9 : vector<8x96xf32>
    %38 = vector.extract_strided_slice %35 {offsets = [0, 0], sizes = [8, 64], strides = [1, 1]} : vector<8x96xf32> to vector<8x64xf32>
    %39 = vector.extract_strided_slice %37 {offsets = [0, 0], sizes = [8, 64], strides = [1, 1]} : vector<8x96xf32> to vector<8x64xf32>
    %40 = arith.addf %38, %39 : vector<8x64xf32>
    %41 = arith.negf %40 : vector<8x64xf32>
    %42 = math.exp %41 : vector<8x64xf32>
    %cst_16 = arith.constant 1.000000e+00 : f32
    %43 = vector.broadcast %cst_16 : f32 to vector<8x64xf32>
    %44 = arith.addf %43, %42 : vector<8x64xf32>
    %45 = arith.divf %43, %44 : vector<8x64xf32>
    %46 = vector.extract_strided_slice %45 {offsets = [0, 0], sizes = [8, 32], strides = [1, 1]} : vector<8x64xf32> to vector<8x32xf32>
    %47 = vector.extract_strided_slice %45 {offsets = [0, 32], sizes = [8, 32], strides = [1, 1]} : vector<8x64xf32> to vector<8x32xf32>
    %48 = vector.extract_strided_slice %35 {offsets = [0, 64], sizes = [8, 32], strides = [1, 1]} : vector<8x96xf32> to vector<8x32xf32>
    %49 = vector.extract_strided_slice %37 {offsets = [0, 64], sizes = [8, 32], strides = [1, 1]} : vector<8x96xf32> to vector<8x32xf32>
    %50 = arith.mulf %46, %49 : vector<8x32xf32>
    %51 = arith.addf %48, %50 : vector<8x32xf32>
    %52 = math.tanh %51 : vector<8x32xf32>
    %53 = arith.subf %31, %52 : vector<8x32xf32>
    %54 = arith.mulf %47, %53 : vector<8x32xf32>
    %55 = arith.addf %52, %54 : vector<8x32xf32>
    %c0_17 = arith.constant 0 : index
    %c1 = arith.constant 1 : index
    %c0_18 = arith.constant 0 : index
    %56 = vector.load %arg15[%c0_17, %c1, %c0_18] : memref<8x4x32xf32, #tpu.memory_space<vmem>>, vector<8x1x32xf32>
    %57 = vector.shape_cast %56 : vector<8x1x32xf32> to vector<8x32xf32>
    %58 = vector.shape_cast %55 : vector<8x32xf32> to vector<8x1x32xf32>
    tpu.vector_store %arg15[%c0_17, %c1, %c0_18], %58 {strides = array<i32>} : memref<8x4x32xf32, #tpu.memory_space<vmem>>, vector<8x1x32xf32>,
    %59 = vector.extract_strided_slice %5 {offsets = [16, 0], sizes = [8, 96], strides = [1, 1]} : vector<32x96xf32> to vector<8x96xf32>
    %cst_19 = arith.constant dense<0.000000e+00> : vector<8x96xf32>
    %60 = tpu.matmul %55, %6, %cst_19 {dimension_numbers = #tpu.dot_dimension_numbers<[1], [0], [0], [1], [0, 0, 1, 1], [], []>} : vector<8x32xf32>, vector<32x96xf32>, vector<8x96xf32> -> vector<8x96xf32>
    %61 = arith.addf %60, %9 : vector<8x96xf32>
    %62 = vector.extract_strided_slice %59 {offsets = [0, 0], sizes = [8, 64], strides = [1, 1]} : vector<8x96xf32> to vector<8x64xf32>
    %63 = vector.extract_strided_slice %61 {offsets = [0, 0], sizes = [8, 64], strides = [1, 1]} : vector<8x96xf32> to vector<8x64xf32>
    %64 = arith.addf %62, %63 : vector<8x64xf32>
    %65 = arith.negf %64 : vector<8x64xf32>
    %66 = math.exp %65 : vector<8x64xf32>
    %cst_20 = arith.constant 1.000000e+00 : f32
    %67 = vector.broadcast %cst_20 : f32 to vector<8x64xf32>
    %68 = arith.addf %67, %66 : vector<8x64xf32>
    %69 = arith.divf %67, %68 : vector<8x64xf32>
    %70 = vector.extract_strided_slice %69 {offsets = [0, 0], sizes = [8, 32], strides = [1, 1]} : vector<8x64xf32> to vector<8x32xf32>
    %71 = vector.extract_strided_slice %69 {offsets = [0, 32], sizes = [8, 32], strides = [1, 1]} : vector<8x64xf32> to vector<8x32xf32>
    %72 = vector.extract_strided_slice %59 {offsets = [0, 64], sizes = [8, 32], strides = [1, 1]} : vector<8x96xf32> to vector<8x32xf32>
    %73 = vector.extract_strided_slice %61 {offsets = [0, 64], sizes = [8, 32], strides = [1, 1]} : vector<8x96xf32> to vector<8x32xf32>
    %74 = arith.mulf %70, %73 : vector<8x32xf32>
    %75 = arith.addf %72, %74 : vector<8x32xf32>
    %76 = math.tanh %75 : vector<8x32xf32>
    %77 = arith.subf %55, %76 : vector<8x32xf32>
    %78 = arith.mulf %71, %77 : vector<8x32xf32>
    %79 = arith.addf %76, %78 : vector<8x32xf32>
    %c0_21 = arith.constant 0 : index
    %c2 = arith.constant 2 : index
    %c0_22 = arith.constant 0 : index
    %80 = vector.load %arg15[%c0_21, %c2, %c0_22] : memref<8x4x32xf32, #tpu.memory_space<vmem>>, vector<8x1x32xf32>
    %81 = vector.shape_cast %80 : vector<8x1x32xf32> to vector<8x32xf32>
    %82 = vector.shape_cast %79 : vector<8x32xf32> to vector<8x1x32xf32>
    tpu.vector_store %arg15[%c0_21, %c2, %c0_22], %82 {strides = array<i32>} : memref<8x4x32xf32, #tpu.memory_space<vmem>>, vector<8x1x32xf32>,
    %83 = vector.extract_strided_slice %5 {offsets = [24, 0], sizes = [8, 96], strides = [1, 1]} : vector<32x96xf32> to vector<8x96xf32>
    %cst_23 = arith.constant dense<0.000000e+00> : vector<8x96xf32>
    %84 = tpu.matmul %79, %6, %cst_23 {dimension_numbers = #tpu.dot_dimension_numbers<[1], [0], [0], [1], [0, 0, 1, 1], [], []>} : vector<8x32xf32>, vector<32x96xf32>, vector<8x96xf32> -> vector<8x96xf32>
    %85 = arith.addf %84, %9 : vector<8x96xf32>
    %86 = vector.extract_strided_slice %83 {offsets = [0, 0], sizes = [8, 64], strides = [1, 1]} : vector<8x96xf32> to vector<8x64xf32>
    %87 = vector.extract_strided_slice %85 {offsets = [0, 0], sizes = [8, 64], strides = [1, 1]} : vector<8x96xf32> to vector<8x64xf32>
    %88 = arith.addf %86, %87 : vector<8x64xf32>
    %89 = arith.negf %88 : vector<8x64xf32>
    %90 = math.exp %89 : vector<8x64xf32>
    %cst_24 = arith.constant 1.000000e+00 : f32
    %91 = vector.broadcast %cst_24 : f32 to vector<8x64xf32>
    %92 = arith.addf %91, %90 : vector<8x64xf32>
    %93 = arith.divf %91, %92 : vector<8x64xf32>
    %94 = vector.extract_strided_slice %93 {offsets = [0, 0], sizes = [8, 32], strides = [1, 1]} : vector<8x64xf32> to vector<8x32xf32>
    %95 = vector.extract_strided_slice %93 {offsets = [0, 32], sizes = [8, 32], strides = [1, 1]} : vector<8x64xf32> to vector<8x32xf32>
    %96 = vector.extract_strided_slice %83 {offsets = [0, 64], sizes = [8, 32], strides = [1, 1]} : vector<8x96xf32> to vector<8x32xf32>
    %97 = vector.extract_strided_slice %85 {offsets = [0, 64], sizes = [8, 32], strides = [1, 1]} : vector<8x96xf32> to vector<8x32xf32>
    %98 = arith.mulf %94, %97 : vector<8x32xf32>
    %99 = arith.addf %96, %98 : vector<8x32xf32>
    %100 = math.tanh %99 : vector<8x32xf32>
    %101 = arith.subf %79, %100 : vector<8x32xf32>
    %102 = arith.mulf %95, %101 : vector<8x32xf32>
    %103 = arith.addf %100, %102 : vector<8x32xf32>
    %c0_25 = arith.constant 0 : index
    %c3 = arith.constant 3 : index
    %c0_26 = arith.constant 0 : index
    %104 = vector.load %arg15[%c0_25, %c3, %c0_26] : memref<8x4x32xf32, #tpu.memory_space<vmem>>, vector<8x1x32xf32>
    %105 = vector.shape_cast %104 : vector<8x1x32xf32> to vector<8x32xf32>
    %106 = vector.shape_cast %103 : vector<8x32xf32> to vector<8x1x32xf32>
    tpu.vector_store %arg15[%c0_25, %c3, %c0_26], %106 {strides = array<i32>} : memref<8x4x32xf32, #tpu.memory_space<vmem>>, vector<8x1x32xf32>,
    tpu.wait_dma2 semaphore(%arg14 : memref<!tpu.dma_semaphore, #tpu.memory_space<semaphore_mem>>) src(%arg7 : memref<8x32x1000xbf16, #tpu.memory_space<any>>) dst(%arg13 : memref<8x32x1000xbf16, #tpu.memory_space<vmem>>)
    %c0_27 = arith.constant 0 : index
    %c0_28 = arith.constant 0 : index
    %c0_29 = arith.constant 0 : index
    %107 = vector.load %arg15[%c0_27, %c0_28, %c0_29] : memref<8x4x32xf32, #tpu.memory_space<vmem>>, vector<8x4x32xf32>
    %108 = arith.truncf %107 : vector<8x4x32xf32> to vector<8x4x32xbf16>
    %c0_30 = arith.constant 0 : index
    %c0_31 = arith.constant 0 : index
    %c0_32 = arith.constant 0 : index
    %109 = vector.load %arg13[%c0_30, %c0_31, %c0_32] : memref<8x32x1000xbf16, #tpu.memory_space<vmem>>, vector<8x32x1000xbf16>
    "tpu.trace_start"() <{level = 10 : i32, message = "fth,fhe->fte"}> : () -> ()
    %cst_33 = arith.constant dense<0.000000e+00> : vector<8x4x1000xf32>
    %110 = tpu.matmul %108, %109, %cst_33 {dimension_numbers = #tpu.dot_dimension_numbers<[2], [1], [1], [2], [0, 0, 0, 1, 1, 2], [0], [0]>} : vector<8x4x32xbf16>, vector<8x32x1000xbf16>, vector<8x4x1000xf32> -> vector<8x4x1000xf32>
    "tpu.trace_stop"() : () -> ()
    %cst_34 = arith.constant dense<0.000000e+00> : vector<4x1000xf32>
    %111 = vector.multi_reduction <add>, %110, %cst_34 [0] : vector<8x4x1000xf32> to vector<4x1000xf32>
    %c0_35 = arith.constant 0 : index
    %c0_36 = arith.constant 0 : index
    %112 = vector.load %arg8[%c0_35, %c0_36] : memref<1x1000xf32, #tpu.memory_space<vmem>>, vector<1x1000xf32>
    %113 = vector.broadcast %112 : vector<1x1000xf32> to vector<4x1000xf32>
    %114 = arith.addf %111, %113 : vector<4x1000xf32>
    %c0_37 = arith.constant 0 : index
    %c0_38 = arith.constant 0 : index
    %115 = vector.load %arg2[%c0_37, %c0_38] : memref<4x1000xf32, #tpu.memory_space<vmem>>, vector<4x1000xf32>
    %116 = arith.truncf %115 : vector<4x1000xf32> to vector<4x1000xbf16>
    %c0_39 = arith.constant 0 : index
    %c0_40 = arith.constant 0 : index
    %117 = vector.load %arg9[%c0_39, %c0_40] : memref<1000x10xbf16, #tpu.memory_space<vmem>>, vector<1000x10xbf16>
    %cst_41 = arith.constant dense<0.000000e+00> : vector<4x10xf32>
    %118 = tpu.matmul %116, %117, %cst_41 {dimension_numbers = #tpu.dot_dimension_numbers<[1], [0], [0], [1], [0, 0, 1, 1], [], []>} : vector<4x1000xbf16>, vector<1000x10xbf16>, vector<4x10xf32> -> vector<4x10xf32>
    %119 = arith.truncf %114 : vector<4x1000xf32> to vector<4x1000xbf16>
    %c0_42 = arith.constant 0 : index
    %c0_43 = arith.constant 0 : index
    %120 = vector.load %arg10[%c0_42, %c0_43] : memref<1000x10xbf16, #tpu.memory_space<vmem>>, vector<1000x10xbf16>
    %cst_44 = arith.constant dense<0.000000e+00> : vector<4x10xf32>
    %121 = tpu.matmul %119, %120, %cst_44 {dimension_numbers = #tpu.dot_dimension_numbers<[1], [0], [0], [1], [0, 0, 1, 1], [], []>} : vector<4x1000xbf16>, vector<1000x10xbf16>, vector<4x10xf32> -> vector<4x10xf32>
    %122 = arith.addf %118, %121 : vector<4x10xf32>
    %c0_45 = arith.constant 0 : index
    %c0_46 = arith.constant 0 : index
    %123 = vector.load %arg11[%c0_45, %c0_46] : memref<1x10xf32, #tpu.memory_space<vmem>>, vector<1x10xf32>
    %124 = vector.broadcast %123 : vector<1x10xf32> to vector<4x10xf32>
    %125 = arith.addf %122, %124 : vector<4x10xf32>
    %c0_47 = arith.constant 0 : index
    %c0_48 = arith.constant 0 : index
    %126 = vector.load %arg12[%c0_47, %c0_48] : memref<4x10xf32, #tpu.memory_space<vmem>>, vector<4x10xf32>
    tpu.vector_store %arg12[%c0_47, %c0_48], %125 {strides = array<i32>} : memref<4x10xf32, #tpu.memory_space<vmem>>, vector<4x10xf32>,
    return
  }
  func.func @transform_0(%arg0: i32) -> (i32, i32) {
    %c0_i32 = arith.constant 0 : i32
    %c0_i32_0 = arith.constant 0 : i32
    %c0_i32_1 = arith.constant 0 : i32
    return %c0_i32, %c0_i32_0 : i32, i32
  }
  func.func @transform_1(%arg0: i32) -> (i32, i32) {
    %c0_i32 = arith.constant 0 : i32
    %c0_i32_0 = arith.constant 0 : i32
    %c0_i32_1 = arith.constant 0 : i32
    return %c0_i32, %c0_i32_0 : i32, i32
  }
  func.func @transform_2(%arg0: i32) -> (i32, i32) {
    %c0_i32 = arith.constant 0 : i32
    %c0_i32_0 = arith.constant 0 : i32
    %c0_i32_1 = arith.constant 0 : i32
    return %c0_i32, %c0_i32_0 : i32, i32
  }
  func.func @transform_3(%arg0: i32) -> (i32, i32) {
    %c0_i32 = arith.constant 0 : i32
    %c0_i32_0 = arith.constant 0 : i32
    %c0_i32_1 = arith.constant 0 : i32
    return %c0_i32, %c0_i32_0 : i32, i32
  }
  func.func @transform_4(%arg0: i32) -> (i32, i32) {
    %c0_i32 = arith.constant 0 : i32
    %c0_i32_0 = arith.constant 0 : i32
    %c0_i32_1 = arith.constant 0 : i32
    return %c0_i32, %c0_i32_0 : i32, i32
  }
  func.func @transform_5(%arg0: i32) -> (i32, i32) {
    %c0_i32 = arith.constant 0 : i32
    %c0_i32_0 = arith.constant 0 : i32
    %c0_i32_1 = arith.constant 0 : i32
    return %c0_i32, %c0_i32_0 : i32, i32
  }
  func.func @transform_7(%arg0: i32) -> (i32, i32) {
    %c0_i32 = arith.constant 0 : i32
    %c0_i32_0 = arith.constant 0 : i32
    %c0_i32_1 = arith.constant 0 : i32
    return %c0_i32, %c0_i32_0 : i32, i32
  }
  func.func @transform_8(%arg0: i32) -> (i32, i32) {
    %c0_i32 = arith.constant 0 : i32
    %c0_i32_0 = arith.constant 0 : i32
    %c0_i32_1 = arith.constant 0 : i32
    return %c0_i32, %c0_i32_0 : i32, i32
  }
  func.func @transform_9(%arg0: i32) -> (i32, i32) {
    %c0_i32 = arith.constant 0 : i32
    %c0_i32_0 = arith.constant 0 : i32
    %c0_i32_1 = arith.constant 0 : i32
    return %c0_i32, %c0_i32_0 : i32, i32
  }
  func.func @transform_10(%arg0: i32) -> (i32, i32) {
    %c0_i32 = arith.constant 0 : i32
    %c0_i32_0 = arith.constant 0 : i32
    %c0_i32_1 = arith.constant 0 : i32
    return %c0_i32, %c0_i32_0 : i32, i32
  }
  func.func @transform_11(%arg0: i32) -> (i32, i32) {
    %c0_i32 = arith.constant 0 : i32
    %c0_i32_0 = arith.constant 0 : i32
    %c0_i32_1 = arith.constant 0 : i32
    return %c0_i32, %c0_i32_0 : i32, i32
  }
}

</mosaic_0001>

<bundles_post_ra>
// kernel: rnn_decoder_forward.1
= control target key start
LH: loop header
LB: loop body
LE: loop exit
PB: predicated region body
PF: predicated region fallthrough
CT: control target
= control target key end

     0   :  { %16 = vsyncpa [#allocation6], 0  ;;  %s6937_s0 = inlined_call_operand.vmem [shape: f32[32,16], index: 0, kind: input, shape index: {}]   ;;  %s6938_s1 = inlined_call_operand.hbm [shape: f32[4,1000], index: 1, kind: input, shape index: {}]   ;;  %s6939_s2 = inlined_call_operand.hbm [shape: f32[16,96], index: 2, kind: input, shape index: {}]   ;;  %s6940_s3 = inlined_call_operand.hbm [shape: f32[32,96], index: 3, kind: input, shape index: {}]   ;;  %s6941_s4 = inlined_call_operand.hbm [shape: f32[1,96], index: 4, kind: input, shape index: {}]   ;;  %s6942_s5 = inlined_call_operand.hbm [shape: f32[1,96], index: 5, kind: input, shape index: {}]   ;;  %s6943_s6 = inlined_call_operand.vmem [shape: bf16[8,32,1000], index: 6, kind: input, shape index: {}]   ;;  %s6944_s7 = inlined_call_operand.vmem [shape: f32[1,1000], index: 7, kind: input, shape index: {}]   ;;  %s6945_s8 = inlined_call_operand.vmem [shape: bf16[1000,10], index: 8, kind: input, shape index: {}]   ;;  %s6946_s9 = inlined_call_operand.vmem [shape: bf16[1000,10], index: 9, kind: input, shape index: {}]   ;;  %s6947_s10 = inlined_call_operand.hbm [shape: f32[1,10], index: 10, kind: input, shape index: {}]   ;;  %s6948_s11 = inlined_call_operand.hbm [shape: f32[4,10], index: 11, kind: output, shape index: {}]  }
   0x1   :  { %17 = vsyncpa [#allocation9], 0 }
   0x2   :  { %18 = vsyncpa [#allocation12], 0 }
   0x3   :  { %19 = vsyncpa [#allocation15], 0  ;;  %s38_s19 = sshll.u32 %s6939_s2, 4  ;;  %s39_s19 = int_to_ptr.hbm [resolvable:$true] %s38_s19 }
   0x4   :  { %20 = vsyncpa [#allocation7], 0  ;;  %s5569_s20 = smov [#allocation8]   ;;  %s65_s24 = sshll.u32 %s6941_s4, 4  ;;  %s66_s24 = int_to_ptr.hbm [resolvable:$true] %s65_s24 }
   0x5   :  { %s40_s21 = sshll.u32 %s5569_s20, 4  ;;  %s5570_s25 = smov 128   ;;  %s41_s21 = int_to_ptr.vmem [resolvable:$true] %s40_s21 }
   0x6   :  { %s5571_s26 = smov 8   ;;  %s5572_s27 = smov [#allocation11]  }
   0x7   :  { %46 = dma.hbm_to_vmem [thread:$0]  %s39_s19, 256, %s41_s21, [#allocation9], %s5570_s25, %s5570_s25, %s5571_s26  }
   0x8   :  { %s67_s28 = sshll.u32 %s5572_s27, 4  ;;  %s28_s12 = sshll.u32 %s6938_s1, 4  ;;  %s68_s28 = int_to_ptr.vmem [resolvable:$true] %s67_s28  ;;  %s29_s12 = int_to_ptr.hbm [resolvable:$true] %s28_s12 }
   0x9   :  { %70 = dma.hbm_to_vmem [thread:$0]  %s66_s24, 16, %s68_s28, [#allocation12]  }
   0xa   :  { %s51_s14 = sshll.u32 %s6940_s3, 4  ;;  %s5573_s15 = smov [#allocation5]   ;;  %s52_s14 = int_to_ptr.hbm [resolvable:$true] %s51_s14 }
   0xb   :  { %s30_s16 = sshll.u32 %s5573_s15, 4  ;;  %s5574_s4 = smov [#allocation10]   ;;  %s31_s16 = int_to_ptr.vmem [resolvable:$true] %s30_s16 }
   0xc   :  { %33 = dma.hbm_to_vmem [thread:$0]  %s29_s12, 512, %s31_s16, [#allocation6]  }
   0xd   :  { %s53_s17 = sshll.u32 %s5574_s4, 4  ;;  %s76_s20 = sshll.u32 %s6942_s5, 4  ;;  %s54_s17 = int_to_ptr.vmem [resolvable:$true] %s53_s17  ;;  %s77_s20 = int_to_ptr.hbm [resolvable:$true] %s76_s20 }
   0xe   :  { %59 = dma.hbm_to_vmem [thread:$0]  %s52_s14, 512, %s54_s17, [#allocation9], %s5570_s25, %s5570_s25, %s5571_s26  }
   0xf   :  { %s93_s22 = sshll.u32 %s6947_s10, 4  ;;  %s5575_s23 = smov [#allocation13]   ;;  %s94_s22 = int_to_ptr.hbm [resolvable:$true] %s93_s22 }
  0x10   :  { %s78_s3 = sshll.u32 %s5575_s23, 4  ;;  %s5576_s24 = smov [#allocation14]   ;;  %s79_s3 = int_to_ptr.vmem [resolvable:$true] %s78_s3 }
  0x11   :  { %81 = dma.hbm_to_vmem [thread:$0]  %s77_s20, 16, %s79_s3, [#allocation12]  }
  0x12   :  { %s95_s27 = sshll.u32 %s5576_s24, 4  ;;  %s96_s27 = int_to_ptr.vmem [resolvable:$true] %s95_s27 }
  0x13   :  { %98 = dma.hbm_to_vmem [thread:$0]  %s94_s22, 16, %s96_s27, [#allocation15]  }
  0x14   :  { %5557 = dma.done.wait [#allocation6], 512  }
  0x15   :  { %5558 = vsyncadd [#allocation6], 4294966784 }
  0x16   :  { %5559 = dma.done.wait [#allocation9], 768  }
  0x17   :  { %5560 = vsyncadd [#allocation9], 4294966528 }
  0x18   :  { %5561 = dma.done.wait [#allocation12], 32  }
  0x19   :  { %5562 = vsyncadd [#allocation12], 4294967264 }
  0x1a   :  { %5563 = dma.done.wait [#allocation15], 16  }
  0x1b   :  { %5564 = vsyncadd [#allocation15], 4294967280  ;;  %v134_v0 = vld [vmem:[%s6943_s6] sm:$0xff]  ;;  %v136_v1 = vld [vmem:[%s6943_s6 + $0x8] sm:$0xff] }
  0x1c   :  { %v138_v2 = vld [vmem:[%s6943_s6 + $0x10] sm:$0xff]  ;;  %135 = vst [vmem:[#allocation2] sm:$0xff] %v134_v0  ;;  %v140_v3 = vld [vmem:[%s6943_s6 + $0x18] sm:$0xff]  ;;  %v142_v4 = vld [vmem:[%s6943_s6 + $0x20] sm:$0xff] }
  0x1d   :  { %137 = vst [vmem:[#allocation2 + $0x8] sm:$0xff] %v136_v1  ;;  %v144_v5 = vld [vmem:[%s6943_s6 + $0x28] sm:$0xff]  ;;  %v146_v6 = vld [vmem:[%s6943_s6 + $0x30] sm:$0xff]  ;;  %v148_v7 = vld [vmem:[%s6943_s6 + $0x38] sm:$0xff] }
  0x1e   :  { %139 = vst [vmem:[#allocation2 + $0x10] sm:$0xff] %v138_v2  ;;  %v150_v8 = vld [vmem:[%s6943_s6 + $0x40] sm:$0xff]  ;;  %v152_v9 = vld [vmem:[%s6943_s6 + $0x48] sm:$0xff]  ;;  %v154_v10 = vld [vmem:[%s6943_s6 + $0x50] sm:$0xff] }
  0x1f   :  { %141 = vst [vmem:[#allocation2 + $0x18] sm:$0xff] %v140_v3  ;;  %v156_v11 = vld [vmem:[%s6943_s6 + $0x58] sm:$0xff]  ;;  %v158_v12 = vld [vmem:[%s6943_s6 + $0x60] sm:$0xff]  ;;  %v160_v13 = vld [vmem:[%s6943_s6 + $0x68] sm:$0xff] }
  0x20   :  { %143 = vst [vmem:[#allocation2 + $0x20] sm:$0xff] %v142_v4  ;;  %v162_v14 = vld [vmem:[%s6943_s6 + $0x70] sm:$0xff]  ;;  %v164_v15 = vld [vmem:[%s6943_s6 + $0x78] sm:$0xff]  ;;  %v166_v16 = vld [vmem:[%s6943_s6 + $0x80] sm:$0xff] }
  0x21   :  { %145 = vst [vmem:[#allocation2 + $0x28] sm:$0xff] %v144_v5  ;;  %v168_v17 = vld [vmem:[%s6943_s6 + $0x88] sm:$0xff]  ;;  %v170_v18 = vld [vmem:[%s6943_s6 + $0x90] sm:$0xff]  ;;  %v172_v19 = vld [vmem:[%s6943_s6 + $0x98] sm:$0xff] }
  0x22   :  { %147 = vst [vmem:[#allocation2 + $0x30] sm:$0xff] %v146_v6  ;;  %v174_v20 = vld [vmem:[%s6943_s6 + $0xa0] sm:$0xff]  ;;  %v176_v21 = vld [vmem:[%s6943_s6 + $0xa8] sm:$0xff]  ;;  %v178_v22 = vld [vmem:[%s6943_s6 + $0xb0] sm:$0xff] }
  0x23   :  { %149 = vst [vmem:[#allocation2 + $0x38] sm:$0xff] %v148_v7  ;;  %v180_v23 = vld [vmem:[%s6943_s6 + $0xb8] sm:$0xff]  ;;  %v182_v24 = vld [vmem:[%s6943_s6 + $0xc0] sm:$0xff]  ;;  %v184_v25 = vld [vmem:[%s6943_s6 + $0xc8] sm:$0xff] }
  0x24   :  { %151 = vst [vmem:[#allocation2 + $0x40] sm:$0xff] %v150_v8  ;;  %v186_v26 = vld [vmem:[%s6943_s6 + $0xd0] sm:$0xff]  ;;  %v188_v27 = vld [vmem:[%s6943_s6 + $0xd8] sm:$0xff]  ;;  %v190_v28 = vld [vmem:[%s6943_s6 + $0xe0] sm:$0xff] }
  0x25   :  { %153 = vst [vmem:[#allocation2 + $0x48] sm:$0xff] %v152_v9  ;;  %v192_v29 = vld [vmem:[%s6943_s6 + $0xe8] sm:$0xff]  ;;  %v194_v30 = vld [vmem:[%s6943_s6 + $0xf0] sm:$0xff]  ;;  %v196_v31 = vld [vmem:[%s6943_s6 + $0xf8] sm:$0xff] }
  0x26   :  { %155 = vst [vmem:[#allocation2 + $0x50] sm:$0xff] %v154_v10  ;;  %v198_v32 = vld [vmem:[%s6943_s6 + $0x100] sm:$0xff]  ;;  %v200_v33 = vld [vmem:[%s6943_s6 + $0x108] sm:$0xff]  ;;  %v202_v34 = vld [vmem:[%s6943_s6 + $0x110] sm:$0xff] }
  0x27   :  { %157 = vst [vmem:[#allocation2 + $0x58] sm:$0xff] %v156_v11  ;;  %v204_v35 = vld [vmem:[%s6943_s6 + $0x118] sm:$0xff]  ;;  %v206_v36 = vld [vmem:[%s6943_s6 + $0x120] sm:$0xff]  ;;  %v208_v37 = vld [vmem:[%s6943_s6 + $0x128] sm:$0xff] }
  0x28   :  { %159 = vst [vmem:[#allocation2 + $0x60] sm:$0xff] %v158_v12  ;;  %v210_v38 = vld [vmem:[%s6943_s6 + $0x130] sm:$0xff]  ;;  %v212_v39 = vld [vmem:[%s6943_s6 + $0x138] sm:$0xff]  ;;  %v214_v40 = vld [vmem:[%s6943_s6 + $0x140] sm:$0xff] }
  0x29   :  { %161 = vst [vmem:[#allocation2 + $0x68] sm:$0xff] %v160_v13  ;;  %v216_v41 = vld [vmem:[%s6943_s6 + $0x148] sm:$0xff]  ;;  %v218_v42 = vld [vmem:[%s6943_s6 + $0x150] sm:$0xff]  ;;  %v220_v43 = vld [vmem:[%s6943_s6 + $0x158] sm:$0xff] }
  0x2a   :  { %163 = vst [vmem:[#allocation2 + $0x70] sm:$0xff] %v162_v14  ;;  %v222_v44 = vld [vmem:[%s6943_s6 + $0x160] sm:$0xff]  ;;  %v224_v45 = vld [vmem:[%s6943_s6 + $0x168] sm:$0xff]  ;;  %v226_v46 = vld [vmem:[%s6943_s6 + $0x170] sm:$0xff] }
  0x2b   :  { %165 = vst [vmem:[#allocation2 + $0x78] sm:$0xff] %v164_v15  ;;  %v228_v47 = vld [vmem:[%s6943_s6 + $0x178] sm:$0xff]  ;;  %v230_v48 = vld [vmem:[%s6943_s6 + $0x180] sm:$0xff]  ;;  %v232_v49 = vld [vmem:[%s6943_s6 + $0x188] sm:$0xff] }
  0x2c   :  { %167 = vst [vmem:[#allocation2 + $0x80] sm:$0xff] %v166_v16  ;;  %v234_v50 = vld [vmem:[%s6943_s6 + $0x190] sm:$0xff]  ;;  %v236_v51 = vld [vmem:[%s6943_s6 + $0x198] sm:$0xff]  ;;  %v238_v52 = vld [vmem:[%s6943_s6 + $0x1a0] sm:$0xff] }
  0x2d   :  { %169 = vst [vmem:[#allocation2 + $0x88] sm:$0xff] %v168_v17  ;;  %v240_v53 = vld [vmem:[%s6943_s6 + $0x1a8] sm:$0xff]  ;;  %v242_v54 = vld [vmem:[%s6943_s6 + $0x1b0] sm:$0xff]  ;;  %v244_v55 = vld [vmem:[%s6943_s6 + $0x1b8] sm:$0xff] }
  0x2e   :  { %171 = vst [vmem:[#allocation2 + $0x90] sm:$0xff] %v170_v18  ;;  %v246_v56 = vld [vmem:[%s6943_s6 + $0x1c0] sm:$0xff]  ;;  %v248_v57 = vld [vmem:[%s6943_s6 + $0x1c8] sm:$0xff]  ;;  %v250_v58 = vld [vmem:[%s6943_s6 + $0x1d0] sm:$0xff] }
  0x2f   :  { %173 = vst [vmem:[#allocation2 + $0x98] sm:$0xff] %v172_v19  ;;  %v252_v59 = vld [vmem:[%s6943_s6 + $0x1d8] sm:$0xff]  ;;  %v254_v60 = vld [vmem:[%s6943_s6 + $0x1e0] sm:$0xff]  ;;  %v256_v61 = vld [vmem:[%s6943_s6 + $0x1e8] sm:$0xff] }
  0x30   :  { %175 = vst [vmem:[#allocation2 + $0xa0] sm:$0xff] %v174_v20  ;;  %v258_v62 = vld [vmem:[%s6943_s6 + $0x1f0] sm:$0xff]  ;;  %v260_v63 = vld [vmem:[%s6943_s6 + $0x1f8] sm:$0xff]  ;;  %v262_v0 = vld [vmem:[%s6943_s6 + $0x200] sm:$0xff] }
  0x31   :  { %177 = vst [vmem:[#allocation2 + $0xa8] sm:$0xff] %v176_v21  ;;  %v264_v1 = vld [vmem:[%s6943_s6 + $0x208] sm:$0xff]  ;;  %v266_v2 = vld [vmem:[%s6943_s6 + $0x210] sm:$0xff]  ;;  %v268_v3 = vld [vmem:[%s6943_s6 + $0x218] sm:$0xff] }
  0x32   :  { %179 = vst [vmem:[#allocation2 + $0xb0] sm:$0xff] %v178_v22  ;;  %v270_v4 = vld [vmem:[%s6943_s6 + $0x220] sm:$0xff]  ;;  %v272_v5 = vld [vmem:[%s6943_s6 + $0x228] sm:$0xff]  ;;  %v274_v6 = vld [vmem:[%s6943_s6 + $0x230] sm:$0xff] }
  0x33   :  { %181 = vst [vmem:[#allocation2 + $0xb8] sm:$0xff] %v180_v23  ;;  %v276_v7 = vld [vmem:[%s6943_s6 + $0x238] sm:$0xff]  ;;  %v278_v8 = vld [vmem:[%s6943_s6 + $0x240] sm:$0xff]  ;;  %v280_v9 = vld [vmem:[%s6943_s6 + $0x248] sm:$0xff] }
  0x34   :  { %183 = vst [vmem:[#allocation2 + $0xc0] sm:$0xff] %v182_v24  ;;  %v282_v10 = vld [vmem:[%s6943_s6 + $0x250] sm:$0xff]  ;;  %v284_v11 = vld [vmem:[%s6943_s6 + $0x258] sm:$0xff]  ;;  %v286_v12 = vld [vmem:[%s6943_s6 + $0x260] sm:$0xff] }
  0x35   :  { %185 = vst [vmem:[#allocation2 + $0xc8] sm:$0xff] %v184_v25  ;;  %v288_v13 = vld [vmem:[%s6943_s6 + $0x268] sm:$0xff]  ;;  %v290_v14 = vld [vmem:[%s6943_s6 + $0x270] sm:$0xff]  ;;  %v292_v15 = vld [vmem:[%s6943_s6 + $0x278] sm:$0xff] }
  0x36   :  { %187 = vst [vmem:[#allocation2 + $0xd0] sm:$0xff] %v186_v26  ;;  %v294_v16 = vld [vmem:[%s6943_s6 + $0x280] sm:$0xff]  ;;  %v296_v17 = vld [vmem:[%s6943_s6 + $0x288] sm:$0xff]  ;;  %v298_v18 = vld [vmem:[%s6943_s6 + $0x290] sm:$0xff] }
  0x37   :  { %189 = vst [vmem:[#allocation2 + $0xd8] sm:$0xff] %v188_v27  ;;  %v300_v19 = vld [vmem:[%s6943_s6 + $0x298] sm:$0xff]  ;;  %v302_v20 = vld [vmem:[%s6943_s6 + $0x2a0] sm:$0xff]  ;;  %v304_v21 = vld [vmem:[%s6943_s6 + $0x2a8] sm:$0xff] }
  0x38   :  { %191 = vst [vmem:[#allocation2 + $0xe0] sm:$0xff] %v190_v28  ;;  %v306_v22 = vld [vmem:[%s6943_s6 + $0x2b0] sm:$0xff]  ;;  %v308_v23 = vld [vmem:[%s6943_s6 + $0x2b8] sm:$0xff]  ;;  %v310_v24 = vld [vmem:[%s6943_s6 + $0x2c0] sm:$0xff] }
  0x39   :  { %193 = vst [vmem:[#allocation2 + $0xe8] sm:$0xff] %v192_v29  ;;  %v312_v25 = vld [vmem:[%s6943_s6 + $0x2c8] sm:$0xff]  ;;  %v314_v26 = vld [vmem:[%s6943_s6 + $0x2d0] sm:$0xff]  ;;  %v316_v27 = vld [vmem:[%s6943_s6 + $0x2d8] sm:$0xff] }
  0x3a   :  { %195 = vst [vmem:[#allocation2 + $0xf0] sm:$0xff] %v194_v30  ;;  %v318_v28 = vld [vmem:[%s6943_s6 + $0x2e0] sm:$0xff]  ;;  %v320_v29 = vld [vmem:[%s6943_s6 + $0x2e8] sm:$0xff]  ;;  %v322_v30 = vld [vmem:[%s6943_s6 + $0x2f0] sm:$0xff] }
  0x3b   :  { %197 = vst [vmem:[#allocation2 + $0xf8] sm:$0xff] %v196_v31  ;;  %v324_v31 = vld [vmem:[%s6943_s6 + $0x2f8] sm:$0xff] }
  0x3c   :  { %199 = vst [vmem:[#allocation2 + $0x100] sm:$0xff] %v198_v32  ;;  %v326_v32 = vld [vmem:[%s6943_s6 + $0x300] sm:$0xff] }
  0x3d   :  { %201 = vst [vmem:[#allocation2 + $0x108] sm:$0xff] %v200_v33  ;;  %v328_v33 = vld [vmem:[%s6943_s6 + $0x308] sm:$0xff] }
  0x3e   :  { %203 = vst [vmem:[#allocation2 + $0x110] sm:$0xff] %v202_v34  ;;  %v330_v34 = vld [vmem:[%s6943_s6 + $0x310] sm:$0xff] }
  0x3f   :  { %205 = vst [vmem:[#allocation2 + $0x118] sm:$0xff] %v204_v35  ;;  %v332_v35 = vld [vmem:[%s6943_s6 + $0x318] sm:$0xff] }
  0x40   :  { %207 = vst [vmem:[#allocation2 + $0x120] sm:$0xff] %v206_v36  ;;  %v334_v36 = vld [vmem:[%s6943_s6 + $0x320] sm:$0xff] }
  0x41   :  { %209 = vst [vmem:[#allocation2 + $0x128] sm:$0xff] %v208_v37  ;;  %v336_v37 = vld [vmem:[%s6943_s6 + $0x328] sm:$0xff] }
  0x42   :  { %211 = vst [vmem:[#allocation2 + $0x130] sm:$0xff] %v210_v38  ;;  %v338_v38 = vld [vmem:[%s6943_s6 + $0x330] sm:$0xff] }
  0x43   :  { %213 = vst [vmem:[#allocation2 + $0x138] sm:$0xff] %v212_v39  ;;  %v340_v39 = vld [vmem:[%s6943_s6 + $0x338] sm:$0xff] }
  0x44   :  { %215 = vst [vmem:[#allocation2 + $0x140] sm:$0xff] %v214_v40  ;;  %v342_v40 = vld [vmem:[%s6943_s6 + $0x340] sm:$0xff] }
  0x45   :  { %217 = vst [vmem:[#allocation2 + $0x148] sm:$0xff] %v216_v41  ;;  %v344_v41 = vld [vmem:[%s6943_s6 + $0x348] sm:$0xff] }
  0x46   :  { %219 = vst [vmem:[#allocation2 + $0x150] sm:$0xff] %v218_v42  ;;  %v346_v42 = vld [vmem:[%s6943_s6 + $0x350] sm:$0xff] }
  0x47   :  { %221 = vst [vmem:[#allocation2 + $0x158] sm:$0xff] %v220_v43  ;;  %v348_v43 = vld [vmem:[%s6943_s6 + $0x358] sm:$0xff] }
  0x48   :  { %223 = vst [vmem:[#allocation2 + $0x160] sm:$0xff] %v222_v44  ;;  %v350_v44 = vld [vmem:[%s6943_s6 + $0x360] sm:$0xff] }
  0x49   :  { %225 = vst [vmem:[#allocation2 + $0x168] sm:$0xff] %v224_v45  ;;  %v352_v45 = vld [vmem:[%s6943_s6 + $0x368] sm:$0xff] }
  0x4a   :  { %227 = vst [vmem:[#allocation2 + $0x170] sm:$0xff] %v226_v46  ;;  %v354_v46 = vld [vmem:[%s6943_s6 + $0x370] sm:$0xff] }
  0x4b   :  { %229 = vst [vmem:[#allocation2 + $0x178] sm:$0xff] %v228_v47  ;;  %v356_v47 = vld [vmem:[%s6943_s6 + $0x378] sm:$0xff] }
  0x4c   :  { %231 = vst [vmem:[#allocation2 + $0x180] sm:$0xff] %v230_v48  ;;  %v358_v48 = vld [vmem:[%s6943_s6 + $0x380] sm:$0xff] }
  0x4d   :  { %233 = vst [vmem:[#allocation2 + $0x188] sm:$0xff] %v232_v49  ;;  %v360_v49 = vld [vmem:[%s6943_s6 + $0x388] sm:$0xff] }
  0x4e   :  { %235 = vst [vmem:[#allocation2 + $0x190] sm:$0xff] %v234_v50  ;;  %v362_v50 = vld [vmem:[%s6943_s6 + $0x390] sm:$0xff] }
  0x4f   :  { %237 = vst [vmem:[#allocation2 + $0x198] sm:$0xff] %v236_v51  ;;  %v364_v51 = vld [vmem:[%s6943_s6 + $0x398] sm:$0xff] }
  0x50   :  { %239 = vst [vmem:[#allocation2 + $0x1a0] sm:$0xff] %v238_v52  ;;  %v366_v52 = vld [vmem:[%s6943_s6 + $0x3a0] sm:$0xff] }
  0x51   :  { %241 = vst [vmem:[#allocation2 + $0x1a8] sm:$0xff] %v240_v53  ;;  %v368_v53 = vld [vmem:[%s6943_s6 + $0x3a8] sm:$0xff] }
  0x52   :  { %243 = vst [vmem:[#allocation2 + $0x1b0] sm:$0xff] %v242_v54  ;;  %v370_v54 = vld [vmem:[%s6943_s6 + $0x3b0] sm:$0xff] }
  0x53   :  { %245 = vst [vmem:[#allocation2 + $0x1b8] sm:$0xff] %v244_v55  ;;  %v372_v55 = vld [vmem:[%s6943_s6 + $0x3b8] sm:$0xff] }
  0x54   :  { %247 = vst [vmem:[#allocation2 + $0x1c0] sm:$0xff] %v246_v56  ;;  %v374_v56 = vld [vmem:[%s6943_s6 + $0x3c0] sm:$0xff] }
  0x55   :  { %249 = vst [vmem:[#allocation2 + $0x1c8] sm:$0xff] %v248_v57  ;;  %v376_v57 = vld [vmem:[%s6943_s6 + $0x3c8] sm:$0xff] }
  0x56   :  { %251 = vst [vmem:[#allocation2 + $0x1d0] sm:$0xff] %v250_v58  ;;  %v378_v58 = vld [vmem:[%s6943_s6 + $0x3d0] sm:$0xff] }
  0x57   :  { %253 = vst [vmem:[#allocation2 + $0x1d8] sm:$0xff] %v252_v59  ;;  %v380_v59 = vld [vmem:[%s6943_s6 + $0x3d8] sm:$0xff] }
  0x58   :  { %255 = vst [vmem:[#allocation2 + $0x1e0] sm:$0xff] %v254_v60  ;;  %v382_v60 = vld [vmem:[%s6943_s6 + $0x3e0] sm:$0xff] }
  0x59   :  { %257 = vst [vmem:[#allocation2 + $0x1e8] sm:$0xff] %v256_v61  ;;  %v384_v61 = vld [vmem:[%s6943_s6 + $0x3e8] sm:$0xff] }
  0x5a   :  { %259 = vst [vmem:[#allocation2 + $0x1f0] sm:$0xff] %v258_v62  ;;  %v386_v62 = vld [vmem:[%s6943_s6 + $0x3f0] sm:$0xff] }
  0x5b   :  { %261 = vst [vmem:[#allocation2 + $0x1f8] sm:$0xff] %v260_v63  ;;  %v388_v63 = vld [vmem:[%s6943_s6 + $0x3f8] sm:$0xff] }
  0x5c   :  { %263 = vst [vmem:[#allocation2 + $0x200] sm:$0xff] %v262_v0  ;;  %v451_v0 = vld [vmem:[#allocation10 + $0x18] sm:$0xff] }
  0x5d   :  { %265 = vst [vmem:[#allocation2 + $0x208] sm:$0xff] %v264_v1  ;;  %v450_v1 = vld [vmem:[#allocation10 + $0x10] sm:$0xff] }
  0x5e   :  { %267 = vst [vmem:[#allocation2 + $0x210] sm:$0xff] %v266_v2 }
  0x5f   :  { %269 = vst [vmem:[#allocation2 + $0x218] sm:$0xff] %v268_v3 }
  0x60   :  { %271 = vst [vmem:[#allocation2 + $0x220] sm:$0xff] %v270_v4 }
  0x61   :  { %273 = vst [vmem:[#allocation2 + $0x228] sm:$0xff] %v272_v5 }
  0x62   :  { %275 = vst [vmem:[#allocation2 + $0x230] sm:$0xff] %v274_v6 }
  0x63   :  { %277 = vst [vmem:[#allocation2 + $0x238] sm:$0xff] %v276_v7 }
  0x64   :  { %279 = vst [vmem:[#allocation2 + $0x240] sm:$0xff] %v278_v8 }
  0x65   :  { %281 = vst [vmem:[#allocation2 + $0x248] sm:$0xff] %v280_v9 }
  0x66   :  { %283 = vst [vmem:[#allocation2 + $0x250] sm:$0xff] %v282_v10 }
  0x67   :  { %285 = vst [vmem:[#allocation2 + $0x258] sm:$0xff] %v284_v11 }
  0x68   :  { %287 = vst [vmem:[#allocation2 + $0x260] sm:$0xff] %v286_v12 }
  0x69   :  { %289 = vst [vmem:[#allocation2 + $0x268] sm:$0xff] %v288_v13 }
  0x6a   :  { %291 = vst [vmem:[#allocation2 + $0x270] sm:$0xff] %v290_v14 }
  0x6b   :  { %293 = vst [vmem:[#allocation2 + $0x278] sm:$0xff] %v292_v15 }
  0x6c   :  { %295 = vst [vmem:[#allocation2 + $0x280] sm:$0xff] %v294_v16 }
  0x6d   :  { %297 = vst [vmem:[#allocation2 + $0x288] sm:$0xff] %v296_v17 }
  0x6e   :  { %299 = vst [vmem:[#allocation2 + $0x290] sm:$0xff] %v298_v18 }
  0x6f   :  { %301 = vst [vmem:[#allocation2 + $0x298] sm:$0xff] %v300_v19 }
  0x70   :  { %303 = vst [vmem:[#allocation2 + $0x2a0] sm:$0xff] %v302_v20 }
  0x71   :  { %305 = vst [vmem:[#allocation2 + $0x2a8] sm:$0xff] %v304_v21 }
  0x72   :  { %307 = vst [vmem:[#allocation2 + $0x2b0] sm:$0xff] %v306_v22 }
  0x73   :  { %309 = vst [vmem:[#allocation2 + $0x2b8] sm:$0xff] %v308_v23 }
  0x74   :  { %311 = vst [vmem:[#allocation2 + $0x2c0] sm:$0xff] %v310_v24 }
  0x75   :  { %313 = vst [vmem:[#allocation2 + $0x2c8] sm:$0xff] %v312_v25 }
  0x76   :  { %315 = vst [vmem:[#allocation2 + $0x2d0] sm:$0xff] %v314_v26 }
  0x77   :  { %317 = vst [vmem:[#allocation2 + $0x2d8] sm:$0xff] %v316_v27 }
  0x78   :  { %319 = vst [vmem:[#allocation2 + $0x2e0] sm:$0xff] %v318_v28 }
  0x79   :  { %321 = vst [vmem:[#allocation2 + $0x2e8] sm:$0xff] %v320_v29 }
  0x7a   :  { %323 = vst [vmem:[#allocation2 + $0x2f0] sm:$0xff] %v322_v30 }
  0x7b   :  { %325 = vst [vmem:[#allocation2 + $0x2f8] sm:$0xff] %v324_v31 }
  0x7c   :  { %327 = vst [vmem:[#allocation2 + $0x300] sm:$0xff] %v326_v32 }
  0x7d   :  { %329 = vst [vmem:[#allocation2 + $0x308] sm:$0xff] %v328_v33 }
  0x7e   :  { %331 = vst [vmem:[#allocation2 + $0x310] sm:$0xff] %v330_v34 }
  0x7f   :  { %333 = vst [vmem:[#allocation2 + $0x318] sm:$0xff] %v332_v35 }
  0x80   :  { %335 = vst [vmem:[#allocation2 + $0x320] sm:$0xff] %v334_v36 }
  0x81   :  { %337 = vst [vmem:[#allocation2 + $0x328] sm:$0xff] %v336_v37 }
  0x82   :  { %339 = vst [vmem:[#allocation2 + $0x330] sm:$0xff] %v338_v38 }
  0x83   :  { %341 = vst [vmem:[#allocation2 + $0x338] sm:$0xff] %v340_v39 }
  0x84   :  { %343 = vst [vmem:[#allocation2 + $0x340] sm:$0xff] %v342_v40 }
  0x85   :  { %345 = vst [vmem:[#allocation2 + $0x348] sm:$0xff] %v344_v41 }
  0x86   :  { %347 = vst [vmem:[#allocation2 + $0x350] sm:$0xff] %v346_v42 }
  0x87   :  { %349 = vst [vmem:[#allocation2 + $0x358] sm:$0xff] %v348_v43 }
  0x88   :  { %351 = vst [vmem:[#allocation2 + $0x360] sm:$0xff] %v350_v44 }
  0x89   :  { %353 = vst [vmem:[#allocation2 + $0x368] sm:$0xff] %v352_v45 }
  0x8a   :  { %355 = vst [vmem:[#allocation2 + $0x370] sm:$0xff] %v354_v46 }
  0x8b   :  { %357 = vst [vmem:[#allocation2 + $0x378] sm:$0xff] %v356_v47 }
  0x8c   :  { %359 = vst [vmem:[#allocation2 + $0x380] sm:$0xff] %v358_v48 }
  0x8d   :  { %361 = vst [vmem:[#allocation2 + $0x388] sm:$0xff] %v360_v49 }
  0x8e   :  { %363 = vst [vmem:[#allocation2 + $0x390] sm:$0xff] %v362_v50 }
  0x8f   :  { %365 = vst [vmem:[#allocation2 + $0x398] sm:$0xff] %v364_v51 }
  0x90   :  { %367 = vst [vmem:[#allocation2 + $0x3a0] sm:$0xff] %v366_v52 }
  0x91   :  { %369 = vst [vmem:[#allocation2 + $0x3a8] sm:$0xff] %v368_v53 }
  0x92   :  { %371 = vst [vmem:[#allocation2 + $0x3b0] sm:$0xff] %v370_v54 }
  0x93   :  { %373 = vst [vmem:[#allocation2 + $0x3b8] sm:$0xff] %v372_v55 }
  0x94   :  { %375 = vst [vmem:[#allocation2 + $0x3c0] sm:$0xff] %v374_v56 }
  0x95   :  { %377 = vst [vmem:[#allocation2 + $0x3c8] sm:$0xff] %v376_v57 }
  0x96   :  { %379 = vst [vmem:[#allocation2 + $0x3d0] sm:$0xff] %v378_v58 }
  0x97   :  { %381 = vst [vmem:[#allocation2 + $0x3d8] sm:$0xff] %v380_v59 }
  0x98   :  { %383 = vst [vmem:[#allocation2 + $0x3e0] sm:$0xff] %v382_v60 }
  0x99   :  { %385 = vst [vmem:[#allocation2 + $0x3e8] sm:$0xff] %v384_v61 }
  0x9a   :  { %387 = vst [vmem:[#allocation2 + $0x3f0] sm:$0xff] %v386_v62 }
  0x9b   :  { %389 = vst [vmem:[#allocation2 + $0x3f8] sm:$0xff] %v388_v63 }
  0x9c   :  { %395 = vsyncadd [#allocation3], 16384  ;;  %472 = vmatpush.msra.mxu1 %v451_v0  ;;  %v401_v2 = vld [vmem:[#allocation8 + $0x8] sm:$0xff]  ;;  %v400_v3 = vld [vmem:[#allocation8] sm:$0xff]  ;;  %587 = vmatpush.msra.mxu2 %v451_v0  ;;  %vm406_vm0 = vcmask 130048   ;;  %v5577_v7 = vmov 0.0  }
  0x9d   :  { %433 = vmatpush.msra.mxu0 %v401_v2  ;;  %v449_v4 = vld [vmem:[#allocation10 + $0x8] sm:$0xff]  ;;  %701 = vmatpush.msra.mxu3 %v451_v0  ;;  %v448_v6 = vld [vmem:[#allocation10] sm:$0xff]  ;;  %s5578_s6 = smov 64   ;;  %s5579_s2 = smov 96   ;;  %v397_v38 = vld [vmem:[%s6937_s0 + $0x8] sm:$0xff]  ;;  %vm456_vm5 = vcmask 261120  }
  0x9e   :  { %v396_v5 = vld [vmem:[%s6937_s0] sm:$0xff]  ;;  %473 = vmatpush.msra.mxu1 %v450_v1  ;;  %588 = vmatpush.msra.mxu2 %v450_v1  ;;  %v6048_v8 = vld [vmem:[#allocation13] ss:$0 sm:$0xff]  ;;  %v6052_v11 = vld [vmem:[#allocation11] ss:$0 sm:$0xff]  ;;  %s5580_s13 = smov 32  }
  0x9f   :  { %434 = vmatpush.msra.mxu0 %v400_v3  ;;  %702 = vmatpush.msra.mxu3 %v450_v1 }
  0xa0   :  { %474 = vmatpush.msra.mxu1 %v449_v4  ;;  %4011 = vmatmul.msk.f32.vlgmr.msra.gmra.mxu0 %vm406_vm0, %v396_v5 }
  0xa1   :  { %589 = vmatpush.msra.mxu2 %v449_v4  ;;  %703 = vmatpush.msra.mxu3 %v449_v4 }
  0xa2   :  { %475 = vmatpush.msra.mxu1 %v448_v6 }
  0xa3   :  { %476 = vmatmul.f32.vlgmr.msra.gmra.mxu1 %v5577_v7  ;;  %590 = vmatpush.msra.mxu2 %v448_v6 }
  0xa4   :  { %704 = vmatpush.msra.mxu3 %v448_v6  ;;  %815 = vmatpush.msrb.mxu1 %v451_v0 }
  0xa6   :  { %816 = vmatpush.msrb.mxu1 %v450_v1 }
  0xa8   :  { %817 = vmatpush.msrb.mxu1 %v449_v4  ;;  %4012 = vmatmul.msk.f32.gmra.mxu0 %vm406_vm0, %v397_v38  ;;  %v398_v4 = vld [vmem:[%s6937_s0 + $0x10] sm:$0xff] }
  0xaa   :  { %818 = vmatpush.msrb.mxu1 %v448_v6 }
  0xb0   :  { %4013 = vmatmul.msk.f32.gmra.mxu0 %vm406_vm0, %v398_v4 }
 0x11d   :  { %v436_v12 = vpop.f32.mrf.mxu0 }
 0x11e   :  { %v437_v13 = vadd.f32 %v6052_v11, %v436_v12 }
 0x120   :  { %v477_v9 = vpop.f32.mrf.mxu1 }
 0x121   :  { %v478_v10 = vadd.f32 %v6048_v8, %v477_v9 }
 0x123   :  { %501 = vrot.lane.b32.xlu0 %v478_v10, %s5578_s6  ;;  %v480_v14 = vadd.f32 %v478_v10, %v437_v13 }
 0x125   :  { %v4015_v15 = vmul.f32 -1.442695, %v480_v14  ;;  %v439_v42 = vpop.f32.mrf.mxu0 }
 0x126   :  { %v440_v43 = vadd.f32 %v6052_v11, %v439_v42 }
 0x127   :  { %5364 = vpow2.f32 %v4015_v15 }
 0x12d   :  { %v5365_v16 = vpop.eup %5364  ;;  %v442_v9 = vpop.f32.mrf.mxu0 }
 0x12e   :  { %v484_v17 = vadd.f32 1.0, %v5365_v16  ;;  %v443_v10 = vadd.f32 %v6052_v11, %v442_v9 }
 0x130   :  { %5366 = vrcp.f32 %v484_v17  ;;  %v496_v23 = vand.u32 2147483648, %v484_v17  ;;  %vm490_vm2 = vweird.f32 %v484_v17  ;;  %v494_v24 = vand.u32 2147483647, %v484_v17 }
 0x132   :  { %v497_v26 = vor.u32 1.1754944e-38, %v496_v23  ;;  %vm495_vm4 = vcmp.eq.f32.partialorder %v494_v24, 8.507059e+37 }
 0x136   :  { %v5367_v18 = vpop.eup %5366 }
 0x137   :  { %v486_v19 = vmul.f32 %v5367_v18, %v484_v17  ;;  %vm491_vm1 = vweird.f32 %v5367_v18 }
 0x138   :  { %vm492_vm3 = vmor %vm490_vm2, %vm491_vm1  ;;  %vm562_vm2 = vcmask 253952  }
 0x139   :  { %v487_v20 = vsub.f32 1.0, %v486_v19 }
 0x13b   :  { %v488_v21 = vmul.f32 %v5367_v18, %v487_v20 }
 0x13d   :  { %v489_v22 = vadd.f32 %v5367_v18, %v488_v21 }
 0x13f   :  { %v493_v25 = vsel %vm492_vm3, %v5367_v18, %v489_v22 }
 0x140   :  { %v498_v28 = vsel %vm495_vm4, %v497_v26, %v493_v25 }
 0x195   :  { %v502_v27 = vpop.permute.xlu0 %501 }
 0x196   :  { %v504_v29 = vmul.f32 %v502_v27, %v498_v28 }
 0x198   :  { %506 = vrot.lane.b32.xlu0 %v504_v29, %s5578_s6 }
 0x20a   :  { %v507_v30 = vpop.permute.xlu0 %506 }
 0x20b   :  { %v509_v31 = vadd.f32 %v507_v30, %v437_v13 }
 0x20d   :  { %5368 = vtanh.f32 %v509_v31 }
 0x213   :  { %v5369_v32 = vpop.eup %5368 }
 0x214   :  { %v511_v33 = vsub.f32 0.0, %v5369_v32 }
 0x216   :  { %513 = vrot.lane.b32.xlu1 %v511_v33, %s5579_s2 }
 0x288   :  { %v514_v34 = vpop.permute.xlu1 %513 }
 0x289   :  { %v516_v35 = vmul.f32 %v514_v34, %v498_v28 }
 0x28b   :  { %518 = vrot.lane.b32.xlu1 %v516_v35, %s5580_s13 }
 0x2fd   :  { %v519_v36 = vpop.permute.xlu1 %518 }
 0x2fe   :  { %v6058_v37 = vadd.f32 %v5369_v32, %v519_v36  ;;  %v399_v36 = vld [vmem:[%s6937_s0 + $0x18] sm:$0xff] }
 0x2ff   :  { %4014 = vmatmul.msk.f32.gmra.mxu0 %vm406_vm0, %v399_v36 }
 0x300   :  { %571 = vrot.lane.b32.xlu2 %v6058_v37, %s5578_s6  ;;  %v525_v42 = vrot.slane %v6058_v37, 3 }
 0x35a   :  { %v572_v39 = vpop.permute.xlu2 %571 }
 0x35b   :  { %4016 = vmatmul.msk.f32.vlgmr.msra.gmra.mxu2 %vm456_vm5, %v572_v39 }
 0x3de   :  { %v592_v40 = vpop.f32.mrf.mxu2 }
 0x3df   :  { %v593_v41 = vadd.f32 %v6048_v8, %v592_v40 }
 0x3e1   :  { %616 = vrot.lane.b32.xlu2 %v593_v41, %s5578_s6  ;;  %v595_v44 = vadd.f32 %v593_v41, %v440_v43  ;;  %v530_v41 = vperm.slane %v6058_v37, 0 }
 0x3e3   :  { %v4017_v45 = vmul.f32 -1.442695, %v595_v44  ;;  %v527_v44 = vrot.slane %v6058_v37, 5 }
 0x3e5   :  { %5370 = vpow2.f32 %v4017_v45  ;;  %v535_v45 = vperm.slane %v527_v44, 0  ;;  %v524_v44 = vrot.slane %v6058_v37, 2 }
 0x3eb   :  { %v5371_v46 = vpop.eup %5370 }
 0x3ec   :  { %v599_v47 = vadd.f32 1.0, %v5371_v46 }
 0x3ee   :  { %5372 = vrcp.f32 %v599_v47  ;;  %v611_v53 = vand.u32 2147483648, %v599_v47  ;;  %vm605_vm7 = vweird.f32 %v599_v47  ;;  %v609_v54 = vand.u32 2147483647, %v599_v47 }
 0x3f0   :  { %v612_v56 = vor.u32 1.1754944e-38, %v611_v53  ;;  %vm610_vm9 = vcmp.eq.f32.partialorder %v609_v54, 8.507059e+37 }
 0x3f4   :  { %v5373_v48 = vpop.eup %5372 }
 0x3f5   :  { %v601_v49 = vmul.f32 %v5373_v48, %v599_v47  ;;  %vm606_vm6 = vweird.f32 %v5373_v48 }
 0x3f6   :  { %vm607_vm8 = vmor %vm605_vm7, %vm606_vm6 }
 0x3f7   :  { %v602_v50 = vsub.f32 1.0, %v601_v49 }
 0x3f9   :  { %v603_v51 = vmul.f32 %v5373_v48, %v602_v50 }
 0x3fb   :  { %v604_v52 = vadd.f32 %v5373_v48, %v603_v51 }
 0x3fd   :  { %v608_v55 = vsel %vm607_vm8, %v5373_v48, %v604_v52  ;;  %v445_v52 = vpop.f32.mrf.mxu0 }
 0x3fe   :  { %v613_v58 = vsel %vm610_vm9, %v612_v56, %v608_v55  ;;  %v6117_v54 = vadd.f32 %v6052_v11, %v445_v52 }
 0x43b   :  { %v617_v57 = vpop.permute.xlu2 %616 }
 0x43c   :  { %v619_v59 = vmul.f32 %v617_v57, %v613_v58 }
 0x43e   :  { %621 = vrot.lane.b32.xlu0 %v619_v59, %s5578_s6 }
 0x4b0   :  { %v622_v60 = vpop.permute.xlu0 %621 }
 0x4b1   :  { %v624_v61 = vadd.f32 %v622_v60, %v440_v43  ;;  %v533_v43 = vperm.slane %v525_v42, 0 }
 0x4b3   :  { %5374 = vtanh.f32 %v624_v61 }
 0x4b9   :  { %v5375_v62 = vpop.eup %5374 }
 0x4ba   :  { %v626_v63 = vsub.f32 %v6058_v37, %v5375_v62 }
 0x4bc   :  { %628 = vrot.lane.b32.xlu1 %v626_v63, %s5579_s2 }
 0x52e   :  { %v629_v0 = vpop.permute.xlu1 %628 }
 0x52f   :  { %v631_v1 = vmul.f32 %v629_v0, %v613_v58 }
 0x531   :  { %633 = vrot.lane.b32.xlu2 %v631_v1, %s5580_s13 }
 0x58b   :  { %v634_v2 = vpop.permute.xlu2 %633 }
 0x58c   :  { %v6074_v3 = vadd.f32 %v5375_v62, %v634_v2 }
 0x58e   :  { %685 = vrot.lane.b32.xlu0 %v6074_v3, %s5578_s6  ;;  %v645_v46 = vperm.slane %v6074_v3, 0  ;;  %v643_v48 = vrot.slane %v6074_v3, 6  ;;  %v642_v52 = vrot.slane %v6074_v3, 5 }
 0x590   :  { %v651_v49 = vperm.slane %v643_v48, 0 }
 0x600   :  { %v686_v5 = vpop.permute.xlu0 %685 }
 0x601   :  { %4018 = vmatmul.msk.f32.vlgmr.msra.gmra.mxu3 %vm456_vm5, %v686_v5 }
 0x684   :  { %v706_v6 = vpop.f32.mrf.mxu3 }
 0x685   :  { %v707_v7 = vadd.f32 %v6048_v8, %v706_v6 }
 0x687   :  { %730 = vrot.lane.b32.xlu1 %v707_v7, %s5578_s6  ;;  %v709_v12 = vadd.f32 %v707_v7, %v443_v10 }
 0x689   :  { %v4019_v13 = vmul.f32 -1.442695, %v709_v12  ;;  %v523_v12 = vrot.slane %v6058_v37, 1 }
 0x68b   :  { %5376 = vpow2.f32 %v4019_v13 }
 0x691   :  { %v5377_v14 = vpop.eup %5376 }
 0x692   :  { %v713_v15 = vadd.f32 1.0, %v5377_v14  ;;  %v531_v14 = vperm.slane %v523_v12, 0 }
 0x694   :  { %5378 = vrcp.f32 %v713_v15  ;;  %v725_v21 = vand.u32 2147483648, %v713_v15  ;;  %vm719_vm11 = vweird.f32 %v713_v15  ;;  %v723_v22 = vand.u32 2147483647, %v713_v15 }
 0x696   :  { %v726_v24 = vor.u32 1.1754944e-38, %v725_v21  ;;  %vm724_vm13 = vcmp.eq.f32.partialorder %v723_v22, 8.507059e+37  ;;  %v638_v21 = vrot.slane %v6074_v3, 1 }
 0x69a   :  { %v5379_v16 = vpop.eup %5378 }
 0x69b   :  { %v715_v17 = vmul.f32 %v5379_v16, %v713_v15  ;;  %vm720_vm10 = vweird.f32 %v5379_v16  ;;  %v526_v15 = vrot.slane %v6058_v37, 4 }
 0x69c   :  { %vm721_vm12 = vmor %vm719_vm11, %vm720_vm10 }
 0x69d   :  { %v716_v18 = vsub.f32 1.0, %v715_v17  ;;  %v534_v17 = vperm.slane %v526_v15, 0 }
 0x69f   :  { %v717_v19 = vmul.f32 %v5379_v16, %v716_v18  ;;  %v528_v18 = vrot.slane %v6058_v37, 6 }
 0x6a1   :  { %v718_v20 = vadd.f32 %v5379_v16, %v717_v19 }
 0x6a3   :  { %v722_v23 = vsel %vm721_vm12, %v5379_v16, %v718_v20  ;;  %v536_v20 = vperm.slane %v528_v18, 0 }
 0x6a4   :  { %v727_v26 = vsel %vm724_vm13, %v726_v24, %v722_v23  ;;  %v646_v23 = vperm.slane %v638_v21, 0  ;;  %v641_v24 = vrot.slane %v6074_v3, 4 }
 0x6f9   :  { %v731_v25 = vpop.permute.xlu1 %730 }
 0x6fa   :  { %v733_v27 = vmul.f32 %v731_v25, %v727_v26 }
 0x6fc   :  { %735 = vrot.lane.b32.xlu2 %v733_v27, %s5578_s6  ;;  %v644_v27 = vrot.slane %v6074_v3, 7 }
 0x756   :  { %v736_v28 = vpop.permute.xlu2 %735 }
 0x757   :  { %v738_v29 = vadd.f32 %v736_v28, %v443_v10 }
 0x759   :  { %5380 = vtanh.f32 %v738_v29  ;;  %v652_v29 = vperm.slane %v644_v27, 0 }
 0x75f   :  { %v5381_v30 = vpop.eup %5380 }
 0x760   :  { %v740_v31 = vsub.f32 %v6074_v3, %v5381_v30 }
 0x762   :  { %742 = vrot.lane.b32.xlu0 %v740_v31, %s5579_s2 }
 0x7d4   :  { %v743_v32 = vpop.permute.xlu0 %742 }
 0x7d5   :  { %v745_v33 = vmul.f32 %v743_v32, %v727_v26  ;;  %v649_v26 = vperm.slane %v641_v24, 0 }
 0x7d7   :  { %747 = vrot.lane.b32.xlu1 %v745_v33, %s5580_s13 }
 0x849   :  { %v748_v34 = vpop.permute.xlu1 %747 }
 0x84a   :  { %v6090_v35 = vadd.f32 %v5381_v30, %v748_v34 }
 0x84c   :  { %799 = vrot.lane.b32.xlu2 %v6090_v35, %s5578_s6  ;;  %v752_v50 = vrot.slane %v6090_v35, 1  ;;  %v755_v53 = vrot.slane %v6090_v35, 4  ;;  %v758_v57 = vrot.slane %v6090_v35, 7  ;;  %v753_v30 = vrot.slane %v6090_v35, 2 }
 0x84d   :  { %v756_v33 = vrot.slane %v6090_v35, 5 }
 0x84e   :  { %v760_v51 = vperm.slane %v752_v50, 0  ;;  %v763_v55 = vperm.slane %v755_v53, 0  ;;  %v766_v59 = vperm.slane %v758_v57, 0  ;;  %v761_v32 = vperm.slane %v753_v30, 0 }
 0x84f   :  { %v764_v36 = vperm.slane %v756_v33, 0 }
 0x8a6   :  { %v800_v38 = vpop.permute.xlu2 %799 }
 0x8a7   :  { %4020 = vmatmul.msk.f32.vlgmr.msrb.gmra.mxu1 %vm456_vm5, %v800_v38 }
 0x924   :  { %v820_v39 = vpop.f32.mrf.mxu1 }
 0x925   :  { %v821_v40 = vadd.f32 %v6048_v8, %v820_v39  ;;  %v640_v8 = vrot.slane %v6074_v3, 3 }
 0x927   :  { %844 = vrot.lane.b32.xlu0 %v821_v40, %s5578_s6  ;;  %v648_v47 = vperm.slane %v640_v8, 0  ;;  %v823_v56 = vadd.f32 %v821_v40, %v6117_v54  ;;  %v529_v8 = vrot.slane %v6058_v37, 7  ;;  %v650_v37 = vperm.slane %v642_v52, 0 }
 0x929   :  { %v4021_v58 = vmul.f32 -1.442695, %v823_v56  ;;  %v537_v48 = vperm.slane %v529_v8, 0 }
 0x92b   :  { %5382 = vpow2.f32 %v4021_v58 }
 0x92f   :  { %538 = vrot.lane.b32.xlu0 %v530_v41, %s5578_s6 }
 0x931   :  { %v5383_v60 = vpop.eup %5382 }
 0x932   :  { %v827_v61 = vadd.f32 1.0, %v5383_v60  ;;  %v754_v60 = vrot.slane %v6090_v35, 3 }
 0x934   :  { %5384 = vrcp.f32 %v827_v61  ;;  %v839_v2 = vand.u32 2147483648, %v827_v61  ;;  %vm833_vm15 = vweird.f32 %v827_v61  ;;  %v837_v4 = vand.u32 2147483647, %v827_v61 }
 0x936   :  { %v840_v6 = vor.u32 1.1754944e-38, %v839_v2  ;;  %vm838_vm1 = vcmp.eq.f32.partialorder %v837_v4, 8.507059e+37 }
 0x937   :  { %544 = vrot.lane.b32.xlu0 %v533_v43, %s5578_s6 }
 0x93a   :  { %v5385_v62 = vpop.eup %5384 }
 0x93b   :  { %v829_v63 = vmul.f32 %v5385_v62, %v827_v61  ;;  %vm834_vm14 = vweird.f32 %v5385_v62 }
 0x93c   :  { %vm835_vm0 = vmor %vm833_vm15, %vm834_vm14 }
 0x93d   :  { %v830_v0 = vsub.f32 1.0, %v829_v63  ;;  %v757_v63 = vrot.slane %v6090_v35, 6 }
 0x93f   :  { %548 = vrot.lane.b32.xlu0 %v535_v45, %s5578_s6  ;;  %v831_v11 = vmul.f32 %v5385_v62, %v830_v0 }
 0x941   :  { %v832_v1 = vadd.f32 %v5385_v62, %v831_v11  ;;  %v765_v11 = vperm.slane %v757_v63, 0 }
 0x943   :  { %v836_v5 = vsel %vm835_vm0, %v5385_v62, %v832_v1  ;;  %v762_v62 = vperm.slane %v754_v60, 0 }
 0x944   :  { %v6123_v9 = vsel %vm838_vm1, %v840_v6, %v836_v5 }
 0x947   :  { %653 = vrot.lane.b32.xlu0 %v645_v46, %s5578_s6  ;;  %v532_v46 = vperm.slane %v524_v44, 0 }
 0x94f   :  { %659 = vrot.lane.b32.xlu0 %v648_v47, %s5578_s6 }
 0x957   :  { %665 = vrot.lane.b32.xlu0 %v651_v49, %s5578_s6  ;;  %v639_v49 = vrot.slane %v6074_v3, 2 }
 0x95f   :  { %769 = vrot.lane.b32.xlu0 %v760_v51, %s5578_s6  ;;  %v647_v51 = vperm.slane %v639_v49, 0 }
 0x967   :  { %775 = vrot.lane.b32.xlu0 %v763_v55, %s5578_s6 }
 0x96f   :  { %781 = vrot.lane.b32.xlu0 %v766_v59, %s5578_s6  ;;  %v759_v59 = vperm.slane %v6090_v35, 0 }
 0x999   :  { %v845_v7 = vpop.permute.xlu0 %844 }
 0x99a   :  { %v847_v10 = vmul.f32 %v845_v7, %v6123_v9 }
 0x99c   :  { %849 = vrot.lane.b32.xlu1 %v847_v10, %s5578_s6 }
 0x9a1   :  { %v539_v13 = vpop.permute.xlu0 %538 }
 0x9a2   :  { %563 = vst.msk [vmem:[#allocation4] sm:$0x1] %vm562_vm2, %v539_v13 }
 0x9a4   :  { %540 = vrot.lane.b32.xlu1 %v531_v14, %s5578_s6 }
 0x9a9   :  { %v545_v16 = vpop.permute.xlu0 %544 }
 0x9aa   :  { %566 = vst.msk [vmem:[#allocation4 + $0xc] sm:$0x1] %vm562_vm2, %v545_v16 }
 0x9ac   :  { %546 = vrot.lane.b32.xlu1 %v534_v17, %s5578_s6 }
 0x9b1   :  { %v549_v19 = vpop.permute.xlu0 %548 }
 0x9b2   :  { %568 = vst.msk [vmem:[#allocation4 + $0x14] sm:$0x1] %vm562_vm2, %v549_v19 }
 0x9b4   :  { %550 = vrot.lane.b32.xlu1 %v536_v20, %s5578_s6 }
 0x9b9   :  { %v654_v22 = vpop.permute.xlu0 %653 }
 0x9ba   :  { %677 = vst.msk [vmem:[#allocation4 + $0x1] sm:$0x1] %vm562_vm2, %v654_v22 }
 0x9bc   :  { %655 = vrot.lane.b32.xlu1 %v646_v23, %s5578_s6 }
 0x9c1   :  { %v660_v25 = vpop.permute.xlu0 %659 }
 0x9c2   :  { %680 = vst.msk [vmem:[#allocation4 + $0xd] sm:$0x1] %vm562_vm2, %v660_v25 }
 0x9c4   :  { %661 = vrot.lane.b32.xlu1 %v649_v26, %s5578_s6 }
 0x9c9   :  { %v666_v28 = vpop.permute.xlu0 %665 }
 0x9ca   :  { %683 = vst.msk [vmem:[#allocation4 + $0x19] sm:$0x1] %vm562_vm2, %v666_v28 }
 0x9cc   :  { %667 = vrot.lane.b32.xlu1 %v652_v29, %s5578_s6 }
 0x9d1   :  { %v770_v31 = vpop.permute.xlu0 %769 }
 0x9d2   :  { %792 = vst.msk [vmem:[#allocation4 + $0x6] sm:$0x1] %vm562_vm2, %v770_v31 }
 0x9d4   :  { %771 = vrot.lane.b32.xlu1 %v761_v32, %s5578_s6 }
 0x9d9   :  { %v776_v34 = vpop.permute.xlu0 %775 }
 0x9da   :  { %795 = vst.msk [vmem:[#allocation4 + $0x12] sm:$0x1] %vm562_vm2, %v776_v34 }
 0x9dc   :  { %777 = vrot.lane.b32.xlu1 %v764_v36, %s5578_s6 }
 0x9e1   :  { %v782_v38 = vpop.permute.xlu0 %781 }
 0x9e2   :  { %798 = vst.msk [vmem:[#allocation4 + $0x1e] sm:$0x1] %vm562_vm2, %v782_v38 }
 0xa0e   :  { %v850_v39 = vpop.permute.xlu1 %849 }
 0xa0f   :  { %v852_v40 = vadd.f32 %v850_v39, %v6117_v54 }
 0xa11   :  { %5386 = vtanh.f32 %v852_v40 }
 0xa16   :  { %v541_v41 = vpop.permute.xlu1 %540 }
 0xa17   :  { %v5387_v42 = vpop.eup %5386  ;;  %564 = vst.msk [vmem:[#allocation4 + $0x4] sm:$0x1] %vm562_vm2, %v541_v41 }
 0xa18   :  { %v854_v43 = vsub.f32 %v6090_v35, %v5387_v42 }
 0xa1a   :  { %856 = vrot.lane.b32.xlu2 %v854_v43, %s5579_s2 }
 0xa1e   :  { %v547_v45 = vpop.permute.xlu1 %546 }
 0xa1f   :  { %567 = vst.msk [vmem:[#allocation4 + $0x10] sm:$0x1] %vm562_vm2, %v547_v45 }
 0xa22   :  { %542 = vrot.lane.b32.xlu2 %v532_v46, %s5578_s6 }
 0xa26   :  { %v551_v47 = vpop.permute.xlu1 %550 }
 0xa27   :  { %569 = vst.msk [vmem:[#allocation4 + $0x18] sm:$0x1] %vm562_vm2, %v551_v47 }
 0xa2a   :  { %552 = vrot.lane.b32.xlu2 %v537_v48, %s5578_s6 }
 0xa2e   :  { %v656_v50 = vpop.permute.xlu1 %655 }
 0xa2f   :  { %678 = vst.msk [vmem:[#allocation4 + $0x5] sm:$0x1] %vm562_vm2, %v656_v50 }
 0xa32   :  { %657 = vrot.lane.b32.xlu2 %v647_v51, %s5578_s6 }
 0xa36   :  { %v662_v53 = vpop.permute.xlu1 %661 }
 0xa37   :  { %681 = vst.msk [vmem:[#allocation4 + $0x11] sm:$0x1] %vm562_vm2, %v662_v53 }
 0xa3a   :  { %663 = vrot.lane.b32.xlu2 %v650_v37, %s5578_s6 }
 0xa3e   :  { %v668_v54 = vpop.permute.xlu1 %667 }
 0xa3f   :  { %684 = vst.msk [vmem:[#allocation4 + $0x1d] sm:$0x1] %vm562_vm2, %v668_v54 }
 0xa46   :  { %v772_v55 = vpop.permute.xlu1 %771 }
 0xa47   :  { %793 = vst.msk [vmem:[#allocation4 + $0xa] sm:$0x1] %vm562_vm2, %v772_v55 }
 0xa4e   :  { %v778_v56 = vpop.permute.xlu1 %777 }
 0xa4f   :  { %796 = vst.msk [vmem:[#allocation4 + $0x16] sm:$0x1] %vm562_vm2, %v778_v56 }
 0xa74   :  { %v857_v57 = vpop.permute.xlu2 %856 }
 0xa75   :  { %v859_v58 = vmul.f32 %v857_v57, %v6123_v9 }
 0xa77   :  { %861 = vrot.lane.b32.xlu2 %v859_v58, %s5580_s13 }
 0xa7c   :  { %v543_v3 = vpop.permute.xlu2 %542 }
 0xa7d   :  { %565 = vst.msk [vmem:[#allocation4 + $0x8] sm:$0x1] %vm562_vm2, %v543_v3 }
 0xa7f   :  { %767 = vrot.lane.b32.xlu2 %v759_v59, %s5578_s6 }
 0xa84   :  { %v553_v61 = vpop.permute.xlu2 %552 }
 0xa85   :  { %570 = vst.msk [vmem:[#allocation4 + $0x1c] sm:$0x1] %vm562_vm2, %v553_v61 }
 0xa87   :  { %773 = vrot.lane.b32.xlu2 %v762_v62, %s5578_s6 }
 0xa8c   :  { %v658_v0 = vpop.permute.xlu2 %657 }
 0xa8d   :  { %679 = vst.msk [vmem:[#allocation4 + $0x9] sm:$0x1] %vm562_vm2, %v658_v0 }
 0xa8f   :  { %779 = vrot.lane.b32.xlu2 %v765_v11, %s5578_s6 }
 0xa94   :  { %v664_v1 = vpop.permute.xlu2 %663 }
 0xa95   :  { %682 = vst.msk [vmem:[#allocation4 + $0x15] sm:$0x1] %vm562_vm2, %v664_v1 }
 0xad1   :  { %v862_v2 = vpop.permute.xlu2 %861 }
 0xad2   :  { %v864_v4 = vadd.f32 %v5387_v42, %v862_v2 }
 0xad4   :  { %v873_v5 = vperm.slane %v864_v4, 0  ;;  %v867_v6 = vrot.slane %v864_v4, 2  ;;  %v866_v7 = vrot.slane %v864_v4, 1  ;;  %v868_v35 = vrot.slane %v864_v4, 3 }
 0xad5   :  { %v870_v13 = vrot.slane %v864_v4, 5  ;;  %v869_v14 = vrot.slane %v864_v4, 4  ;;  %v871_v18 = vrot.slane %v864_v4, 6  ;;  %v872_v20 = vrot.slane %v864_v4, 7 }
 0xad6   :  { %881 = vrot.lane.b32.xlu1 %v873_v5, %s5578_s6  ;;  %v875_v9 = vperm.slane %v867_v6, 0  ;;  %v874_v10 = vperm.slane %v866_v7, 0  ;;  %v876_v15 = vperm.slane %v868_v35, 0 }
 0xad7   :  { %v878_v16 = vperm.slane %v870_v13, 0  ;;  %v877_v17 = vperm.slane %v869_v14, 0  ;;  %v879_v21 = vperm.slane %v871_v18, 0  ;;  %v880_v22 = vperm.slane %v872_v20, 0 }
 0xad8   :  { %885 = vrot.lane.b32.xlu0 %v875_v9, %s5578_s6  ;;  %883 = vrot.lane.b32.xlu2 %v874_v10, %s5578_s6 }
 0xad9   :  { %v768_v12 = vpop.permute.xlu2 %767 }
 0xada   :  { %791 = vst.msk [vmem:[#allocation4 + $0x2] sm:$0x1] %vm562_vm2, %v768_v12 }
 0xade   :  { %887 = vrot.lane.b32.xlu1 %v876_v15, %s5578_s6 }
 0xae0   :  { %891 = vrot.lane.b32.xlu0 %v878_v16, %s5578_s6  ;;  %889 = vrot.lane.b32.xlu2 %v877_v17, %s5578_s6 }
 0xae1   :  { %v774_v19 = vpop.permute.xlu2 %773 }
 0xae2   :  { %794 = vst.msk [vmem:[#allocation4 + $0xe] sm:$0x1] %vm562_vm2, %v774_v19 }
 0xae6   :  { %893 = vrot.lane.b32.xlu1 %v879_v21, %s5578_s6 }
 0xae8   :  { %895 = vrot.lane.b32.xlu2 %v880_v22, %s5578_s6 }
 0xae9   :  { %v780_v23 = vpop.permute.xlu2 %779 }
 0xaea   :  { %797 = vst.msk [vmem:[#allocation4 + $0x1a] sm:$0x1] %vm562_vm2, %v780_v23 }
 0xb32   :  { %v884_v24 = vpop.permute.xlu2 %883 }
 0xb33   :  { %906 = vst.msk [vmem:[#allocation4 + $0x7] sm:$0x1] %vm562_vm2, %v884_v24 }
 0xb3a   :  { %v890_v25 = vpop.permute.xlu2 %889 }
 0xb3b   :  { %909 = vst.msk [vmem:[#allocation4 + $0x13] sm:$0x1] %vm562_vm2, %v890_v25 }
 0xb42   :  { %v896_v26 = vpop.permute.xlu2 %895 }
 0xb43   :  { %912 = vst.msk [vmem:[#allocation4 + $0x1f] sm:$0x1] %vm562_vm2, %v896_v26 }
 0xb48   :  { %v882_v27 = vpop.permute.xlu1 %881 }
 0xb49   :  { %905 = vst.msk [vmem:[#allocation4 + $0x3] sm:$0x1] %vm562_vm2, %v882_v27 }
 0xb4a   :  { %v886_v28 = vpop.permute.xlu0 %885 }
 0xb4b   :  { %907 = vst.msk [vmem:[#allocation4 + $0xb] sm:$0x1] %vm562_vm2, %v886_v28 }
 0xb50   :  { %v888_v29 = vpop.permute.xlu1 %887 }
 0xb51   :  { %908 = vst.msk [vmem:[#allocation4 + $0xf] sm:$0x1] %vm562_vm2, %v888_v29 }
 0xb52   :  { %v892_v30 = vpop.permute.xlu0 %891 }
 0xb53   :  { %910 = vst.msk [vmem:[#allocation4 + $0x17] sm:$0x1] %vm562_vm2, %v892_v30 }
 0xb58   :  { %v894_v31 = vpop.permute.xlu1 %893 }
 0xb59   :  { %911 = vst.msk [vmem:[#allocation4 + $0x1b] sm:$0x1] %vm562_vm2, %v894_v31 }
 0xb5a   :  { %5565 = dma.done.wait [#allocation3], 16384 }
 0xb5b   :  { %5566 = vsyncadd [#allocation3], 4294950912  ;;  %v4056_v32 = vld [vmem:[#allocation2 + $0x40] sm:$0xf]  ;;  %v5105_v34 = vld [vmem:[#allocation2 + $0x44] sm:$0xf] }
 0xb5c   :  { %v5109_v33 = vld [vmem:[#allocation2 + $0x5c] sm:$0xf0]  ;;  %v4058_v38 = vld [vmem:[#allocation2 + $0x60] sm:$0xf0]  ;;  %v4064_v39 = vld [vmem:[#allocation2 + $0x48] sm:$0xf] }
 0xb5d   :  { %v4057_v36 = vor.u32 %v5109_v33, %v4056_v32  ;;  %v5110_v40 = vld [vmem:[#allocation2 + $0x64] sm:$0xf0]  ;;  %v4061_v41 = vor.u32 %v5105_v34, %v4058_v38  ;;  %v5107_v43 = vld [vmem:[#allocation2 + $0x54] sm:$0xf]  ;;  %v4024_v45 = vld [vmem:[#allocation2] sm:$0xf] }
 0xb5e   :  { %v4065_v42 = vor.u32 %v5110_v40, %v4064_v39  ;;  %v4074_v44 = vld [vmem:[#allocation2 + $0x70] sm:$0xf0]  ;;  %v5101_v8 = vld [vmem:[#allocation2 + $0x1c] sm:$0xf0]  ;;  %v5097_v47 = vld [vmem:[#allocation2 + $0x4] sm:$0xf] }
 0xb5f   :  { %1151 = vmatpush.bf16.msrb.mxu2 %v4057_v36  ;;  %v4077_v46 = vor.u32 %v5107_v43, %v4074_v44  ;;  %v4026_v48 = vld [vmem:[#allocation2 + $0x20] sm:$0xf0]  ;;  %1164 = vmatpush.bf16.msrb.mxu3 %v4061_v41  ;;  %v4025_v49 = vor.u32 %v5101_v8, %v4024_v45  ;;  %v4032_v51 = vld [vmem:[#allocation2 + $0x8] sm:$0xf]  ;;  %v5099_v53 = vld [vmem:[#allocation2 + $0x14] sm:$0xf] }
 0xb60   :  { %1177 = vmatpush.bf16.msra.mxu1 %v4065_v42  ;;  %v4029_v50 = vor.u32 %v5097_v47, %v4026_v48  ;;  %v5102_v52 = vld [vmem:[#allocation2 + $0x24] sm:$0xf0]  ;;  %v4042_v54 = vld [vmem:[#allocation2 + $0x30] sm:$0xf0]  ;;  %v918_v55 = vld [vmem:[#allocation4] sm:$0xf] }
 0xb61   :  { %1216 = vmatpush.bf16.msrb.mxu0 %v4077_v46  ;;  %v4033_v37 = vor.u32 %v5102_v52, %v4032_v51  ;;  %v5106_v56 = vld [vmem:[#allocation2 + $0x4c] sm:$0xf]  ;;  %v4045_v57 = vor.u32 %v5099_v53, %v4042_v54  ;;  %v6202_v58 = vpack.c.bf16 %v918_v55, %v918_v55  ;;  %v4072_v59 = vld [vmem:[#allocation2 + $0x50] sm:$0xf]  ;;  %v4080_v63 = vld [vmem:[#allocation2 + $0x58] sm:$0xf] }
 0xb62   :  { %v4066_v3 = vld [vmem:[#allocation2 + $0x68] sm:$0xf0]  ;;  %v5111_v60 = vld [vmem:[#allocation2 + $0x6c] sm:$0xf0]  ;;  %v5112_v0 = vld [vmem:[#allocation2 + $0x74] sm:$0xf0] }
 0xb63   :  { %1152 = vmatpush.bf16.msrb.mxu2 %v4025_v49  ;;  %v4069_v61 = vor.u32 %v5106_v56, %v4066_v3  ;;  %v4073_v62 = vor.u32 %v5111_v60, %v4072_v59  ;;  %v5121_v11 = vld [vmem:[#allocation2 + $0xc4] sm:$0xf]  ;;  %1165 = vmatpush.bf16.msrb.mxu3 %v4029_v50  ;;  %v4081_v1 = vor.u32 %v5112_v0, %v4080_v63  ;;  %v5098_v4 = vld [vmem:[#allocation2 + $0xc] sm:$0xf]  ;;  %v4040_v9 = vld [vmem:[#allocation2 + $0x10] sm:$0xf] }
 0xb64   :  { %1178 = vmatpush.bf16.msra.mxu1 %v4033_v37  ;;  %v4130_v2 = vld [vmem:[#allocation2 + $0xe0] sm:$0xf0]  ;;  %v4034_v5 = vld [vmem:[#allocation2 + $0x28] sm:$0xf0]  ;;  %v5103_v10 = vld [vmem:[#allocation2 + $0x2c] sm:$0xf0] }
 0xb65   :  { %1217 = vmatpush.bf16.msrb.mxu0 %v4045_v57  ;;  %v4133_v6 = vor.u32 %v5121_v11, %v4130_v2  ;;  %v4037_v7 = vor.u32 %v5098_v4, %v4034_v5  ;;  %v4048_v35 = vld [vmem:[#allocation2 + $0x18] sm:$0xf]  ;;  %v4041_v12 = vor.u32 %v5103_v10, %v4040_v9  ;;  %v5113_v14 = vld [vmem:[#allocation2 + $0x84] sm:$0xf]  ;;  %v5108_v16 = vld [vmem:[#allocation2 + $0x5c] sm:$0xf] }
 0xb66   :  { %4086 = vmatmul.msk.bf16.vlgmr.msrb.gmra.mxu2 %vm456_vm5, %v6202_v58  ;;  %v5104_v13 = vld [vmem:[#allocation2 + $0x34] sm:$0xf0]  ;;  %v4098_v15 = vld [vmem:[#allocation2 + $0xa0] sm:$0xf0]  ;;  %4087 = vmatmul.msk.bf16.vlgmr.msrb.gmra.mxu3 %vm456_vm5, %v6202_v58  ;;  %v4082_v17 = vld [vmem:[#allocation2 + $0x78] sm:$0xf0] }
 0xb67   :  { %1190 = vmatpush.bf16.msra.mxu2 %v4069_v61  ;;  %1203 = vmatpush.bf16.msra.mxu3 %v4073_v62  ;;  %v4049_v18 = vor.u32 %v5104_v13, %v4048_v35  ;;  %v4085_v19 = vor.u32 %v5108_v16, %v4082_v17  ;;  %v4128_v20 = vld [vmem:[#allocation2 + $0xc0] sm:$0xf]  ;;  %v4136_v22 = vld [vmem:[#allocation2 + $0xc8] sm:$0xf]  ;;  %v4101_v23 = vor.u32 %v5113_v14, %v4098_v15  ;;  %v5123_v26 = vld [vmem:[#allocation2 + $0xd4] sm:$0xf] }
 0xb68   :  { %4088 = vmatmul.msk.bf16.vlgmr.msra.gmra.mxu1 %vm456_vm5, %v6202_v58  ;;  %4091 = vmatmul.msk.bf16.vlgmr.msrb.gmra.mxu0 %vm456_vm5, %v6202_v58  ;;  %v5125_v21 = vld [vmem:[#allocation2 + $0xdc] sm:$0xf0]  ;;  %v5126_v25 = vld [vmem:[#allocation2 + $0xe4] sm:$0xf0]  ;;  %v4146_v27 = vld [vmem:[#allocation2 + $0xf0] sm:$0xf0] }
 0xb69   :  { %1229 = vmatpush.bf16.msrb.mxu1 %v4081_v1  ;;  %1351 = vmatpush.bf16.msra.mxu0 %v4133_v6  ;;  %v4129_v24 = vor.u32 %v5125_v21, %v4128_v20  ;;  %v4137_v28 = vor.u32 %v5126_v25, %v4136_v22  ;;  %v4149_v29 = vor.u32 %v5123_v26, %v4146_v27  ;;  %v5100_v30 = vld [vmem:[#allocation2 + $0x1c] sm:$0xf]  ;;  %v4096_v32 = vld [vmem:[#allocation2 + $0x80] sm:$0xf]  ;;  %v4104_v36 = vld [vmem:[#allocation2 + $0x88] sm:$0xf] }
 0xb6a   :  { %v4050_v31 = vld [vmem:[#allocation2 + $0x38] sm:$0xf0]  ;;  %v5117_v34 = vld [vmem:[#allocation2 + $0x9c] sm:$0xf0]  ;;  %v5118_v38 = vld [vmem:[#allocation2 + $0xa4] sm:$0xf0] }
 0xb6b   :  { %1191 = vmatpush.bf16.msra.mxu2 %v4037_v7  ;;  %1204 = vmatpush.bf16.msra.mxu3 %v4041_v12  ;;  %v4053_v33 = vor.u32 %v5100_v30, %v4050_v31  ;;  %v4097_v39 = vor.u32 %v5117_v34, %v4096_v32  ;;  %v5115_v40 = vld [vmem:[#allocation2 + $0x94] sm:$0xf]  ;;  %v4105_v42 = vor.u32 %v5118_v38, %v4104_v36  ;;  %v919_v44 = vld [vmem:[#allocation4 + $0x4] sm:$0xf]  ;;  %v5122_v45 = vld [vmem:[#allocation2 + $0xcc] sm:$0xf] }
 0xb6c   :  { %v4114_v41 = vld [vmem:[#allocation2 + $0xb0] sm:$0xf0]  ;;  %v4138_v46 = vld [vmem:[#allocation2 + $0xe8] sm:$0xf0]  ;;  %v4144_v8 = vld [vmem:[#allocation2 + $0xd0] sm:$0xf]  ;;  %v6212_v52 = vpack.c.bf16 %v919_v44, %v919_v44 }
 0xb6d   :  { %1230 = vmatpush.bf16.msrb.mxu1 %v4049_v18  ;;  %1352 = vmatpush.bf16.msra.mxu0 %v4101_v23  ;;  %v4117_v43 = vor.u32 %v5115_v40, %v4114_v41  ;;  %v5127_v47 = vld [vmem:[#allocation2 + $0xec] sm:$0xf0]  ;;  %v4152_v48 = vld [vmem:[#allocation2 + $0xd8] sm:$0xf]  ;;  %v5137_v50 = vld [vmem:[#allocation2 + $0x144] sm:$0xf]  ;;  %v4141_v53 = vor.u32 %v5122_v45, %v4138_v46 }
 0xb6e   :  { %v5128_v49 = vld [vmem:[#allocation2 + $0xf4] sm:$0xf0]  ;;  %v4202_v51 = vld [vmem:[#allocation2 + $0x160] sm:$0xf0]  ;;  %v4145_v37 = vor.u32 %v5127_v47, %v4144_v8  ;;  %v5114_v55 = vld [vmem:[#allocation2 + $0x8c] sm:$0xf] }
 0xb6f   :  { %1242 = vmatpush.bf16.msrb.mxu2 %v4085_v19  ;;  %1338 = vmatpush.bf16.msrb.mxu3 %v4129_v24  ;;  %v4153_v54 = vor.u32 %v5128_v49, %v4152_v48  ;;  %v4106_v56 = vld [vmem:[#allocation2 + $0xa8] sm:$0xf0]  ;;  %v4112_v57 = vld [vmem:[#allocation2 + $0x90] sm:$0xf]  ;;  %v4205_v3 = vor.u32 %v5137_v50, %v4202_v51  ;;  %v4120_v60 = vld [vmem:[#allocation2 + $0x98] sm:$0xf] }
 0xb70   :  { %v5119_v59 = vld [vmem:[#allocation2 + $0xac] sm:$0xf0]  ;;  %v5120_v61 = vld [vmem:[#allocation2 + $0xb4] sm:$0xf0]  ;;  %v5129_v62 = vld [vmem:[#allocation2 + $0x104] sm:$0xf]  ;;  %v4109_v0 = vor.u32 %v5114_v55, %v4106_v56 }
 0xb71   :  { %1364 = vmatpush.bf16.msra.mxu1 %v4137_v28  ;;  %1403 = vmatpush.bf16.msrb.mxu0 %v4149_v29  ;;  %v4170_v63 = vld [vmem:[#allocation2 + $0x120] sm:$0xf0]  ;;  %v4113_v11 = vor.u32 %v5119_v59, %v4112_v57  ;;  %v4121_v1 = vor.u32 %v5120_v61, %v4120_v60  ;;  %v5124_v4 = vld [vmem:[#allocation2 + $0xdc] sm:$0xf]  ;;  %v4200_v6 = vld [vmem:[#allocation2 + $0x140] sm:$0xf] }
 0xb72   :  { %v4173_v2 = vor.u32 %v5129_v62, %v4170_v63  ;;  %v4154_v5 = vld [vmem:[#allocation2 + $0xf8] sm:$0xf0]  ;;  %v5141_v7 = vld [vmem:[#allocation2 + $0x15c] sm:$0xf0]  ;;  %v4208_v9 = vld [vmem:[#allocation2 + $0x148] sm:$0xf] }
 0xb73   :  { %1243 = vmatpush.bf16.msrb.mxu2 %v4053_v33  ;;  %1339 = vmatpush.bf16.msrb.mxu3 %v4097_v39  ;;  %v5142_v10 = vld [vmem:[#allocation2 + $0x164] sm:$0xf0]  ;;  %v5139_v35 = vld [vmem:[#allocation2 + $0x154] sm:$0xf]  ;;  %v4157_v13 = vor.u32 %v5124_v4, %v4154_v5  ;;  %v4201_v14 = vor.u32 %v5141_v7, %v4200_v6  ;;  %v5116_v16 = vld [vmem:[#allocation2 + $0x9c] sm:$0xf] }
 0xb74   :  { %v4218_v12 = vld [vmem:[#allocation2 + $0x170] sm:$0xf0]  ;;  %v4209_v15 = vor.u32 %v5142_v10, %v4208_v9  ;;  %v4122_v17 = vld [vmem:[#allocation2 + $0xb8] sm:$0xf0]  ;;  %v4168_v18 = vld [vmem:[#allocation2 + $0x100] sm:$0xf] }
 0xb75   :  { %1365 = vmatpush.bf16.msra.mxu1 %v4105_v42  ;;  %1404 = vmatpush.bf16.msrb.mxu0 %v4117_v43  ;;  %v4221_v19 = vor.u32 %v5139_v35, %v4218_v12  ;;  %v5133_v20 = vld [vmem:[#allocation2 + $0x11c] sm:$0xf0]  ;;  %v4176_v21 = vld [vmem:[#allocation2 + $0x108] sm:$0xf]  ;;  %v5131_v23 = vld [vmem:[#allocation2 + $0x114] sm:$0xf]  ;;  %v4125_v25 = vor.u32 %v5116_v16, %v4122_v17 }
 0xb76   :  { %4089 = vmatmul.msk.bf16.vlgmr.msra.gmra.mxu2 %vm456_vm5, %v6202_v58  ;;  %4090 = vmatmul.msk.bf16.vlgmr.msra.gmra.mxu3 %vm456_vm5, %v6202_v58  ;;  %v5134_v22 = vld [vmem:[#allocation2 + $0x124] sm:$0xf0]  ;;  %v4186_v24 = vld [vmem:[#allocation2 + $0x130] sm:$0xf0]  ;;  %v5138_v29 = vld [vmem:[#allocation2 + $0x14c] sm:$0xf] }
 0xb77   :  { %1377 = vmatpush.bf16.msra.mxu2 %v4141_v53  ;;  %1390 = vmatpush.bf16.msra.mxu3 %v4145_v37  ;;  %v4177_v26 = vor.u32 %v5134_v22, %v4176_v21  ;;  %v4189_v27 = vor.u32 %v5131_v23, %v4186_v24  ;;  %v920_v28 = vld [vmem:[#allocation4 + $0x8] sm:$0xf]  ;;  %v4210_v30 = vld [vmem:[#allocation2 + $0x168] sm:$0xf0]  ;;  %v4216_v31 = vld [vmem:[#allocation2 + $0x150] sm:$0xf] }
 0xb78   :  { %4092 = vmatmul.msk.bf16.vlgmr.msrb.gmra.mxu1 %vm456_vm5, %v6202_v58  ;;  %4159 = vmatmul.msk.bf16.vlgmr.msra.gmra.mxu0 %vm456_vm5, %v6212_v52  ;;  %v5143_v32 = vld [vmem:[#allocation2 + $0x16c] sm:$0xf0]  ;;  %v4224_v33 = vld [vmem:[#allocation2 + $0x158] sm:$0xf]  ;;  %v5153_v36 = vld [vmem:[#allocation2 + $0x1c4] sm:$0xf]  ;;  %v6230_v39 = vpack.c.bf16 %v920_v28, %v920_v28  ;;  %v4213_v40 = vor.u32 %v5138_v29, %v4210_v30 }
 0xb79   :  { %1416 = vmatpush.bf16.msrb.mxu1 %v4153_v54  ;;  %1538 = vmatpush.bf16.msra.mxu0 %v4205_v3  ;;  %v5144_v34 = vld [vmem:[#allocation2 + $0x174] sm:$0xf0]  ;;  %v4274_v38 = vld [vmem:[#allocation2 + $0x1e0] sm:$0xf0]  ;;  %v4217_v41 = vor.u32 %v5143_v32, %v4216_v31  ;;  %v5130_v43 = vld [vmem:[#allocation2 + $0x10c] sm:$0xf] }
 0xb7a   :  { %v4225_v42 = vor.u32 %v5144_v34, %v4224_v33  ;;  %v4178_v44 = vld [vmem:[#allocation2 + $0x128] sm:$0xf0]  ;;  %v4184_v45 = vld [vmem:[#allocation2 + $0x110] sm:$0xf]  ;;  %v4277_v46 = vor.u32 %v5153_v36, %v4274_v38  ;;  %v4192_v47 = vld [vmem:[#allocation2 + $0x118] sm:$0xf] }
 0xb7b   :  { %1378 = vmatpush.bf16.msra.mxu2 %v4109_v0  ;;  %1391 = vmatpush.bf16.msra.mxu3 %v4113_v11  ;;  %v5135_v8 = vld [vmem:[#allocation2 + $0x12c] sm:$0xf0]  ;;  %v5136_v48 = vld [vmem:[#allocation2 + $0x134] sm:$0xf0]  ;;  %v5145_v49 = vld [vmem:[#allocation2 + $0x184] sm:$0xf]  ;;  %v4181_v51 = vor.u32 %v5130_v43, %v4178_v44 }
 0xb7c   :  { %v4242_v50 = vld [vmem:[#allocation2 + $0x1a0] sm:$0xf0]  ;;  %v4185_v53 = vor.u32 %v5135_v8, %v4184_v45  ;;  %v4193_v37 = vor.u32 %v5136_v48, %v4192_v47  ;;  %v5140_v55 = vld [vmem:[#allocation2 + $0x15c] sm:$0xf]  ;;  %v4272_v57 = vld [vmem:[#allocation2 + $0x1c0] sm:$0xf] }
 0xb7d   :  { %1417 = vmatpush.bf16.msrb.mxu1 %v4121_v1  ;;  %1539 = vmatpush.bf16.msra.mxu0 %v4173_v2  ;;  %v4245_v54 = vor.u32 %v5145_v49, %v4242_v50  ;;  %v4226_v56 = vld [vmem:[#allocation2 + $0x178] sm:$0xf0]  ;;  %v5157_v3 = vld [vmem:[#allocation2 + $0x1dc] sm:$0xf0]  ;;  %v4280_v59 = vld [vmem:[#allocation2 + $0x1c8] sm:$0xf] }
 0xb7e   :  { %v5158_v60 = vld [vmem:[#allocation2 + $0x1e4] sm:$0xf0]  ;;  %v5155_v61 = vld [vmem:[#allocation2 + $0x1d4] sm:$0xf]  ;;  %v4229_v63 = vor.u32 %v5140_v55, %v4226_v56  ;;  %v4273_v0 = vor.u32 %v5157_v3, %v4272_v57  ;;  %v5132_v1 = vld [vmem:[#allocation2 + $0x11c] sm:$0xf] }
 0xb7f   :  { %v4290_v62 = vld [vmem:[#allocation2 + $0x1f0] sm:$0xf0]  ;;  %v4281_v11 = vor.u32 %v5158_v60, %v4280_v59  ;;  %v4194_v2 = vld [vmem:[#allocation2 + $0x138] sm:$0xf0]  ;;  %v4240_v4 = vld [vmem:[#allocation2 + $0x180] sm:$0xf] }
 0xb80   :  { %v4293_v5 = vor.u32 %v5155_v61, %v4290_v62  ;;  %v5149_v6 = vld [vmem:[#allocation2 + $0x19c] sm:$0xf0]  ;;  %v4248_v7 = vld [vmem:[#allocation2 + $0x188] sm:$0xf]  ;;  %v5147_v10 = vld [vmem:[#allocation2 + $0x194] sm:$0xf]  ;;  %v4197_v12 = vor.u32 %v5132_v1, %v4194_v2 }
 0xb81   :  { %v5150_v9 = vld [vmem:[#allocation2 + $0x1a4] sm:$0xf0]  ;;  %v4258_v35 = vld [vmem:[#allocation2 + $0x1b0] sm:$0xf0]  ;;  %v5154_v16 = vld [vmem:[#allocation2 + $0x1cc] sm:$0xf] }
 0xb82   :  { %v4282_v17 = vld [vmem:[#allocation2 + $0x1e8] sm:$0xf0]  ;;  %v5160_v21 = vld [vmem:[#allocation2 + $0x1f4] sm:$0xf0]  ;;  %v5169_v22 = vld [vmem:[#allocation2 + $0x244] sm:$0xf] }
 0xb83   :  { %v4346_v23 = vld [vmem:[#allocation2 + $0x260] sm:$0xf0]  ;;  %v4250_v28 = vld [vmem:[#allocation2 + $0x1a8] sm:$0xf0]  ;;  %v4256_v29 = vld [vmem:[#allocation2 + $0x190] sm:$0xf] }
 0xb84   :  { %v4349_v30 = vor.u32 %v5169_v22, %v4346_v23  ;;  %v5151_v31 = vld [vmem:[#allocation2 + $0x1ac] sm:$0xf0]  ;;  %v4264_v32 = vld [vmem:[#allocation2 + $0x198] sm:$0xf]  ;;  %v5161_v34 = vld [vmem:[#allocation2 + $0x204] sm:$0xf] }
 0xb85   :  { %v5152_v33 = vld [vmem:[#allocation2 + $0x1b4] sm:$0xf0]  ;;  %v4314_v36 = vld [vmem:[#allocation2 + $0x220] sm:$0xf0]  ;;  %v5156_v43 = vld [vmem:[#allocation2 + $0x1dc] sm:$0xf] }
 0xb86   :  { %4093 = vmatmul.msk.bf16.vlgmr.msrb.gmra.mxu2 %vm456_vm5, %v6202_v58  ;;  %4158 = vmatmul.msk.bf16.vlgmr.msrb.gmra.mxu3 %vm456_vm5, %v6212_v52  ;;  %v4169_v58 = vor.u32 %v5133_v20, %v4168_v18  ;;  %v4288_v18 = vld [vmem:[#allocation2 + $0x1d0] sm:$0xf]  ;;  %v4296_v20 = vld [vmem:[#allocation2 + $0x1d8] sm:$0xf]  ;;  %v4298_v44 = vld [vmem:[#allocation2 + $0x1f8] sm:$0xf0] }
 0xb87   :  { %1429 = vmatpush.bf16.msrb.mxu2 %v4157_v13  ;;  %1525 = vmatpush.bf16.msrb.mxu3 %v4201_v14  ;;  %v4249_v13 = vor.u32 %v5150_v9, %v4248_v7  ;;  %v4261_v14 = vor.u32 %v5147_v10, %v4258_v35  ;;  %v4344_v45 = vld [vmem:[#allocation2 + $0x240] sm:$0xf]  ;;  %v4352_v8 = vld [vmem:[#allocation2 + $0x248] sm:$0xf]  ;;  %v5171_v48 = vld [vmem:[#allocation2 + $0x254] sm:$0xf]  ;;  %v4301_v50 = vor.u32 %v5156_v43, %v4298_v44 }
 0xb88   :  { %4160 = vmatmul.msk.bf16.vlgmr.msra.gmra.mxu1 %vm456_vm5, %v6212_v52  ;;  %4163 = vmatmul.msk.bf16.vlgmr.msrb.gmra.mxu0 %vm456_vm5, %v6212_v52  ;;  %v5174_v47 = vld [vmem:[#allocation2 + $0x264] sm:$0xf0]  ;;  %v4362_v49 = vld [vmem:[#allocation2 + $0x270] sm:$0xf0]  ;;  %v4312_v55 = vld [vmem:[#allocation2 + $0x200] sm:$0xf] }
 0xb89   :  { %1551 = vmatpush.bf16.msra.mxu1 %v4209_v15  ;;  %1590 = vmatpush.bf16.msrb.mxu0 %v4221_v19  ;;  %v921_v15 = vld [vmem:[#allocation4 + $0xc] sm:$0xf]  ;;  %v5159_v19 = vld [vmem:[#allocation2 + $0x1ec] sm:$0xf0]  ;;  %v4365_v56 = vor.u32 %v5171_v48, %v4362_v49  ;;  %v5165_v57 = vld [vmem:[#allocation2 + $0x21c] sm:$0xf0] }
 0xb8a   :  { %v6248_v24 = vpack.c.bf16 %v921_v15, %v921_v15  ;;  %v4320_v3 = vld [vmem:[#allocation2 + $0x208] sm:$0xf]  ;;  %v5163_v60 = vld [vmem:[#allocation2 + $0x214] sm:$0xf]  ;;  %v5170_v1 = vld [vmem:[#allocation2 + $0x24c] sm:$0xf] }
 0xb8b   :  { %1430 = vmatpush.bf16.msrb.mxu2 %v4125_v25  ;;  %1526 = vmatpush.bf16.msrb.mxu3 %v4169_v58  ;;  %v4285_v25 = vor.u32 %v5154_v16, %v4282_v17  ;;  %v4289_v58 = vor.u32 %v5159_v19, %v4288_v18  ;;  %v5166_v59 = vld [vmem:[#allocation2 + $0x224] sm:$0xf0]  ;;  %v4330_v61 = vld [vmem:[#allocation2 + $0x230] sm:$0xf0]  ;;  %v4354_v2 = vld [vmem:[#allocation2 + $0x268] sm:$0xf0] }
 0xb8c   :  { %v5176_v7 = vld [vmem:[#allocation2 + $0x274] sm:$0xf0]  ;;  %v5185_v9 = vld [vmem:[#allocation2 + $0x2c4] sm:$0xf]  ;;  %v4322_v15 = vld [vmem:[#allocation2 + $0x228] sm:$0xf0] }
 0xb8d   :  { %1552 = vmatpush.bf16.msra.mxu1 %v4177_v26  ;;  %1591 = vmatpush.bf16.msrb.mxu0 %v4189_v27  ;;  %v4297_v26 = vor.u32 %v5160_v21, %v4296_v20  ;;  %v5146_v27 = vld [vmem:[#allocation2 + $0x18c] sm:$0xf]  ;;  %v4418_v10 = vld [vmem:[#allocation2 + $0x2e0] sm:$0xf0]  ;;  %v4328_v16 = vld [vmem:[#allocation2 + $0x210] sm:$0xf] }
 0xb8e   :  { %v4253_v38 = vor.u32 %v5146_v27, %v4250_v28  ;;  %v4421_v17 = vor.u32 %v5185_v9, %v4418_v10  ;;  %v5167_v18 = vld [vmem:[#allocation2 + $0x22c] sm:$0xf0]  ;;  %v4336_v19 = vld [vmem:[#allocation2 + $0x218] sm:$0xf]  ;;  %v5177_v21 = vld [vmem:[#allocation2 + $0x284] sm:$0xf] }
 0xb8f   :  { %v5168_v20 = vld [vmem:[#allocation2 + $0x234] sm:$0xf0]  ;;  %v4386_v22 = vld [vmem:[#allocation2 + $0x2a0] sm:$0xf0]  ;;  %v5172_v27 = vld [vmem:[#allocation2 + $0x25c] sm:$0xf] }
 0xb90   :  { %v4370_v28 = vld [vmem:[#allocation2 + $0x278] sm:$0xf0]  ;;  %v5182_v48 = vld [vmem:[#allocation2 + $0x2a4] sm:$0xf0]  ;;  %v5179_v49 = vld [vmem:[#allocation2 + $0x294] sm:$0xf] }
 0xb91   :  { %v5164_v43 = vld [vmem:[#allocation2 + $0x21c] sm:$0xf]  ;;  %vm2558_vm3 = vcmask 1043456   ;;  %vm2664_vm4 = vcmask 846848   ;;  %s3988_s21 = sshll.u32 %s6948_s11, 4  ;;  %vm3979_vm6 = vcmask 76800   ;;  %s3989_s21 = int_to_ptr.hbm [resolvable:$true] %s3988_s21 }
 0xb92   :  { %v4338_v44 = vld [vmem:[#allocation2 + $0x238] sm:$0xf0] }
 0xb96   :  { %4161 = vmatmul.msk.bf16.vlgmr.msra.gmra.mxu2 %vm456_vm5, %v6212_v52  ;;  %4162 = vmatmul.msk.bf16.vlgmr.msra.gmra.mxu3 %vm456_vm5, %v6212_v52 }
 0xb97   :  { %1564 = vmatpush.bf16.msra.mxu2 %v4213_v40  ;;  %1577 = vmatpush.bf16.msra.mxu3 %v4217_v41  ;;  %v4257_v40 = vor.u32 %v5151_v31, %v4256_v29  ;;  %v4265_v41 = vor.u32 %v5152_v33, %v4264_v32  ;;  %v4416_v29 = vld [vmem:[#allocation2 + $0x2c0] sm:$0xf]  ;;  %v4424_v31 = vld [vmem:[#allocation2 + $0x2c8] sm:$0xf]  ;;  %v5187_v33 = vld [vmem:[#allocation2 + $0x2d4] sm:$0xf] }
 0xb98   :  { %4164 = vmatmul.msk.bf16.vlgmr.msrb.gmra.mxu1 %vm456_vm5, %v6212_v52  ;;  %4231 = vmatmul.msk.bf16.vlgmr.msra.gmra.mxu0 %vm456_vm5, %v6230_v39  ;;  %v5190_v32 = vld [vmem:[#allocation2 + $0x2e4] sm:$0xf0] }
 0xb99   :  { %1603 = vmatpush.bf16.msrb.mxu1 %v4225_v42  ;;  %1725 = vmatpush.bf16.msra.mxu0 %v4277_v46  ;;  %v4317_v42 = vor.u32 %v5161_v34, %v4314_v36  ;;  %v5173_v46 = vld [vmem:[#allocation2 + $0x25c] sm:$0xf0]  ;;  %v4434_v34 = vld [vmem:[#allocation2 + $0x2f0] sm:$0xf0] }
 0xb9b   :  { %1565 = vmatpush.bf16.msra.mxu2 %v4181_v51  ;;  %1578 = vmatpush.bf16.msra.mxu3 %v4185_v53  ;;  %v4345_v51 = vor.u32 %v5173_v46, %v4344_v45  ;;  %v4353_v53 = vor.u32 %v5174_v47, %v4352_v8  ;;  %v4384_v45 = vld [vmem:[#allocation2 + $0x280] sm:$0xf]  ;;  %v4437_v46 = vor.u32 %v5187_v33, %v4434_v34  ;;  %v4392_v47 = vld [vmem:[#allocation2 + $0x288] sm:$0xf]  ;;  %v4442_v33 = vld [vmem:[#allocation2 + $0x2f8] sm:$0xf0] }
 0xb9c   :  { %v5181_v8 = vld [vmem:[#allocation2 + $0x29c] sm:$0xf0] }
 0xb9d   :  { %1604 = vmatpush.bf16.msrb.mxu1 %v4193_v37  ;;  %1726 = vmatpush.bf16.msra.mxu0 %v4245_v54  ;;  %v5148_v37 = vld [vmem:[#allocation2 + $0x19c] sm:$0xf]  ;;  %v4488_v34 = vld [vmem:[#allocation2 + $0x340] sm:$0xf] }
 0xb9e   :  { %v4266_v54 = vld [vmem:[#allocation2 + $0x1b8] sm:$0xf0] }
 0xb9f   :  { %v4269_v62 = vor.u32 %v5148_v37, %v4266_v54  ;;  %v4393_v37 = vor.u32 %v5182_v48, %v4392_v47  ;;  %v5180_v48 = vld [vmem:[#allocation2 + $0x29c] sm:$0xf] }
 0xba6   :  { %4165 = vmatmul.msk.bf16.vlgmr.msrb.gmra.mxu2 %vm456_vm5, %v6212_v52  ;;  %4230 = vmatmul.msk.bf16.vlgmr.msrb.gmra.mxu3 %vm456_vm5, %v6230_v39  ;;  %v4241_v52 = vor.u32 %v5149_v6, %v4240_v4  ;;  %v4360_v4 = vld [vmem:[#allocation2 + $0x250] sm:$0xf]  ;;  %v4368_v6 = vld [vmem:[#allocation2 + $0x258] sm:$0xf] }
 0xba7   :  { %1616 = vmatpush.bf16.msrb.mxu2 %v4229_v63  ;;  %1712 = vmatpush.bf16.msrb.mxu3 %v4273_v0  ;;  %v4321_v63 = vor.u32 %v5166_v59, %v4320_v3  ;;  %v4333_v0 = vor.u32 %v5163_v60, %v4330_v61  ;;  %v923_v3 = vld [vmem:[#allocation4 + $0x14] sm:$0xf]  ;;  %v5186_v60 = vld [vmem:[#allocation2 + $0x2cc] sm:$0xf] }
 0xba8   :  { %4232 = vmatmul.msk.bf16.vlgmr.msra.gmra.mxu1 %vm456_vm5, %v6230_v39  ;;  %4235 = vmatmul.msk.bf16.vlgmr.msrb.gmra.mxu0 %vm456_vm5, %v6230_v39  ;;  %v4426_v61 = vld [vmem:[#allocation2 + $0x2e8] sm:$0xf0] }
 0xba9   :  { %1738 = vmatpush.bf16.msra.mxu1 %v4281_v11  ;;  %1777 = vmatpush.bf16.msrb.mxu0 %v4293_v5  ;;  %v922_v11 = vld [vmem:[#allocation4 + $0x10] sm:$0xf] }
 0xbaa   :  { %v5175_v5 = vld [vmem:[#allocation2 + $0x26c] sm:$0xf0]  ;;  %v6266_v35 = vpack.c.bf16 %v922_v11, %v922_v11  ;;  %v5192_v11 = vld [vmem:[#allocation2 + $0x2f4] sm:$0xf0] }
 0xbab   :  { %1617 = vmatpush.bf16.msrb.mxu2 %v4197_v12  ;;  %1713 = vmatpush.bf16.msrb.mxu3 %v4241_v52  ;;  %v4357_v12 = vor.u32 %v5170_v1, %v4354_v2  ;;  %v4361_v52 = vor.u32 %v5175_v5, %v4360_v4  ;;  %v5201_v1 = vld [vmem:[#allocation2 + $0x344] sm:$0xf]  ;;  %v6292_v5 = vpack.c.bf16 %v923_v3, %v923_v3 }
 0xbac   :  { %v4490_v2 = vld [vmem:[#allocation2 + $0x360] sm:$0xf0] }
 0xbad   :  { %1739 = vmatpush.bf16.msra.mxu1 %v4249_v13  ;;  %1778 = vmatpush.bf16.msrb.mxu0 %v4261_v14  ;;  %v4369_v13 = vor.u32 %v5176_v7, %v4368_v6  ;;  %v5162_v14 = vld [vmem:[#allocation2 + $0x20c] sm:$0xf]  ;;  %v4429_v6 = vor.u32 %v5186_v60, %v4426_v61  ;;  %v5198_v60 = vld [vmem:[#allocation2 + $0x324] sm:$0xf0] }
 0xbae   :  { %v4325_v23 = vor.u32 %v5162_v14, %v4322_v15  ;;  %v5178_v7 = vld [vmem:[#allocation2 + $0x28c] sm:$0xf]  ;;  %v5183_v14 = vld [vmem:[#allocation2 + $0x2ac] sm:$0xf0] }
 0xbb6   :  { %4233 = vmatmul.msk.bf16.vlgmr.msra.gmra.mxu2 %vm456_vm5, %v6230_v39  ;;  %4234 = vmatmul.msk.bf16.vlgmr.msra.gmra.mxu3 %vm456_vm5, %v6230_v39 }
 0xbb7   :  { %1751 = vmatpush.bf16.msra.mxu2 %v4285_v25  ;;  %1764 = vmatpush.bf16.msra.mxu3 %v4289_v58  ;;  %v4329_v25 = vor.u32 %v5167_v18, %v4328_v16  ;;  %v4337_v58 = vor.u32 %v5168_v20, %v4336_v19  ;;  %v4408_v18 = vld [vmem:[#allocation2 + $0x298] sm:$0xf] }
 0xbb8   :  { %4236 = vmatmul.msk.bf16.vlgmr.msrb.gmra.mxu1 %vm456_vm5, %v6230_v39  ;;  %4303 = vmatmul.msk.bf16.vlgmr.msra.gmra.mxu0 %vm456_vm5, %v6248_v24  ;;  %v5184_v19 = vld [vmem:[#allocation2 + $0x2b4] sm:$0xf0] }
 0xbb9   :  { %1790 = vmatpush.bf16.msrb.mxu1 %v4297_v26  ;;  %1912 = vmatpush.bf16.msra.mxu0 %v4349_v30  ;;  %v4389_v26 = vor.u32 %v5177_v21, %v4386_v22  ;;  %v5189_v30 = vld [vmem:[#allocation2 + $0x2dc] sm:$0xf0]  ;;  %v5193_v21 = vld [vmem:[#allocation2 + $0x304] sm:$0xf] }
 0xbba   :  { %v4458_v22 = vld [vmem:[#allocation2 + $0x320] sm:$0xf0] }
 0xbbb   :  { %1752 = vmatpush.bf16.msra.mxu2 %v4253_v38  ;;  %1765 = vmatpush.bf16.msra.mxu3 %v4257_v40  ;;  %v4373_v38 = vor.u32 %v5172_v27, %v4370_v28  ;;  %v4461_v28 = vor.u32 %v5193_v21, %v4458_v22  ;;  %v4562_v21 = vld [vmem:[#allocation2 + $0x3e0] sm:$0xf0] }
 0xbbd   :  { %1791 = vmatpush.bf16.msrb.mxu1 %v4265_v41  ;;  %1913 = vmatpush.bf16.msra.mxu0 %v4317_v42  ;;  %v4417_v41 = vor.u32 %v5189_v30, %v4416_v29  ;;  %v4425_v42 = vor.u32 %v5190_v32, %v4424_v31  ;;  %v5188_v32 = vld [vmem:[#allocation2 + $0x2dc] sm:$0xf] }
 0xbbe   :  { %v4445_v47 = vor.u32 %v5188_v32, %v4442_v33 }
 0xbc6   :  { %4237 = vmatmul.msk.bf16.vlgmr.msrb.gmra.mxu2 %vm456_vm5, %v6230_v39  ;;  %4302 = vmatmul.msk.bf16.vlgmr.msrb.gmra.mxu3 %vm456_vm5, %v6248_v24  ;;  %v4313_v39 = vor.u32 %v5165_v57, %v4312_v55 }
 0xbc7   :  { %1803 = vmatpush.bf16.msrb.mxu2 %v4301_v50  ;;  %1899 = vmatpush.bf16.msrb.mxu3 %v4345_v51  ;;  %v4402_v50 = vld [vmem:[#allocation2 + $0x2b0] sm:$0xf0]  ;;  %v4341_v51 = vor.u32 %v5164_v43, %v4338_v44  ;;  %v5206_v43 = vld [vmem:[#allocation2 + $0x364] sm:$0xf0] }
 0xbc8   :  { %4304 = vmatmul.msk.bf16.vlgmr.msra.gmra.mxu1 %vm456_vm5, %v6248_v24  ;;  %4307 = vmatmul.msk.bf16.vlgmr.msrb.gmra.mxu0 %vm456_vm5, %v6248_v24  ;;  %v4405_v55 = vor.u32 %v5179_v49, %v4402_v50  ;;  %v5203_v44 = vld [vmem:[#allocation2 + $0x354] sm:$0xf]  ;;  %v4410_v49 = vld [vmem:[#allocation2 + $0x2b8] sm:$0xf0] }
 0xbc9   :  { %1925 = vmatpush.bf16.msra.mxu1 %v4353_v53  ;;  %1964 = vmatpush.bf16.msrb.mxu0 %v4365_v56 }
 0xbcb   :  { %1804 = vmatpush.bf16.msrb.mxu2 %v4269_v62  ;;  %1900 = vmatpush.bf16.msrb.mxu3 %v4313_v39  ;;  %v4432_v62 = vld [vmem:[#allocation2 + $0x2d0] sm:$0xf] }
 0xbcd   :  { %1926 = vmatpush.bf16.msra.mxu1 %v4321_v63  ;;  %1965 = vmatpush.bf16.msrb.mxu0 %v4333_v0  ;;  %v5191_v63 = vld [vmem:[#allocation2 + $0x2ec] sm:$0xf0]  ;;  %v4440_v0 = vld [vmem:[#allocation2 + $0x2d8] sm:$0xf] }
 0xbce   :  { %v4433_v10 = vor.u32 %v5191_v63, %v4432_v62  ;;  %v4474_v62 = vld [vmem:[#allocation2 + $0x330] sm:$0xf0] }
 0xbd6   :  { %4305 = vmatmul.msk.bf16.vlgmr.msra.gmra.mxu2 %vm456_vm5, %v6248_v24  ;;  %4306 = vmatmul.msk.bf16.vlgmr.msra.gmra.mxu3 %vm456_vm5, %v6248_v24 }
 0xbd7   :  { %1938 = vmatpush.bf16.msra.mxu2 %v4357_v12  ;;  %1951 = vmatpush.bf16.msra.mxu3 %v4361_v52  ;;  %v4441_v12 = vor.u32 %v5192_v11, %v4440_v0  ;;  %v4394_v52 = vld [vmem:[#allocation2 + $0x2a8] sm:$0xf0] }
 0xbd8   :  { %4308 = vmatmul.msk.bf16.vlgmr.msrb.gmra.mxu1 %vm456_vm5, %v6248_v24  ;;  %4375 = vmatmul.msk.bf16.vlgmr.msra.gmra.mxu0 %vm456_vm5, %v6266_v35 }
 0xbd9   :  { %1977 = vmatpush.bf16.msrb.mxu1 %v4369_v13  ;;  %2099 = vmatpush.bf16.msra.mxu0 %v4421_v17  ;;  %v4400_v13 = vld [vmem:[#allocation2 + $0x290] sm:$0xf]  ;;  %v4493_v17 = vor.u32 %v5201_v1, %v4490_v2 }
 0xbdb   :  { %1939 = vmatpush.bf16.msra.mxu2 %v4325_v23  ;;  %1952 = vmatpush.bf16.msra.mxu3 %v4329_v25  ;;  %v4397_v23 = vor.u32 %v5178_v7, %v4394_v52 }
 0xbdd   :  { %1978 = vmatpush.bf16.msrb.mxu1 %v4337_v58  ;;  %2100 = vmatpush.bf16.msra.mxu0 %v4389_v26  ;;  %v4401_v58 = vor.u32 %v5183_v14, %v4400_v13  ;;  %v4409_v26 = vor.u32 %v5184_v19, %v4408_v18  ;;  %v5202_v13 = vld [vmem:[#allocation2 + $0x34c] sm:$0xf]  ;;  %v4512_v18 = vld [vmem:[#allocation2 + $0x358] sm:$0xf] }
 0xbde   :  { %v4498_v14 = vld [vmem:[#allocation2 + $0x368] sm:$0xf0]  ;;  %v5208_v19 = vld [vmem:[#allocation2 + $0x374] sm:$0xf0] }
 0xbdf   :  { %v4513_v33 = vor.u32 %v5208_v19, %v4512_v18 }
 0xbe5   :  { %v6276_v36 = vpop.f32.mrf.mxu1  ;;  %v6278_v40 = vpop.f32.mrf.mxu0 }
 0xbe6   :  { %4309 = vmatmul.msk.bf16.vlgmr.msrb.gmra.mxu2 %vm456_vm5, %v6248_v24  ;;  %4374 = vmatmul.msk.bf16.vlgmr.msrb.gmra.mxu3 %vm456_vm5, %v6266_v35  ;;  %v4385_v24 = vor.u32 %v5181_v8, %v4384_v45  ;;  %v4506_v45 = vld [vmem:[#allocation2 + $0x370] sm:$0xf0]  ;;  %v2589_v50 = vsel %vm2558_vm3, %v6276_v36, 0.0 }
 0xbe7   :  { %1990 = vmatpush.bf16.msrb.mxu2 %v4373_v38  ;;  %2086 = vmatpush.bf16.msrb.mxu3 %v4417_v41  ;;  %v5205_v41 = vld [vmem:[#allocation2 + $0x35c] sm:$0xf0]  ;;  %v5195_v36 = vld [vmem:[#allocation2 + $0x314] sm:$0xf] }
 0xbe8   :  { %4376 = vmatmul.msk.bf16.vlgmr.msra.gmra.mxu1 %vm456_vm5, %v6266_v35  ;;  %4379 = vmatmul.msk.bf16.vlgmr.msrb.gmra.mxu0 %vm456_vm5, %v6266_v35  ;;  %v4477_v1 = vor.u32 %v5195_v36, %v4474_v62  ;;  %v4514_v36 = vld [vmem:[#allocation2 + $0x378] sm:$0xf0]  ;;  %v4560_v62 = vld [vmem:[#allocation2 + $0x3c0] sm:$0xf] }
 0xbe9   :  { %v6288_v53 = vpop.f32.mrf.mxu2  ;;  %2112 = vmatpush.bf16.msra.mxu1 %v4425_v42  ;;  %v1167_v54 = vpop.f32.mrf.mxu3  ;;  %2151 = vmatpush.bf16.msrb.mxu0 %v4437_v46  ;;  %v4496_v42 = vld [vmem:[#allocation2 + $0x348] sm:$0xf]  ;;  %v2634_v46 = vsel %vm2558_vm3, %v6278_v40, 0.0  ;;  %v4509_v40 = vor.u32 %v5203_v44, %v4506_v45  ;;  %v4480_v44 = vld [vmem:[#allocation2 + $0x318] sm:$0xf] }
 0xbea   :  { %v2574_v15 = vsel %vm2558_vm3, %v1167_v54, 0.0  ;;  %v4497_v54 = vor.u32 %v5206_v43, %v4496_v42  ;;  %v2559_v2 = vsel %vm2558_vm3, %v6288_v53, 0.0  ;;  %v5217_v53 = vld [vmem:[#allocation2 + $0x3c4] sm:$0xf]  ;;  %v5200_v45 = vld [vmem:[#allocation2 + $0x334] sm:$0xf0] }
 0xbeb   :  { %1991 = vmatpush.bf16.msrb.mxu2 %v4341_v51  ;;  %2087 = vmatpush.bf16.msrb.mxu3 %v4385_v24  ;;  %v4565_v43 = vor.u32 %v5217_v53, %v4562_v21  ;;  %v4536_v53 = vld [vmem:[#allocation2 + $0x388] sm:$0xf] }
 0xbec   :  { %v5214_v21 = vld [vmem:[#allocation2 + $0x3a4] sm:$0xf0] }
 0xbed   :  { %v1182_v56 = vpop.f32.mrf.mxu1  ;;  %v1221_v57 = vpop.f32.mrf.mxu0  ;;  %2113 = vmatpush.bf16.msra.mxu1 %v4393_v37  ;;  %2152 = vmatpush.bf16.msrb.mxu0 %v4405_v55  ;;  %v4489_v37 = vor.u32 %v5205_v41, %v4488_v34  ;;  %v4456_v55 = vld [vmem:[#allocation2 + $0x300] sm:$0xf]  ;;  %v4472_v34 = vld [vmem:[#allocation2 + $0x310] sm:$0xf] }
 0xbee   :  { %v5197_v56 = vld [vmem:[#allocation2 + $0x31c] sm:$0xf0] }
 0xbf1   :  { %v1156_v59 = vpop.f32.mrf.mxu2  ;;  %v1169_v39 = vpop.f32.mrf.mxu3 }
 0xbf2   :  { %v4464_v59 = vld [vmem:[#allocation2 + $0x308] sm:$0xf]  ;;  %v4413_v39 = vor.u32 %v5180_v48, %v4410_v49 }
 0xbf3   :  { %v4465_v0 = vor.u32 %v5198_v60, %v4464_v59  ;;  %v5204_v60 = vld [vmem:[#allocation2 + $0x35c] sm:$0xf] }
 0xbf5   :  { %v6290_v4 = vpop.f32.mrf.mxu1  ;;  %v1354_v9 = vpop.f32.mrf.mxu0 }
 0xbf6   :  { %v2575_v16 = vsel %vm2558_vm3, %v1354_v9, 0.0  ;;  %4377 = vmatmul.msk.bf16.vlgmr.msra.gmra.mxu2 %vm456_vm5, %v6266_v35  ;;  %4378 = vmatmul.msk.bf16.vlgmr.msra.gmra.mxu3 %vm456_vm5, %v6266_v35 }
 0xbf7   :  { %v6298_v20 = vadd.f32 %v2575_v16, %v2574_v15  ;;  %2125 = vmatpush.bf16.msra.mxu2 %v4429_v6  ;;  %2138 = vmatpush.bf16.msra.mxu3 %v4433_v10  ;;  %v4504_v15 = vld [vmem:[#allocation2 + $0x350] sm:$0xf] }
 0xbf8   :  { %4380 = vmatmul.msk.bf16.vlgmr.msrb.gmra.mxu1 %vm456_vm5, %v6266_v35  ;;  %4447 = vmatmul.msk.bf16.vlgmr.msra.gmra.mxu0 %vm456_vm5, %v6292_v5 }
 0xbf9   :  { %v6306_v25 = vpop.f32.mrf.mxu2  ;;  %2164 = vmatpush.bf16.msrb.mxu1 %v4441_v12  ;;  %v6308_v27 = vpop.f32.mrf.mxu3  ;;  %2286 = vmatpush.bf16.msra.mxu0 %v4493_v17  ;;  %v924_v12 = vld [vmem:[#allocation4 + $0x18] sm:$0xf]  ;;  %v5207_v17 = vld [vmem:[#allocation2 + $0x36c] sm:$0xf0] }
 0xbfa   :  { %v4505_v32 = vor.u32 %v5207_v17, %v4504_v15  ;;  %v4528_v15 = vld [vmem:[#allocation2 + $0x380] sm:$0xf] }
 0xbfb   :  { %2126 = vmatpush.bf16.msra.mxu2 %v4397_v23  ;;  %2139 = vmatpush.bf16.msra.mxu3 %v4401_v58  ;;  %v6335_v23 = vpack.c.bf16 %v924_v12, %v924_v12  ;;  %v4501_v58 = vor.u32 %v5202_v13, %v4498_v14 }
 0xbfd   :  { %v1234_v29 = vpop.f32.mrf.mxu1  ;;  %v1356_v30 = vpop.f32.mrf.mxu0  ;;  %2165 = vmatpush.bf16.msrb.mxu1 %v4409_v26  ;;  %2287 = vmatpush.bf16.msra.mxu0 %v4461_v28  ;;  %v5194_v26 = vld [vmem:[#allocation2 + $0x30c] sm:$0xf] }
 0xbfe   :  { %v4466_v28 = vld [vmem:[#allocation2 + $0x328] sm:$0xf0]  ;;  %v2649_v29 = vsel %vm2558_vm3, %v6290_v4, 0.0  ;;  %v5209_v4 = vld [vmem:[#allocation2 + $0x384] sm:$0xf] }
 0xc01   :  { %v1195_v31 = vpop.f32.mrf.mxu2  ;;  %v1208_v38 = vpop.f32.mrf.mxu3 }
 0xc02   :  { %v5199_v38 = vld [vmem:[#allocation2 + $0x32c] sm:$0xf0] }
 0xc03   :  { %v4473_v49 = vor.u32 %v5199_v38, %v4472_v34 }
 0xc05   :  { %v1367_v8 = vpop.f32.mrf.mxu1  ;;  %v1406_v24 = vpop.f32.mrf.mxu0 }
 0xc06   :  { %v2590_v51 = vsel %vm2558_vm3, %v1367_v8, 0.0  ;;  %v2635_v3 = vsel %vm2558_vm3, %v1406_v24, 0.0  ;;  %4381 = vmatmul.msk.bf16.vlgmr.msrb.gmra.mxu2 %vm456_vm5, %v6266_v35  ;;  %4446 = vmatmul.msk.bf16.vlgmr.msrb.gmra.mxu3 %vm456_vm5, %v6292_v5  ;;  %v4457_v35 = vor.u32 %v5197_v56, %v4456_v55  ;;  %v4530_v8 = vld [vmem:[#allocation2 + $0x3a0] sm:$0xf0] }
 0xc07   :  { %v6315_v57 = vadd.f32 %v2590_v51, %v2589_v50  ;;  %v6320_v61 = vadd.f32 %v2635_v3, %v2634_v46  ;;  %2177 = vmatpush.bf16.msrb.mxu2 %v4445_v47  ;;  %2273 = vmatpush.bf16.msrb.mxu3 %v4489_v37  ;;  %v4469_v47 = vor.u32 %v5194_v26, %v4466_v28 }
 0xc08   :  { %4448 = vmatmul.msk.bf16.vlgmr.msra.gmra.mxu1 %vm456_vm5, %v6292_v5  ;;  %4451 = vmatmul.msk.bf16.vlgmr.msrb.gmra.mxu0 %vm456_vm5, %v6292_v5  ;;  %v4481_v50 = vor.u32 %v5200_v45, %v4480_v44  ;;  %v4533_v37 = vor.u32 %v5209_v4, %v4530_v8  ;;  %v925_v44 = vld [vmem:[#allocation4 + $0x1c] sm:$0xf]  ;;  %v5218_v45 = vld [vmem:[#allocation2 + $0x3cc] sm:$0xf]  ;;  %v4576_v8 = vld [vmem:[#allocation2 + $0x3d0] sm:$0xf] }
 0xc09   :  { %v6328_v63 = vpop.f32.mrf.mxu2  ;;  %2299 = vmatpush.bf16.msra.mxu1 %v4497_v54  ;;  %v1341_v11 = vpop.f32.mrf.mxu3  ;;  %2338 = vmatpush.bf16.msrb.mxu0 %v4509_v40  ;;  %v2619_v54 = vsel %vm2558_vm3, %v6308_v27, 0.0  ;;  %v5222_v27 = vld [vmem:[#allocation2 + $0x3e4] sm:$0xf0]  ;;  %v4570_v4 = vld [vmem:[#allocation2 + $0x3e8] sm:$0xf0] }
 0xc0a   :  { %v2560_v6 = vsel %vm2558_vm3, %v1341_v11, 0.0  ;;  %v5219_v11 = vld [vmem:[#allocation2 + $0x3d4] sm:$0xf] }
 0xc0b   :  { %v6333_v7 = vadd.f32 %v2560_v6, %v2559_v2  ;;  %2178 = vmatpush.bf16.msrb.mxu2 %v4413_v39  ;;  %2274 = vmatpush.bf16.msrb.mxu3 %v4457_v35  ;;  %v5221_v35 = vld [vmem:[#allocation2 + $0x3dc] sm:$0xf0]  ;;  %v4517_v6 = vor.u32 %v5204_v60, %v4514_v36  ;;  %v5215_v60 = vld [vmem:[#allocation2 + $0x3ac] sm:$0xf0] }
 0xc0c   :  { %v4561_v13 = vor.u32 %v5221_v35, %v4560_v62  ;;  %v5216_v35 = vld [vmem:[#allocation2 + $0x3b4] sm:$0xf0] }
 0xc0d   :  { %v1369_v9 = vpop.f32.mrf.mxu1  ;;  %v1408_v10 = vpop.f32.mrf.mxu0  ;;  %2300 = vmatpush.bf16.msra.mxu1 %v4465_v0  ;;  %2339 = vmatpush.bf16.msrb.mxu0 %v4477_v1  ;;  %v4568_v0 = vld [vmem:[#allocation2 + $0x3c8] sm:$0xf]  ;;  %v4578_v1 = vld [vmem:[#allocation2 + $0x3f0] sm:$0xf0] }
 0xc0e   :  { %v5196_v9 = vld [vmem:[#allocation2 + $0x31c] sm:$0xf]  ;;  %v4569_v14 = vor.u32 %v5222_v27, %v4568_v0  ;;  %v4581_v19 = vor.u32 %v5219_v11, %v4578_v1 }
 0xc0f   :  { %v4482_v10 = vld [vmem:[#allocation2 + $0x338] sm:$0xf0] }
 0xc11   :  { %v1247_v52 = vpop.f32.mrf.mxu2  ;;  %v1343_v16 = vpop.f32.mrf.mxu3 }
 0xc12   :  { %v5213_v16 = vld [vmem:[#allocation2 + $0x39c] sm:$0xf0] }
 0xc13   :  { %v4529_v28 = vor.u32 %v5213_v16, %v4528_v15  ;;  %v4586_v15 = vld [vmem:[#allocation2 + $0x3f8] sm:$0xf0] }
 0xc15   :  { %v1419_v22 = vpop.f32.mrf.mxu1  ;;  %v1541_v31 = vpop.f32.mrf.mxu0 }
 0xc16   :  { %v2650_v30 = vsel %vm2558_vm3, %v1419_v22, 0.0  ;;  %v2577_v42 = vsel %vm2558_vm3, %v1541_v31, 0.0  ;;  %4449 = vmatmul.msk.bf16.vlgmr.msra.gmra.mxu2 %vm456_vm5, %v6292_v5  ;;  %4450 = vmatmul.msk.bf16.vlgmr.msra.gmra.mxu3 %vm456_vm5, %v6292_v5 }
 0xc17   :  { %v6340_v41 = vadd.f32 %v2650_v30, %v2649_v29  ;;  %v6346_v46 = vadd.f32 %v2577_v42, %v6298_v20  ;;  %2312 = vmatpush.bf16.msra.mxu2 %v4501_v58  ;;  %2325 = vmatpush.bf16.msra.mxu3 %v4505_v32  ;;  %v2604_v20 = vsel %vm2558_vm3, %v6306_v25, 0.0  ;;  %v4546_v58 = vld [vmem:[#allocation2 + $0x3b0] sm:$0xf0]  ;;  %v4537_v29 = vor.u32 %v5214_v21, %v4536_v53 }
 0xc18   :  { %4452 = vmatmul.msk.bf16.vlgmr.msrb.gmra.mxu1 %vm456_vm5, %v6292_v5  ;;  %4519 = vmatmul.msk.bf16.vlgmr.msra.gmra.mxu0 %vm456_vm5, %v6335_v23 }
 0xc19   :  { %v1380_v48 = vpop.f32.mrf.mxu2  ;;  %2351 = vmatpush.bf16.msrb.mxu1 %v4513_v33  ;;  %v1393_v24 = vpop.f32.mrf.mxu3  ;;  %2473 = vmatpush.bf16.msra.mxu0 %v4565_v43 }
 0xc1a   :  { %v2605_v51 = vsel %vm2558_vm3, %v1380_v48, 0.0  ;;  %v2620_v56 = vsel %vm2558_vm3, %v1393_v24, 0.0  ;;  %v5223_v48 = vld [vmem:[#allocation2 + $0x3ec] sm:$0xf0]  ;;  %v5210_v24 = vld [vmem:[#allocation2 + $0x38c] sm:$0xf] }
 0xc1b   :  { %v6359_v55 = vadd.f32 %v2605_v51, %v2604_v20  ;;  %v6362_v3 = vadd.f32 %v2620_v56, %v2619_v54  ;;  %2313 = vmatpush.bf16.msra.mxu2 %v4469_v47  ;;  %2326 = vmatpush.bf16.msra.mxu3 %v4473_v49  ;;  %v4584_v49 = vld [vmem:[#allocation2 + $0x3d8] sm:$0xf]  ;;  %v6389_v51 = vpack.c.bf16 %v925_v44, %v925_v44 }
 0xc1d   :  { %v1421_v40 = vpop.f32.mrf.mxu1  ;;  %v1543_v59 = vpop.f32.mrf.mxu0  ;;  %2352 = vmatpush.bf16.msrb.mxu1 %v4481_v50  ;;  %2474 = vmatpush.bf16.msra.mxu0 %v4533_v37  ;;  %v5224_v50 = vld [vmem:[#allocation2 + $0x3f4] sm:$0xf0]  ;;  %v4538_v37 = vld [vmem:[#allocation2 + $0x3a8] sm:$0xf0] }
 0xc1e   :  { %v4577_v40 = vor.u32 %v5223_v48, %v4576_v8  ;;  %v4585_v59 = vor.u32 %v5224_v50, %v4584_v49 }
 0xc21   :  { %v1382_v25 = vpop.f32.mrf.mxu2  ;;  %v1395_v39 = vpop.f32.mrf.mxu3 }
 0xc22   :  { %v4544_v25 = vld [vmem:[#allocation2 + $0x390] sm:$0xf]  ;;  %v4552_v39 = vld [vmem:[#allocation2 + $0x398] sm:$0xf] }
 0xc23   :  { %v4545_v11 = vor.u32 %v5215_v60, %v4544_v25  ;;  %v4553_v1 = vor.u32 %v5216_v35, %v4552_v39 }
 0xc25   :  { %v1554_v2 = vpop.f32.mrf.mxu1  ;;  %v1593_v52 = vpop.f32.mrf.mxu0 }
 0xc26   :  { %v2592_v12 = vsel %vm2558_vm3, %v1554_v2, 0.0  ;;  %v2637_v18 = vsel %vm2558_vm3, %v1593_v52, 0.0  ;;  %4453 = vmatmul.msk.bf16.vlgmr.msrb.gmra.mxu2 %vm456_vm5, %v6292_v5  ;;  %4518 = vmatmul.msk.bf16.vlgmr.msrb.gmra.mxu3 %vm456_vm5, %v6335_v23  ;;  %v4485_v5 = vor.u32 %v5196_v9, %v4482_v10 }
 0xc27   :  { %v6366_v17 = vadd.f32 %v2592_v12, %v6315_v57  ;;  %v6372_v22 = vadd.f32 %v2637_v18, %v6320_v61  ;;  %v5211_v57 = vld [vmem:[#allocation2 + $0x394] sm:$0xf]  ;;  %2364 = vmatpush.bf16.msrb.mxu2 %v4517_v6  ;;  %2460 = vmatpush.bf16.msrb.mxu3 %v4561_v13  ;;  %v2665_v61 = vsel %vm2664_vm4, %v6328_v63, 0.0 }
 0xc28   :  { %4520 = vmatmul.msk.bf16.vlgmr.msra.gmra.mxu1 %vm456_vm5, %v6335_v23  ;;  %4523 = vmatmul.msk.bf16.vlgmr.msrb.gmra.mxu0 %vm456_vm5, %v6335_v23  ;;  %v4549_v32 = vor.u32 %v5211_v57, %v4546_v58  ;;  %v5212_v57 = vld [vmem:[#allocation2 + $0x39c] sm:$0xf] }
 0xc29   :  { %v1432_v26 = vpop.f32.mrf.mxu2  ;;  %2486 = vmatpush.bf16.msra.mxu1 %v4569_v14  ;;  %v1528_v31 = vpop.f32.mrf.mxu3  ;;  %2525 = vmatpush.bf16.msrb.mxu0 %v4581_v19  ;;  %v5220_v14 = vld [vmem:[#allocation2 + $0x3dc] sm:$0xf] }
 0xc2a   :  { %v2666_v30 = vsel %vm2664_vm4, %v1432_v26, 0.0  ;;  %v2562_v34 = vsel %vm2558_vm3, %v1528_v31, 0.0  ;;  %v4589_v19 = vor.u32 %v5220_v14, %v4586_v15 }
 0xc2b   :  { %v6383_v33 = vadd.f32 %v2666_v30, %v2665_v61  ;;  %v6387_v38 = vadd.f32 %v2562_v34, %v6333_v7  ;;  %2365 = vmatpush.bf16.msrb.mxu2 %v4485_v5  ;;  %2461 = vmatpush.bf16.msrb.mxu3 %v4529_v28  ;;  %v4573_v7 = vor.u32 %v5218_v45, %v4570_v4 }
 0xc2d   :  { %v1556_v42 = vpop.f32.mrf.mxu1  ;;  %v1595_v43 = vpop.f32.mrf.mxu0  ;;  %2487 = vmatpush.bf16.msra.mxu1 %v4537_v29  ;;  %2526 = vmatpush.bf16.msrb.mxu0 %v4549_v32 }
 0xc31   :  { %v1434_v63 = vpop.f32.mrf.mxu2  ;;  %v1530_v47 = vpop.f32.mrf.mxu3 }
 0xc35   :  { %v1606_v20 = vpop.f32.mrf.mxu1  ;;  %v1728_v56 = vpop.f32.mrf.mxu0 }
 0xc36   :  { %v2652_v54 = vsel %vm2558_vm3, %v1606_v20, 0.0  ;;  %v2579_v62 = vsel %vm2558_vm3, %v1728_v56, 0.0  ;;  %4521 = vmatmul.msk.bf16.vlgmr.msra.gmra.mxu2 %vm456_vm5, %v6335_v23  ;;  %4522 = vmatmul.msk.bf16.vlgmr.msra.gmra.mxu3 %vm456_vm5, %v6335_v23 }
 0xc37   :  { %v2653_v36 = vadd.f32 %v2652_v54, %v6340_v41  ;;  %v2580_v0 = vadd.f32 %v2579_v62, %v6346_v46  ;;  %2499 = vmatpush.bf16.msra.mxu2 %v4573_v7  ;;  %v4541_v41 = vor.u32 %v5210_v24, %v4538_v37  ;;  %2512 = vmatpush.bf16.msra.mxu3 %v4577_v40 }
 0xc38   :  { %4524 = vmatmul.msk.bf16.vlgmr.msrb.gmra.mxu1 %vm456_vm5, %v6335_v23  ;;  %4591 = vmatmul.msk.bf16.vlgmr.msra.gmra.mxu0 %vm456_vm5, %v6389_v51 }
 0xc39   :  { %v1567_v27 = vpop.f32.mrf.mxu2  ;;  %2538 = vmatpush.bf16.msrb.mxu1 %v4585_v59  ;;  %v1580_v6 = vpop.f32.mrf.mxu3 }
 0xc3a   :  { %v2607_v2 = vsel %vm2558_vm3, %v1567_v27, 0.0  ;;  %v2622_v9 = vsel %vm2558_vm3, %v1580_v6, 0.0 }
 0xc3b   :  { %v2608_v46 = vadd.f32 %v2607_v2, %v6359_v55  ;;  %v2623_v10 = vadd.f32 %v2622_v9, %v6362_v3  ;;  %2500 = vmatpush.bf16.msra.mxu2 %v4541_v41  ;;  %2513 = vmatpush.bf16.msra.mxu3 %v4545_v11  ;;  %v4554_v55 = vld [vmem:[#allocation2 + $0x3b8] sm:$0xf0]  ;;  %v5302_v11 = vld [vmem:[%s6946_s9 + $0x78] sm:$0xff]  ;;  %v5301_v2 = vld [vmem:[%s6946_s9 + $0x70] sm:$0xff] }
 0xc3c   :  { %v4557_v26 = vor.u32 %v5212_v57, %v4554_v55  ;;  %3398 = vmatpush.bf16.msra.mxu0 %v5302_v11  ;;  %v5331_v11 = vld [vmem:[%s6946_s9 + $0x160] sm:$0xff] }
 0xc3d   :  { %v1608_v12 = vpop.f32.mrf.mxu1  ;;  %v1730_v52 = vpop.f32.mrf.mxu0  ;;  %2539 = vmatpush.bf16.msrb.mxu1 %v4553_v1 }
 0xc3e   :  { %v5294_v12 = vld [vmem:[%s6946_s9 + $0x38] sm:$0xff]  ;;  %v5300_v52 = vld [vmem:[%s6946_s9 + $0x68] sm:$0xff] }
 0xc40   :  { %3399 = vmatpush.bf16.msra.mxu0 %v5301_v2  ;;  %v5303_v2 = vld [vmem:[%s6946_s9 + $0x80] sm:$0xff] }
 0xc41   :  { %v1569_v13 = vpop.f32.mrf.mxu2  ;;  %v1582_v16 = vpop.f32.mrf.mxu3 }
 0xc44   :  { %3400 = vmatpush.bf16.msra.mxu0 %v5300_v52  ;;  %v5330_v52 = vld [vmem:[%s6946_s9 + $0x158] sm:$0xff] }
 0xc45   :  { %v1741_v18 = vpop.f32.mrf.mxu1  ;;  %v1780_v21 = vpop.f32.mrf.mxu0 }
 0xc46   :  { %v2594_v53 = vsel %vm2558_vm3, %v1741_v18, 0.0  ;;  %v2639_v3 = vsel %vm2558_vm3, %v1780_v21, 0.0  ;;  %4525 = vmatmul.msk.bf16.vlgmr.msrb.gmra.mxu2 %vm456_vm5, %v6335_v23  ;;  %4590 = vmatmul.msk.bf16.vlgmr.msrb.gmra.mxu3 %vm456_vm5, %v6389_v51 }
 0xc47   :  { %v2595_v58 = vadd.f32 %v2594_v53, %v6366_v17  ;;  %v2640_v5 = vadd.f32 %v2639_v3, %v6372_v22  ;;  %2551 = vmatpush.bf16.msrb.mxu2 %v4589_v19  ;;  %3385 = vmatpush.bf16.msrb.mxu3 %v5294_v12  ;;  %v5293_v19 = vld [vmem:[%s6946_s9 + $0x30] sm:$0xff]  ;;  %v5299_v53 = vld [vmem:[%s6946_s9 + $0x60] sm:$0xff]  ;;  %v5298_v3 = vld [vmem:[%s6946_s9 + $0x58] sm:$0xff] }
 0xc48   :  { %4592 = vmatmul.msk.bf16.vlgmr.msra.gmra.mxu1 %vm456_vm5, %v6389_v51  ;;  %4595 = vmatmul.msk.bf16.vlgmr.msrb.gmra.mxu0 %vm456_vm5, %v6389_v51  ;;  %v5324_v12 = vld [vmem:[%s6946_s9 + $0x128] sm:$0xff] }
 0xc49   :  { %v1619_v28 = vpop.f32.mrf.mxu2  ;;  %v1715_v29 = vpop.f32.mrf.mxu3  ;;  %3401 = vmatpush.bf16.msra.mxu0 %v5299_v53  ;;  %v5341_v53 = vld [vmem:[%s6946_s9 + $0x1b0] sm:$0xff] }
 0xc4a   :  { %v2668_v17 = vsel %vm2664_vm4, %v1619_v28, 0.0  ;;  %v2564_v23 = vsel %vm2558_vm3, %v1715_v29, 0.0  ;;  %v5297_v29 = vld [vmem:[%s6946_s9 + $0x50] sm:$0xff] }
 0xc4b   :  { %v2669_v61 = vadd.f32 %v2668_v17, %v6383_v33  ;;  %v2565_v22 = vadd.f32 %v2564_v23, %v6387_v38  ;;  %2552 = vmatpush.bf16.msrb.mxu2 %v4557_v26  ;;  %3386 = vmatpush.bf16.msrb.mxu3 %v5293_v19  ;;  %v5291_v17 = vld [vmem:[%s6946_s9 + $0x20] sm:$0xff]  ;;  %v5329_v19 = vld [vmem:[%s6946_s9 + $0x150] sm:$0xff] }
 0xc4d   :  { %v1743_v30 = vpop.f32.mrf.mxu1  ;;  %v1782_v31 = vpop.f32.mrf.mxu0  ;;  %3402 = vmatpush.bf16.msra.mxu0 %v5298_v3 }
 0xc4e   :  { %v5290_v30 = vld [vmem:[%s6946_s9 + $0x18] sm:$0xff]  ;;  %v5296_v31 = vld [vmem:[%s6946_s9 + $0x48] sm:$0xff] }
 0xc51   :  { %v1621_v32 = vpop.f32.mrf.mxu2  ;;  %v1717_v34 = vpop.f32.mrf.mxu3  ;;  %3403 = vmatpush.bf16.msra.mxu0 %v5297_v29  ;;  %v3002_v29 = vld [vmem:[%s6946_s9 + $0x1f0] sm:$0xf] }
 0xc52   :  { %v5308_v32 = vld [vmem:[%s6946_s9 + $0xa8] sm:$0xff] }
 0xc55   :  { %v1793_v42 = vpop.f32.mrf.mxu1  ;;  %v1915_v44 = vpop.f32.mrf.mxu0  ;;  %3404 = vmatpush.bf16.msra.mxu0 %v5296_v31  ;;  %v5321_v31 = vld [vmem:[%s6946_s9 + $0x110] sm:$0xff] }
 0xc56   :  { %v2654_v43 = vsel %vm2558_vm3, %v1793_v42, 0.0  ;;  %v2581_v45 = vsel %vm2558_vm3, %v1915_v44, 0.0  ;;  %4593 = vmatmul.msk.bf16.vlgmr.msra.gmra.mxu2 %vm456_vm5, %v6389_v51  ;;  %4594 = vmatmul.msk.bf16.vlgmr.msra.gmra.mxu3 %vm456_vm5, %v6389_v51 }
 0xc57   :  { %v2655_v63 = vadd.f32 %v2654_v43, %v2653_v36  ;;  %v6427_v33 = vadd.f32 %v2581_v45, %v2580_v0  ;;  %v5295_v45 = vld [vmem:[%s6946_s9 + $0x40] sm:$0xff] }
 0xc58   :  { %4596 = vmatmul.msk.bf16.vlgmr.msrb.gmra.mxu1 %vm456_vm5, %v6389_v51 }
 0xc59   :  { %v1754_v38 = vpop.f32.mrf.mxu2  ;;  %v1767_v8 = vpop.f32.mrf.mxu3  ;;  %3405 = vmatpush.bf16.msra.mxu0 %v5295_v45 }
 0xc5a   :  { %v2609_v4 = vsel %vm2558_vm3, %v1754_v38, 0.0  ;;  %v2624_v48 = vsel %vm2558_vm3, %v1767_v8, 0.0  ;;  %v5307_v38 = vld [vmem:[%s6946_s9 + $0xa0] sm:$0xff]  ;;  %v5318_v8 = vld [vmem:[%s6946_s9 + $0xf8] sm:$0xff] }
 0xc5b   :  { %v2610_v47 = vadd.f32 %v2609_v4, %v2608_v46  ;;  %v2625_v49 = vadd.f32 %v2624_v48, %v2623_v10  ;;  %3424 = vmatpush.bf16.msra.mxu2 %v5318_v8  ;;  %v5320_v8 = vld [vmem:[%s6946_s9 + $0x108] sm:$0xff] }
 0xc5d   :  { %v1795_v50 = vpop.f32.mrf.mxu1  ;;  %v1917_v20 = vpop.f32.mrf.mxu0 }
 0xc5e   :  { %v5306_v50 = vld [vmem:[%s6946_s9 + $0x98] sm:$0xff]  ;;  %v5317_v20 = vld [vmem:[%s6946_s9 + $0xf0] sm:$0xff] }
 0xc5f   :  { %3425 = vmatpush.bf16.msra.mxu2 %v5317_v20  ;;  %v5319_v20 = vld [vmem:[%s6946_s9 + $0x100] sm:$0xff] }
 0xc61   :  { %v1756_v7 = vpop.f32.mrf.mxu2  ;;  %v1769_v24 = vpop.f32.mrf.mxu3 }
 0xc62   :  { %v5333_v7 = vld [vmem:[%s6946_s9 + $0x170] sm:$0xff] }
 0xc65   :  { %v1928_v37 = vpop.f32.mrf.mxu1  ;;  %v1967_v56 = vpop.f32.mrf.mxu0 }
 0xc66   :  { %v2596_v54 = vsel %vm2558_vm3, %v1928_v37, 0.0  ;;  %v2641_v59 = vsel %vm2558_vm3, %v1967_v56, 0.0  ;;  %4597 = vmatmul.msk.bf16.vlgmr.msrb.gmra.mxu2 %vm456_vm5, %v6389_v51  ;;  %v5305_v56 = vld [vmem:[%s6946_s9 + $0x90] sm:$0xff]  ;;  %vm3378_vm5 = vcmask 850944  }
 0xc67   :  { %v6436_v40 = vadd.f32 %v2596_v54, %v2595_v58  ;;  %v6441_v25 = vadd.f32 %v2641_v59, %v2640_v5  ;;  %v5292_v58 = vld [vmem:[%s6946_s9 + $0x28] sm:$0xff]  ;;  %v5310_v5 = vld [vmem:[%s6946_s9 + $0xb8] sm:$0xff]  ;;  %v5287_v54 = vld [vmem:[%s6946_s9] sm:$0xff] }
 0xc68   :  { %3411 = vmatpush.bf16.msra.mxu1 %v5310_v5  ;;  %3387 = vmatpush.bf16.msrb.mxu3 %v5292_v58  ;;  %v5316_v59 = vld [vmem:[%s6946_s9 + $0xe8] sm:$0xff]  ;;  %v5322_v5 = vld [vmem:[%s6946_s9 + $0x118] sm:$0xff] }
 0xc69   :  { %v1806_v60 = vpop.f32.mrf.mxu2  ;;  %v1902_v62 = vpop.f32.mrf.mxu3  ;;  %3426 = vmatpush.bf16.msra.mxu2 %v5316_v59  ;;  %v5312_v58 = vld [vmem:[%s6946_s9 + $0xc8] sm:$0xff] }
 0xc6a   :  { %v2670_v36 = vsel %vm2664_vm4, %v1806_v60, 0.0  ;;  %v2566_v35 = vsel %vm2558_vm3, %v1902_v62, 0.0  ;;  %v5332_v62 = vld [vmem:[%s6946_s9 + $0x168] sm:$0xff] }
 0xc6b   :  { %v2671_v39 = vadd.f32 %v2670_v36, %v2669_v61  ;;  %v6445_v0 = vadd.f32 %v2566_v35, %v2565_v22  ;;  %v5309_v61 = vld [vmem:[%s6946_s9 + $0xb0] sm:$0xff]  ;;  %v5326_v36 = vld [vmem:[%s6946_s9 + $0x138] sm:$0xff]  ;;  %v5304_v35 = vld [vmem:[%s6946_s9 + $0x88] sm:$0xff] }
 0xc6c   :  { %3388 = vmatpush.bf16.msrb.mxu3 %v5291_v17  ;;  %3412 = vmatpush.bf16.msra.mxu1 %v5309_v61  ;;  %v3252_v61 = vunpack.c.l.b16 %v3002_v29 }
 0xc6d   :  { %v1930_v41 = vpop.f32.mrf.mxu1  ;;  %v1969_v27 = vpop.f32.mrf.mxu0 }
 0xc6e   :  { %v5315_v41 = vld [vmem:[%s6946_s9 + $0xe0] sm:$0xff]  ;;  %v5325_v27 = vld [vmem:[%s6946_s9 + $0x130] sm:$0xff] }
 0xc6f   :  { %3427 = vmatpush.bf16.msra.mxu2 %v5315_v41 }
 0xc70   :  { %3389 = vmatpush.bf16.msrb.mxu3 %v5290_v30  ;;  %3413 = vmatpush.bf16.msra.mxu1 %v5308_v32  ;;  %v5311_v30 = vld [vmem:[%s6946_s9 + $0xc0] sm:$0xff] }
 0xc71   :  { %v1808_v1 = vpop.f32.mrf.mxu2  ;;  %v1904_v51 = vpop.f32.mrf.mxu3  ;;  %v5327_v32 = vld [vmem:[%s6946_s9 + $0x140] sm:$0xff] }
 0xc74   :  { %3414 = vmatpush.bf16.msra.mxu1 %v5307_v38 }
 0xc75   :  { %v1980_v6 = vpop.f32.mrf.mxu1  ;;  %v6454_v9 = vpop.f32.mrf.mxu0 }
 0xc76   :  { %v2656_v46 = vsel %vm2558_vm3, %v1980_v6, 0.0  ;;  %v5314_v6 = vld [vmem:[%s6946_s9 + $0xd8] sm:$0xff] }
 0xc77   :  { %v6456_v10 = vadd.f32 %v2656_v46, %v2655_v63  ;;  %v5289_v63 = vld [vmem:[%s6946_s9 + $0x10] sm:$0xff]  ;;  %3428 = vmatpush.bf16.msra.mxu2 %v5314_v6 }
 0xc78   :  { %3390 = vmatpush.bf16.msrb.mxu3 %v5289_v63  ;;  %3415 = vmatpush.bf16.msra.mxu1 %v5306_v50  ;;  %v2583_v50 = vsel %vm2558_vm3, %v6454_v9, 0.0  ;;  %v6662_v9 = vld [vmem:[%s6944_s7] sm:$0xff]  ;;  %v5345_v6 = vld [vmem:[%s6946_s9 + $0x1d0] sm:$0xff] }
 0xc79   :  { %v1941_v13 = vpop.f32.mrf.mxu2  ;;  %v1954_v15 = vpop.f32.mrf.mxu3  ;;  %v2584_v59 = vadd.f32 %v2583_v50, %v6427_v33 }
 0xc7a   :  { %v2611_v14 = vsel %vm2558_vm3, %v1941_v13, 0.0  ;;  %v2626_v18 = vsel %vm2558_vm3, %v1954_v15, 0.0  ;;  %v5342_v13 = vld [vmem:[%s6946_s9 + $0x1b8] sm:$0xff]  ;;  %v5313_v15 = vld [vmem:[%s6946_s9 + $0xd0] sm:$0xff] }
 0xc7b   :  { %v6465_v16 = vadd.f32 %v2611_v14, %v2610_v47  ;;  %v6474_v21 = vadd.f32 %v2626_v18, %v2625_v49  ;;  %v5334_v47 = vld [vmem:[%s6946_s9 + $0x178] sm:$0xff]  ;;  %v5288_v49 = vld [vmem:[%s6946_s9 + $0x8] sm:$0xff]  ;;  %v5323_v18 = vld [vmem:[%s6946_s9 + $0x120] sm:$0xff]  ;;  %3429 = vmatpush.bf16.msra.mxu2 %v5313_v15 }
 0xc7c   :  { %3450 = vmatpush.bf16.msrb.mxu0 %v5334_v47  ;;  %3391 = vmatpush.bf16.msrb.mxu3 %v5288_v49  ;;  %v5338_v47 = vld [vmem:[%s6946_s9 + $0x198] sm:$0xff] }
 0xc7d   :  { %v1982_v57 = vpop.f32.mrf.mxu1  ;;  %v2104_v55 = vpop.f32.mrf.mxu0  ;;  %3416 = vmatpush.bf16.msra.mxu1 %v5305_v56 }
 0xc7f   :  { %3430 = vmatpush.bf16.msra.mxu2 %v5312_v58  ;;  %v5343_v58 = vld [vmem:[%s6946_s9 + $0x1c0] sm:$0xff] }
 0xc80   :  { %3451 = vmatpush.bf16.msrb.mxu0 %v5333_v7  ;;  %3392 = vmatpush.bf16.msrb.mxu3 %v5287_v54  ;;  %v5337_v7 = vld [vmem:[%s6946_s9 + $0x190] sm:$0xff] }
 0xc81   :  { %v1943_v26 = vpop.f32.mrf.mxu2  ;;  %v1956_v28 = vpop.f32.mrf.mxu3  ;;  %3417 = vmatpush.bf16.msra.mxu1 %v5304_v35 }
 0xc82   :  { %v5328_v26 = vld [vmem:[%s6946_s9 + $0x148] sm:$0xff] }
 0xc83   :  { %v5340_v28 = vld [vmem:[%s6946_s9 + $0x1a8] sm:$0xff]  ;;  %3431 = vmatpush.bf16.msra.mxu2 %v5311_v30 }
 0xc84   :  { %3437 = vmatpush.bf16.msra.mxu3 %v5326_v36  ;;  %3452 = vmatpush.bf16.msrb.mxu0 %v5332_v62  ;;  %v5336_v62 = vld [vmem:[%s6946_s9 + $0x188] sm:$0xff] }
 0xc85   :  { %v6494_v23 = vpop.f32.mrf.mxu1  ;;  %v6496_v22 = vpop.f32.mrf.mxu0  ;;  %3418 = vmatpush.bf16.msra.mxu1 %v5303_v2  ;;  %v5335_v2 = vld [vmem:[%s6946_s9 + $0x180] sm:$0xff] }
 0xc88   :  { %3438 = vmatpush.bf16.msra.mxu3 %v5325_v27  ;;  %3453 = vmatpush.bf16.msrb.mxu0 %v5331_v11  ;;  %v2683_v27 = vperm.slane %v6662_v9, 1 }
 0xc89   :  { %v1993_v34 = vpop.f32.mrf.mxu2  ;;  %v6508_v43 = vpop.f32.mrf.mxu3  ;;  %3463 = vmatpush.bf16.msrb.mxu1 %v5342_v13  ;;  %v5240_v13 = vld [vmem:[%s6945_s8 + $0x78] sm:$0xff] }
 0xc8a   :  { %v2672_v42 = vsel %vm2664_vm4, %v1993_v34, 0.0  ;;  %v5339_v34 = vld [vmem:[%s6946_s9 + $0x1a0] sm:$0xff] }
 0xc8b   :  { %v6510_v44 = vadd.f32 %v2672_v42, %v2671_v39  ;;  %v3315_v42 = vpack.c.b16 %v3252_v61, %v3252_v61 }
 0xc8c   :  { %3439 = vmatpush.bf16.msra.mxu3 %v5324_v12  ;;  %3454 = vmatpush.bf16.msrb.mxu0 %v5330_v52 }
 0xc8d   :  { %v2117_v4 = vpop.f32.mrf.mxu1  ;;  %v2156_v48 = vpop.f32.mrf.mxu0  ;;  %3464 = vmatpush.bf16.msrb.mxu1 %v5341_v53  ;;  %v3383_v38 = vsel %vm2558_vm3, %v3315_v42, 0  ;;  %v5239_v53 = vld [vmem:[%s6945_s8 + $0x70] sm:$0xff]  ;;  %v2687_v42 = vperm.slane %v6662_v9, 5 }
 0xc8e   :  { %3477 = vmatpush.bf16.msrb.mxu2 %v3383_v38  ;;  %v5348_v48 = vld [vmem:[%s6946_s9 + $0x1e8] sm:$0xff] }
 0xc90   :  { %3440 = vmatpush.bf16.msra.mxu3 %v5323_v18  ;;  %3455 = vmatpush.bf16.msrb.mxu0 %v5329_v19  ;;  %v5344_v18 = vld [vmem:[%s6946_s9 + $0x1c8] sm:$0xff] }
 0xc91   :  { %v1995_v24 = vpop.f32.mrf.mxu2  ;;  %v2091_v37 = vpop.f32.mrf.mxu3  ;;  %3465 = vmatpush.bf16.msrb.mxu1 %v5340_v28 }
 0xc92   :  { %3478 = vmatpush.bf16.msrb.mxu2 %v5348_v48  ;;  %v5347_v24 = vld [vmem:[%s6946_s9 + $0x1e0] sm:$0xff] }
 0xc94   :  { %3441 = vmatpush.bf16.msra.mxu3 %v5322_v5  ;;  %3456 = vmatpush.bf16.msrb.mxu0 %v5328_v26 }
 0xc95   :  { %v6548_v60 = vpop.f32.mrf.mxu1  ;;  %v6556_v39 = vpop.f32.mrf.mxu0  ;;  %3466 = vmatpush.bf16.msrb.mxu1 %v5339_v34 }
 0xc96   :  { %v2585_v54 = vsel %vm2558_vm3, %v6556_v39, 0.0  ;;  %3479 = vmatpush.bf16.msrb.mxu2 %v5347_v24  ;;  %v5346_v39 = vld [vmem:[%s6946_s9 + $0x1d8] sm:$0xff] }
 0xc97   :  { %v2586_v35 = vadd.f32 %v2585_v54, %v2584_v59  ;;  %v2682_v54 = vperm.slane %v6662_v9, 0 }
 0xc98   :  { %3442 = vmatpush.bf16.msra.mxu3 %v5321_v31  ;;  %3457 = vmatpush.bf16.msrb.mxu0 %v5327_v32  ;;  %v2684_v32 = vperm.slane %v6662_v9, 2 }
 0xc99   :  { %v6570_v1 = vpop.f32.mrf.mxu2  ;;  %v6572_v51 = vpop.f32.mrf.mxu3  ;;  %3467 = vmatpush.bf16.msrb.mxu1 %v5338_v47 }
 0xc9a   :  { %3480 = vmatpush.bf16.msrb.mxu2 %v5346_v39 }
 0xc9c   :  { %3443 = vmatpush.bf16.msra.mxu3 %v5320_v8 }
 0xc9d   :  { %v2169_v46 = vpop.f32.mrf.mxu1  ;;  %v2291_v14 = vpop.f32.mrf.mxu0  ;;  %3468 = vmatpush.bf16.msrb.mxu1 %v5337_v7 }
 0xc9e   :  { %3481 = vmatpush.bf16.msrb.mxu2 %v5345_v6 }
 0xca0   :  { %3444 = vmatpush.bf16.msra.mxu3 %v5319_v20  ;;  %v5248_v20 = vld [vmem:[%s6945_s8 + $0xb8] sm:$0xff] }
 0xca1   :  { %v2130_v57 = vpop.f32.mrf.mxu2  ;;  %v2143_v55 = vpop.f32.mrf.mxu3  ;;  %3469 = vmatpush.bf16.msrb.mxu1 %v5336_v62 }
 0xca2   :  { %v2598_v57 = vsel %vm2558_vm3, %v6494_v23, 0.0  ;;  %v2643_v55 = vsel %vm2558_vm3, %v6496_v22, 0.0  ;;  %3482 = vmatpush.bf16.msrb.mxu2 %v5344_v18  ;;  %v5238_v23 = vld [vmem:[%s6945_s8 + $0x68] sm:$0xff] }
 0xca3   :  { %v2599_v28 = vadd.f32 %v2598_v57, %v6436_v40  ;;  %v2644_v22 = vadd.f32 %v2643_v55, %v6441_v25  ;;  %v5237_v25 = vld [vmem:[%s6945_s8 + $0x60] sm:$0xff]  ;;  %v2688_v55 = vperm.slane %v6662_v9, 6 }
 0xca5   :  { %v6604_v3 = vpop.f32.mrf.mxu1  ;;  %v6615_v17 = vpop.f32.mrf.mxu0  ;;  %3470 = vmatpush.bf16.msrb.mxu1 %v5335_v2  ;;  %v5232_v2 = vld [vmem:[%s6945_s8 + $0x38] sm:$0xff] }
 0xca6   :  { %v2600_v5 = vsel %vm2558_vm3, %v6604_v3, 0.0  ;;  %v2645_v29 = vsel %vm2558_vm3, %v6615_v17, 0.0  ;;  %3483 = vmatpush.bf16.msrb.mxu2 %v5343_v58  ;;  %v2568_v3 = vsel %vm2558_vm3, %v6508_v43, 0.0  ;;  %v2628_v58 = vsel %vm2558_vm3, %v6572_v51, 0.0 }
 0xca7   :  { %v2601_v30 = vadd.f32 %v2600_v5, %v2599_v28  ;;  %v2646_v40 = vadd.f32 %v2645_v29, %v2644_v22  ;;  %v2569_v43 = vadd.f32 %v2568_v3, %v6445_v0  ;;  %v5233_v29 = vld [vmem:[%s6945_s8 + $0x40] sm:$0xff]  ;;  %v2629_v22 = vadd.f32 %v2628_v58, %v6474_v21  ;;  %v5264_v58 = vld [vmem:[%s6945_s8 + $0x138] sm:$0xff] }
 0xca8   :  { %v2685_v3 = vperm.slane %v6662_v9, 3 }
 0xca9   :  { %v6632_v63 = vpop.f32.mrf.mxu2  ;;  %v6634_v45 = vpop.f32.mrf.mxu3 }
 0xcaa   :  { %v2570_v8 = vsel %vm2558_vm3, %v6634_v45, 0.0  ;;  %v5236_v45 = vld [vmem:[%s6945_s8 + $0x58] sm:$0xff] }
 0xcab   :  { %v2571_v7 = vadd.f32 %v2570_v8, %v2569_v43  ;;  %v5271_v8 = vld [vmem:[%s6945_s8 + $0x170] sm:$0xff] }
 0xcad   :  { %v2304_v4 = vpop.f32.mrf.mxu1  ;;  %v2343_v49 = vpop.f32.mrf.mxu0 }
 0xcb1   :  { %v2182_v37 = vpop.f32.mrf.mxu2  ;;  %v2278_v56 = vpop.f32.mrf.mxu3 }
 0xcb2   :  { %v2706_v56 = vld [vmem:[#allocation5] sm:$0xff] }
 0xcb3   :  { %2714 = vst [vmem:[#allocation1] ss:$2 sm:$0xff] %v2706_v56 }
 0xcb5   :  { %v6665_v36 = vpop.f32.mrf.mxu1  ;;  %v2476_v41 = vpop.f32.mrf.mxu0 }
 0xcb6   :  { %v2587_v11 = vsel %vm2558_vm3, %v2476_v41, 0.0 }
 0xcb7   :  { %v2588_v33 = vadd.f32 %v2587_v11, %v2586_v35  ;;  %v5247_v35 = vld [vmem:[%s6945_s8 + $0xb0] sm:$0xff] }
 0xcb8   :  { %v5235_v11 = vld [vmem:[%s6945_s8 + $0x50] sm:$0xff] }
 0xcb9   :  { %v2699_v46 = vadd.f32 %v2683_v27, %v2588_v33  ;;  %v6681_v12 = vpop.f32.mrf.mxu2  ;;  %v6683_v52 = vpop.f32.mrf.mxu3  ;;  %v2658_v33 = vsel %vm2558_vm3, %v6548_v60, 0.0  ;;  %v5234_v60 = vld [vmem:[%s6945_s8 + $0x48] sm:$0xff] }
 0xcba   :  { %v2615_v28 = vsel %vm2558_vm3, %v6681_v12, 0.0  ;;  %v2630_v51 = vsel %vm2558_vm3, %v6683_v52, 0.0  ;;  %v5272_v12 = vld [vmem:[%s6945_s8 + $0x178] sm:$0xff] }
 0xcbb   :  { %v2871_v14 = vpack.c.bf16 %v2699_v46, %v2699_v46  ;;  %v2660_v46 = vsel %vm2558_vm3, %v6665_v36, 0.0  ;;  %v5231_v36 = vld [vmem:[%s6945_s8 + $0x30] sm:$0xff]  ;;  %v2631_v52 = vadd.f32 %v2630_v51, %v2629_v22  ;;  %v5266_v51 = vld [vmem:[%s6945_s8 + $0x148] sm:$0xff] }
 0xcbc   :  { %v2869_v22 = vld [vmem:[%s6945_s8 + $0x1f0] sm:$0xf] }
 0xcbd   :  { %v2356_v15 = vpop.f32.mrf.mxu1  ;;  %v2478_v19 = vpop.f32.mrf.mxu0  ;;  %3406 = vmatmul.bf16.vlgmr.msra.gmra.mxu0 %v2871_v14  ;;  %v5246_v14 = vld [vmem:[%s6945_s8 + $0xa8] sm:$0xff] }
 0xcbe   :  { %3883 = vmatpush.bf16.msra.mxu0 %v5240_v13  ;;  %v2659_v15 = vadd.f32 %v2658_v33, %v6456_v10  ;;  %v2613_v19 = vsel %vm2558_vm3, %v6570_v1, 0.0  ;;  %v2707_v10 = vld [vmem:[#allocation5 + $0x8] sm:$0xff]  ;;  %v5241_v33 = vld [vmem:[%s6945_s8 + $0x80] sm:$0xff] }
 0xcbf   :  { %2716 = vst [vmem:[#allocation1 + $0x10] ss:$2 sm:$0xff] %v2707_v10  ;;  %v5267_v10 = vld [vmem:[%s6945_s8 + $0x150] sm:$0xff] }
 0xcc1   :  { %v2317_v26 = vpop.f32.mrf.mxu2  ;;  %v2330_v61 = vpop.f32.mrf.mxu3 }
 0xcc2   :  { %3884 = vmatpush.bf16.msra.mxu0 %v5239_v53  ;;  %v2661_v53 = vadd.f32 %v2660_v46, %v2659_v15  ;;  %v5245_v26 = vld [vmem:[%s6945_s8 + $0xa0] sm:$0xff]  ;;  %v2614_v61 = vadd.f32 %v2613_v19, %v6465_v16  ;;  %v5244_v16 = vld [vmem:[%s6945_s8 + $0x98] sm:$0xff]  ;;  %v5254_v46 = vld [vmem:[%s6945_s8 + $0xe8] sm:$0xff] }
 0xcc5   :  { %v2489_v31 = vpop.f32.mrf.mxu1  ;;  %v2528_v17 = vpop.f32.mrf.mxu0 }
 0xcc6   :  { %v2602_v34 = vsel %vm2558_vm3, %v2489_v31, 0.0  ;;  %v2647_v4 = vsel %vm2558_vm3, %v2528_v17, 0.0  ;;  %3885 = vmatpush.bf16.msra.mxu0 %v5238_v23  ;;  %v5230_v23 = vld [vmem:[%s6945_s8 + $0x28] sm:$0xff]  ;;  %v2616_v31 = vadd.f32 %v2615_v28, %v2614_v61 }
 0xcc7   :  { %v2603_v38 = vadd.f32 %v2602_v34, %v2601_v30  ;;  %v2648_v47 = vadd.f32 %v2647_v4, %v2646_v40  ;;  %v5278_v61 = vld [vmem:[%s6945_s8 + $0x1a8] sm:$0xff] }
 0xcc9   :  { %v2700_v48 = vadd.f32 %v2684_v32, %v2603_v38  ;;  %v2703_v49 = vadd.f32 %v2687_v42, %v2648_v47  ;;  %v6722_v50 = vpop.f32.mrf.mxu2  ;;  %v2463_v37 = vpop.f32.mrf.mxu3  ;;  %v2686_v42 = vperm.slane %v6662_v9, 4  ;;  %v2722_v38 = vld.sshfl [vmem:[#allocation1 + $0x8] sm:$0xff pattern:$0x75316420] }
 0xcca   :  { %3886 = vmatpush.bf16.msra.mxu0 %v5237_v25  ;;  %v2572_v59 = vsel %vm2558_vm3, %v2463_v37, 0.0  ;;  %v5229_v25 = vld [vmem:[%s6945_s8 + $0x20] sm:$0xff]  ;;  %v2738_v47 = vpack.c.bf16 %v2722_v38, %v2722_v38 }
 0xccb   :  { %v2872_v24 = vpack.c.bf16 %v2700_v48, %v2700_v48  ;;  %v2875_v0 = vpack.c.bf16 %v2703_v49, %v2703_v49  ;;  %v2573_v62 = vadd.f32 %v2572_v59, %v2571_v7  ;;  %v5242_v59 = vld [vmem:[%s6945_s8 + $0x88] sm:$0xff] }
 0xccd   :  { %v2491_v39 = vpop.f32.mrf.mxu1  ;;  %3419 = vmatmul.bf16.vlgmr.msra.gmra.mxu1 %v2872_v24  ;;  %3458 = vmatmul.bf16.vlgmr.msrb.gmra.mxu0 %v2875_v0  ;;  %v2530_v41 = vpop.f32.mrf.mxu0  ;;  %v2698_v27 = vadd.f32 %v2682_v54, %v2573_v62  ;;  %v5256_v24 = vld [vmem:[%s6945_s8 + $0xf8] sm:$0xff]  ;;  %v5255_v62 = vld [vmem:[%s6945_s8 + $0xf0] sm:$0xff] }
 0xcce   :  { %3896 = vmatpush.bf16.msra.mxu1 %v5248_v20  ;;  %3887 = vmatpush.bf16.msra.mxu0 %v5236_v45  ;;  %v5243_v20 = vld [vmem:[%s6945_s8 + $0x90] sm:$0xff]  ;;  %v5228_v54 = vld [vmem:[%s6945_s8 + $0x18] sm:$0xff]  ;;  %v5270_v45 = vld [vmem:[%s6945_s8 + $0x168] sm:$0xff] }
 0xccf   :  { %v2870_v6 = vpack.c.bf16 %v2698_v27, %v2698_v27  ;;  %v5269_v41 = vld [vmem:[%s6945_s8 + $0x160] sm:$0xff]  ;;  %v2674_v27 = vsel %vm2664_vm4, %v6632_v63, 0.0  ;;  %v5280_v63 = vld [vmem:[%s6945_s8 + $0x1b8] sm:$0xff] }
 0xcd1   :  { %v2369_v13 = vpop.f32.mrf.mxu2  ;;  %v2465_v18 = vpop.f32.mrf.mxu3  ;;  %3393 = vmatmul.bf16.vlgmr.msrb.gmra.mxu3 %v2870_v6  ;;  %v2676_v6 = vsel %vm2664_vm4, %v6722_v50, 0.0  ;;  %v5268_v50 = vld [vmem:[%s6945_s8 + $0x158] sm:$0xff] }
 0xcd2   :  { %3897 = vmatpush.bf16.msra.mxu1 %v5247_v35  ;;  %3888 = vmatpush.bf16.msra.mxu0 %v5235_v11  ;;  %v5227_v35 = vld [vmem:[%s6945_s8 + $0x10] sm:$0xff]  ;;  %v2708_v11 = vld [vmem:[#allocation5 + $0x10] sm:$0xff]  ;;  %v2675_v13 = vadd.f32 %v2674_v27, %v6510_v44  ;;  %v5253_v44 = vld [vmem:[%s6945_s8 + $0xe0] sm:$0xff] }
 0xcd3   :  { %3870 = vmatpush.bf16.msrb.mxu3 %v5232_v2  ;;  %v2723_v2 = vld.sshfl [vmem:[#allocation1 + $0x10] sm:$0xff pattern:$0x75316420]  ;;  %2718 = vst [vmem:[#allocation1 + $0x20] ss:$2 sm:$0xff] %v2708_v11 }
 0xcd4   :  { %v2739_v15 = vpack.c.bf16 %v2723_v2, %v2723_v2  ;;  %v2677_v18 = vadd.f32 %v2676_v6, %v2675_v13 }
 0xcd5   :  { %v2541_v57 = vpop.f32.mrf.mxu1 }
 0xcd6   :  { %v2662_v5 = vsel %vm2558_vm3, %v2541_v57, 0.0  ;;  %3898 = vmatpush.bf16.msra.mxu1 %v5246_v14  ;;  %3889 = vmatpush.bf16.msra.mxu0 %v5234_v60  ;;  %v5226_v14 = vld [vmem:[%s6945_s8 + $0x8] sm:$0xff] }
 0xcd7   :  { %v2663_v1 = vadd.f32 %v2662_v5, %v2661_v53  ;;  %3871 = vmatpush.bf16.msrb.mxu3 %v5231_v36  ;;  %v2689_v36 = vperm.slane %v6662_v9, 7  ;;  %v5279_v53 = vld [vmem:[%s6945_s8 + $0x1b0] sm:$0xff]  ;;  %v2721_v9 = vld.sshfl [vmem:[#allocation1] sm:$0xff pattern:$0x75316420] }
 0xcd8   :  { %v2737_v28 = vpack.c.bf16 %v2721_v9, %v2721_v9 }
 0xcd9   :  { %v2704_v30 = vadd.f32 %v2688_v55, %v2663_v1  ;;  %v2502_v32 = vpop.f32.mrf.mxu2  ;;  %v2515_v17 = vpop.f32.mrf.mxu3  ;;  %v5225_v55 = vld [vmem:[%s6945_s8] sm:$0xff] }
 0xcda   :  { %3899 = vmatpush.bf16.msra.mxu1 %v5245_v26  ;;  %v2617_v34 = vsel %vm2558_vm3, %v2502_v32, 0.0  ;;  %3890 = vmatpush.bf16.msra.mxu0 %v5233_v29  ;;  %v2632_v4 = vsel %vm2558_vm3, %v2515_v17, 0.0  ;;  %v5252_v26 = vld [vmem:[%s6945_s8 + $0xd8] sm:$0xff]  ;;  %v2709_v1 = vld [vmem:[#allocation5 + $0x18] sm:$0xff] }
 0xcdb   :  { %v2876_v40 = vpack.c.bf16 %v2704_v30, %v2704_v30  ;;  %v2618_v21 = vadd.f32 %v2617_v34, %v2616_v31  ;;  %3872 = vmatpush.bf16.msrb.mxu3 %v5230_v23  ;;  %v2633_v43 = vadd.f32 %v2632_v4, %v2631_v52  ;;  %2720 = vst [vmem:[#allocation1 + $0x30] ss:$2 sm:$0xff] %v2709_v1  ;;  %v5263_v23 = vld [vmem:[%s6945_s8 + $0x130] sm:$0xff]  ;;  %v5277_v31 = vld [vmem:[%s6945_s8 + $0x1a0] sm:$0xff]  ;;  %v3738_v52 = vunpack.c.l.b16 %v2869_v22  ;;  %v5276_v17 = vld [vmem:[%s6945_s8 + $0x198] sm:$0xff] }
 0xcdc   :  { %v5251_v30 = vld [vmem:[%s6945_s8 + $0xd0] sm:$0xff]  ;;  %v5265_v32 = vld [vmem:[%s6945_s8 + $0x140] sm:$0xff]  ;;  %v2724_v4 = vld.sshfl [vmem:[#allocation1 + $0x18] sm:$0xff pattern:$0x75316420] }
 0xcdd   :  { %3471 = vmatmul.bf16.vlgmr.msrb.gmra.mxu1 %v2876_v40  ;;  %v2543_v48 = vpop.f32.mrf.mxu1  ;;  %v2701_v49 = vadd.f32 %v2685_v3, %v2618_v21  ;;  %3891 = vmatmul.bf16.vlgmr.msra.gmra.mxu0 %v2738_v47  ;;  %v2702_v7 = vadd.f32 %v2686_v42, %v2633_v43  ;;  %v2726_v3 = vld.sshfl [vmem:[#allocation1 + $0x28] sm:$0xff pattern:$0x75316420]  ;;  %v5261_v42 = vld [vmem:[%s6945_s8 + $0x120] sm:$0xff]  ;;  %v3801_v38 = vpack.c.b16 %v3738_v52, %v3738_v52 }
 0xcde   :  { %3935 = vmatpush.bf16.msrb.mxu0 %v5272_v12  ;;  %3900 = vmatpush.bf16.msra.mxu1 %v5244_v16  ;;  %v5262_v16 = vld [vmem:[%s6945_s8 + $0x128] sm:$0xff]  ;;  %v2742_v34 = vpack.c.bf16 %v2726_v3, %v2726_v3  ;;  %v5249_v21 = vld [vmem:[%s6945_s8 + $0xc0] sm:$0xff]  ;;  %v2740_v43 = vpack.c.bf16 %v2724_v4, %v2724_v4 }
 0xcdf   :  { %v2873_v37 = vpack.c.bf16 %v2701_v49, %v2701_v49  ;;  %3873 = vmatpush.bf16.msrb.mxu3 %v5229_v25  ;;  %v2874_v56 = vpack.c.bf16 %v2702_v7, %v2702_v7  ;;  %v5250_v40 = vld [vmem:[%s6945_s8 + $0xc8] sm:$0xff]  ;;  %v5275_v25 = vld [vmem:[%s6945_s8 + $0x190] sm:$0xff]  ;;  %v3868_v47 = vsel %vm2558_vm3, %v3801_v38, 0  ;;  %v5285_v7 = vld [vmem:[%s6945_s8 + $0x1e0] sm:$0xff] }
 0xce0   :  { %v5286_v48 = vld [vmem:[%s6945_s8 + $0x1e8] sm:$0xff] }
 0xce1   :  { %v2504_v0 = vpop.f32.mrf.mxu2  ;;  %3432 = vmatmul.bf16.vlgmr.msra.gmra.mxu2 %v2873_v37  ;;  %3445 = vmatmul.bf16.vlgmr.msra.gmra.mxu3 %v2874_v56  ;;  %v2517_v39 = vpop.f32.mrf.mxu3  ;;  %v5274_v49 = vld [vmem:[%s6945_s8 + $0x188] sm:$0xff]  ;;  %v5284_v56 = vld [vmem:[%s6945_s8 + $0x1d8] sm:$0xff] }
 0xce2   :  { %3936 = vmatpush.bf16.msrb.mxu0 %v5271_v8  ;;  %3901 = vmatpush.bf16.msra.mxu1 %v5243_v20  ;;  %v5260_v8 = vld [vmem:[%s6945_s8 + $0x118] sm:$0xff]  ;;  %v5259_v20 = vld [vmem:[%s6945_s8 + $0x110] sm:$0xff]  ;;  %v5257_v0 = vld [vmem:[%s6945_s8 + $0x100] sm:$0xff] }
 0xce3   :  { %3909 = vmatpush.bf16.msra.mxu2 %v5256_v24  ;;  %3874 = vmatpush.bf16.msrb.mxu3 %v5228_v54  ;;  %v5273_v24 = vld [vmem:[%s6945_s8 + $0x180] sm:$0xff]  ;;  %v2727_v37 = vld.sshfl [vmem:[#allocation1 + $0x30] sm:$0xff pattern:$0x75316420]  ;;  %v5258_v54 = vld [vmem:[%s6945_s8 + $0x108] sm:$0xff] }
 0xce4   :  { %v5283_v39 = vld [vmem:[%s6945_s8 + $0x1d0] sm:$0xff]  ;;  %v2728_v27 = vld.sshfl [vmem:[#allocation1 + $0x38] sm:$0xff pattern:$0x75316420] }
 0xce5   :  { %v2744_v11 = vpack.c.bf16 %v2728_v27, %v2728_v27 }
 0xce6   :  { %3937 = vmatpush.bf16.msrb.mxu0 %v5270_v45  ;;  %3902 = vmatpush.bf16.msra.mxu1 %v5242_v59  ;;  %v2743_v45 = vpack.c.bf16 %v2727_v37, %v2727_v37  ;;  %v2725_v59 = vld.sshfl [vmem:[#allocation1 + $0x20] sm:$0xff pattern:$0x75316420] }
 0xce7   :  { %3910 = vmatpush.bf16.msra.mxu2 %v5255_v62  ;;  %3875 = vmatpush.bf16.msrb.mxu3 %v5227_v35  ;;  %v2741_v62 = vpack.c.bf16 %v2725_v59, %v2725_v59  ;;  %v5282_v35 = vld [vmem:[%s6945_s8 + $0x1c8] sm:$0xff] }
 0xce9   :  { %v2554_v60 = vpop.f32.mrf.mxu2 }
 0xcea   :  { %3938 = vmatpush.bf16.msrb.mxu0 %v5269_v41  ;;  %3903 = vmatpush.bf16.msra.mxu1 %v5241_v33  ;;  %v2678_v19 = vsel %vm2664_vm4, %v2554_v60, 0.0  ;;  %v5281_v41 = vld [vmem:[%s6945_s8 + $0x1c0] sm:$0xff]  ;;  %s5581_s8 = smov [#allocation16]  }
 0xceb   :  { %3911 = vmatpush.bf16.msra.mxu2 %v5254_v46  ;;  %v2679_v57 = vadd.f32 %v2678_v19, %v2677_v18  ;;  %3876 = vmatpush.bf16.msrb.mxu3 %v5226_v14  ;;  %s3986_s19 = sshll.u32 %s5581_s8, 4  ;;  %s3987_s19 = int_to_ptr.vmem [resolvable:$true] %s3986_s19 }
 0xced   :  { %3904 = vmatmul.bf16.vlgmr.msra.gmra.mxu1 %v2739_v15  ;;  %v2705_v5 = vadd.f32 %v2689_v36, %v2679_v57 }
 0xcee   :  { %3948 = vmatpush.bf16.msrb.mxu1 %v5280_v63  ;;  %3939 = vmatpush.bf16.msrb.mxu0 %v5268_v50 }
 0xcef   :  { %3912 = vmatpush.bf16.msra.mxu2 %v5253_v44  ;;  %v2877_v29 = vpack.c.bf16 %v2705_v5, %v2705_v5  ;;  %3877 = vmatpush.bf16.msrb.mxu3 %v5225_v55 }
 0xcf1   :  { %v2556_v12 = vpop.f32.mrf.mxu2  ;;  %4846 = vmatmul.msk.bf16.vlgmr.msrb.gmra.mxu2 %vm3378_vm5, %v2877_v29 }
 0xcf2   :  { %3949 = vmatpush.bf16.msrb.mxu1 %v5279_v53  ;;  %3940 = vmatpush.bf16.msrb.mxu0 %v5267_v10 }
 0xcf3   :  { %3922 = vmatpush.bf16.msra.mxu3 %v5264_v58  ;;  %3913 = vmatpush.bf16.msra.mxu2 %v5252_v26 }
 0xcf4   :  { %3878 = vmatmul.bf16.vlgmr.msrb.gmra.mxu3 %v2737_v28 }
 0xcf6   :  { %3950 = vmatpush.bf16.msrb.mxu1 %v5278_v61  ;;  %3941 = vmatpush.bf16.msrb.mxu0 %v5266_v51 }
 0xcf7   :  { %3923 = vmatpush.bf16.msra.mxu3 %v5263_v23  ;;  %3914 = vmatpush.bf16.msra.mxu2 %v5251_v30 }
 0xcfa   :  { %3951 = vmatpush.bf16.msrb.mxu1 %v5277_v31  ;;  %3942 = vmatpush.bf16.msrb.mxu0 %v5265_v32 }
 0xcfb   :  { %3924 = vmatpush.bf16.msra.mxu3 %v5262_v16  ;;  %3915 = vmatpush.bf16.msra.mxu2 %v5250_v40 }
 0xcfd   :  { %3943 = vmatmul.bf16.vlgmr.msrb.gmra.mxu0 %v2742_v34 }
 0xcfe   :  { %3952 = vmatpush.bf16.msrb.mxu1 %v5276_v17 }
 0xcff   :  { %3925 = vmatpush.bf16.msra.mxu3 %v5261_v42  ;;  %3916 = vmatpush.bf16.msra.mxu2 %v5249_v21 }
 0xd02   :  { %3953 = vmatpush.bf16.msrb.mxu1 %v5275_v25  ;;  %3917 = vmatmul.bf16.vlgmr.msra.gmra.mxu2 %v2740_v43 }
 0xd03   :  { %3962 = vmatpush.bf16.msrb.mxu2 %v3868_v47  ;;  %3926 = vmatpush.bf16.msra.mxu3 %v5260_v8  ;;  %v5388_v8 = vld [vmem:[#allocation14] ss:$0 sm:$0xff] }
 0xd06   :  { %3954 = vmatpush.bf16.msrb.mxu1 %v5274_v49 }
 0xd07   :  { %3963 = vmatpush.bf16.msrb.mxu2 %v5286_v48  ;;  %3927 = vmatpush.bf16.msra.mxu3 %v5259_v20 }
 0xd0a   :  { %3955 = vmatpush.bf16.msrb.mxu1 %v5273_v24 }
 0xd0b   :  { %3964 = vmatpush.bf16.msrb.mxu2 %v5285_v7  ;;  %3928 = vmatpush.bf16.msra.mxu3 %v5258_v54 }
 0xd0d   :  { %3956 = vmatmul.bf16.vlgmr.msrb.gmra.mxu1 %v2743_v45 }
 0xd0f   :  { %3965 = vmatpush.bf16.msrb.mxu2 %v5284_v56  ;;  %3929 = vmatpush.bf16.msra.mxu3 %v5257_v0 }
 0xd12   :  { %3930 = vmatmul.bf16.vlgmr.msra.gmra.mxu3 %v2741_v62 }
 0xd13   :  { %3966 = vmatpush.bf16.msrb.mxu2 %v5283_v39 }
 0xd17   :  { %3967 = vmatpush.bf16.msrb.mxu2 %v5282_v35 }
 0xd1b   :  { %3968 = vmatpush.bf16.msrb.mxu2 %v5281_v41 }
 0xd1e   :  { %5095 = vmatmul.msk.bf16.vlgmr.msrb.gmra.mxu2 %vm3378_vm5, %v2744_v11 }
 0xd3a   :  { %v3407_v33 = vpop.f32.mrf.mxu0 }
 0xd42   :  { %v3409_v2 = vpop.f32.mrf.mxu0 }
 0xd4a   :  { %v3420_v6 = vpop.f32.mrf.mxu1  ;;  %v3459_v46 = vpop.f32.mrf.mxu0 }
 0xd52   :  { %v3422_v63 = vpop.f32.mrf.mxu1  ;;  %v3461_v13 = vpop.f32.mrf.mxu0 }
 0xd54   :  { %v3394_v14 = vpop.f32.mrf.mxu3 }
 0xd55   :  { %v3408_v9 = vadd.f32 %v3407_v33, %v3394_v14 }
 0xd57   :  { %v3421_v58 = vadd.f32 %v3420_v6, %v3408_v9 }
 0xd5a   :  { %v3472_v50 = vpop.f32.mrf.mxu1  ;;  %v3892_v15 = vpop.f32.mrf.mxu0 }
 0xd5c   :  { %v3396_v18 = vpop.f32.mrf.mxu3 }
 0xd62   :  { %v3474_v60 = vpop.f32.mrf.mxu1  ;;  %v3894_v36 = vpop.f32.mrf.mxu0 }
 0xd64   :  { %v3433_v19 = vpop.f32.mrf.mxu2  ;;  %v3446_v44 = vpop.f32.mrf.mxu3 }
 0xd65   :  { %v3434_v28 = vadd.f32 %v3433_v19, %v3421_v58 }
 0xd67   :  { %v3447_v29 = vadd.f32 %v3446_v44, %v3434_v28 }
 0xd69   :  { %v3460_v23 = vadd.f32 %v3459_v46, %v3447_v29 }
 0xd6a   :  { %v3905_v53 = vpop.f32.mrf.mxu1 }
 0xd6b   :  { %v3473_v22 = vadd.f32 %v3472_v50, %v3460_v23 }
 0xd6c   :  { %v3435_v57 = vpop.f32.mrf.mxu2  ;;  %v3448_v55 = vpop.f32.mrf.mxu3 }
 0xd72   :  { %v3907_v10 = vpop.f32.mrf.mxu1 }
 0xd74   :  { %v3485_v5 = vpop.f32.mrf.mxu2 }
 0xd75   :  { %v3486_v30 = vadd.f32 %v3485_v5, %v3473_v22 }
 0xd77   :  { %v3879_v26 = vpop.f32.mrf.mxu3 }
 0xd78   :  { %v3880_v3 = vadd.f32 %v3879_v26, %v3486_v30 }
 0xd7a   :  { %v3944_v1 = vpop.f32.mrf.mxu0  ;;  %v3893_v16 = vadd.f32 %v3892_v15, %v3880_v3 }
 0xd7c   :  { %v3487_v61 = vpop.f32.mrf.mxu2  ;;  %v3906_v34 = vadd.f32 %v3905_v53, %v3893_v16 }
 0xd7f   :  { %v3881_v51 = vpop.f32.mrf.mxu3 }
 0xd82   :  { %v3946_v12 = vpop.f32.mrf.mxu0 }
 0xd85   :  { %v3918_v31 = vpop.f32.mrf.mxu2 }
 0xd86   :  { %v3919_v17 = vadd.f32 %v3918_v31, %v3906_v34 }
 0xd8a   :  { %v3957_v32 = vpop.f32.mrf.mxu1 }
 0xd8d   :  { %v3920_v52 = vpop.f32.mrf.mxu2 }
 0xd92   :  { %v3959_v40 = vpop.f32.mrf.mxu1 }
 0xd95   :  { %v3931_v42 = vpop.f32.mrf.mxu3 }
 0xd96   :  { %v3932_v38 = vadd.f32 %v3931_v42, %v3919_v17 }
 0xd98   :  { %v3945_v21 = vadd.f32 %v3944_v1, %v3932_v38 }
 0xd9a   :  { %v3958_v25 = vadd.f32 %v3957_v32, %v3945_v21 }
 0xd9d   :  { %v3933_v4 = vpop.f32.mrf.mxu3 }
 0xda1   :  { %v3970_v47 = vpop.f32.mrf.mxu2 }
 0xda2   :  { %v3971_v43 = vadd.f32 %v3970_v47, %v3958_v25 }
 0xda4   :  { %v3978_v48 = vadd.f32 %v5388_v8, %v3971_v43 }
 0xda6   :  { %3980 = vst.msk [vmem:[#allocation16] sm:$0xf] %vm3979_vm6, %v3978_v48 }
 0xda7   :  { %3991 = dma.vmem_to_hbm [thread:$0]  %s3987_s19, 64, %s3989_s21, [#allocation7]  }
 0xda9   :  { %v3972_v49 = vpop.f32.mrf.mxu2 }
 0xdaa   :  { %5567 = dma.done.wait [#allocation7], 64  }
 0xdab   :  { %5568 = vsyncadd [#allocation7], 4294967232 }
 0xdac   :  { %3996 = vsyncpa [#allocation6], 1 }
 0xdad   :  { %3997 = vsyncpa [#allocation9], 1 }
 0xdae   :  { %3998 = vsyncpa [#allocation12], 1 }
 0xdaf   :  { %3999 = vsyncpa [#allocation15], 1 }
 0xdb0   :  { %4000 = vsyncpa [#allocation7], 1 }
 0xdb1   :  { %4001 = vsyncmov [#allocation3] }
 0xdb4   :  { %s4002_s22 = vpop.sfrf %4001 }
 0xdb5   :  { %p5096_p0 = scmp.ne.s32.totalorder %s4002_s22, 0 }
 0xdb7   :  { %4006 = shalt.err (%p5096_p0)  }

</bundles_post_ra>
